<compile_context>
chip_gen: v5e
topology: v5e:2x2
jax: 0.10.0
libtpu: 0.0.40
codegen_flags: <defaults>
</compile_context>

<pallas_src>
import jax
import jax.numpy as jnp
from jax import lax
from jax.experimental import pallas as pl
from jax.experimental.pallas import tpu as pltpu

BN_EPS = 1e-5
LANE = 128


def _round_up(x, m):
    return (x + m - 1) // m * m


def _vmem_limit_bytes():
    # Generation-aware VMEM budget (v7x: 64 MiB physical, v5e/v6e: 128 MiB).
    try:
        cap = int(pltpu.get_tpu_info().vmem_capacity_bytes)
        return min(cap * 3 // 4, 96 * 1024 * 1024)
    except Exception:
        return 32 * 1024 * 1024


# ----------------------------- MaxPool3d(2) -----------------------------
def _pool_kernel(x_ref, o_ref):
    # x_ref: (1, 2, H2, 2, W2, 2, C) bf16 -- 2x2x2 window max (VPU max tree).
    x = x_ref[0]                               # (2, H2, 2, W2, 2, C)
    m = jnp.maximum(x[0], x[1])                # D pair -> (H2, 2, W2, 2, C)
    m = jnp.maximum(m[:, 0], m[:, 1])          # H pair -> (H2, W2, 2, C)
    m = jnp.max(m, axis=2)                     # W pair -> (H2, W2, C)
    o_ref[0] = m


def maxpool3d_2(x_ncdhw):
    N, C, D, H, W = x_ncdhw.shape
    D2, H2, W2 = D // 2, H // 2, W // 2
    x = x_ncdhw[:, :, :2 * D2, :2 * H2, :2 * W2]          # floor-crop like MaxPool3d(2)
    # One real XLA pass: NCDHW -> NDHWC + bf16 cast.  All later reshapes are free splits.
    x = jnp.transpose(x, (0, 2, 3, 4, 1)).astype(jnp.bfloat16)
    x = x.reshape(N * D2, 2, H2, 2, W2, 2, C)

    out = pl.pallas_call(
        _pool_kernel,
        out_shape=jax.ShapeDtypeStruct((N * D2, H2, W2, C), jnp.bfloat16),
        grid=(N * D2,),
        in_specs=[pl.BlockSpec((1, 2, H2, 2, W2, 2, C),
                               lambda i: (i, 0, 0, 0, 0, 0, 0))],
        out_specs=pl.BlockSpec((1, H2, W2, C), lambda i: (i, 0, 0, 0)),
        compiler_params=pltpu.CompilerParams(
            dimension_semantics=("parallel",),
            vmem_limit_bytes=_vmem_limit_bytes()),
    )(x)
    return out.reshape(N, D2, H2, W2, C)


# -------- Conv3d(3, pad=1): on-chip patch build + one MXU matmul + BN partial stats --------
def _make_conv_kernel(H, W, Cin, D, K_pad, fuse_in_bn):
    HW = H * W
    K27 = 27 * Cin

    def kernel(p0_ref, p1_ref, p2_ref, w_ref, sc_ref, sh_ref, out_ref, stats_ref):
        d = pl.program_id(1)
        planes = []
        for kd, pref in enumerate((p0_ref, p1_ref, p2_ref)):
            x = pref[0, 0]                                        # (H, W, Cin) bf16
            if fuse_in_bn:
                # fused BatchNorm+ReLU of the *previous* conv's output
                xf = x.astype(jnp.float32)
                xf = jnp.maximum(xf * sc_ref[...] + sh_ref[...], 0.0)
                x = xf.astype(jnp.bfloat16)
            # implicit zero padding along D: zero out-of-range halo planes
            if kd == 0:
                x = jnp.where(d >= 1, x, jnp.zeros_like(x))
            elif kd == 2:
                x = jnp.where(d <= D - 2, x, jnp.zeros_like(x))
            # zero-pad H and W by 1 in VMEM
            zh = jnp.zeros((1, W, Cin), x.dtype)
            x = jnp.concatenate([zh, x, zh], axis=0)              # (H+2, W, Cin)
            zw = jnp.zeros((H + 2, 1, Cin), x.dtype)
            x = jnp.concatenate([zw, x, zw], axis=1)              # (H+2, W+2, Cin)
            planes.append(x)

        # im2col in VMEM: (HW, 27*Cin) -> padded to (HW, K_pad)
        cols = []
        for kd in range(3):
            for kh in range(3):
                for kw in range(3):
                    sl = planes[kd][kh:kh + H, kw:kw + W, :]      # (H, W, Cin)
                    cols.append(sl.reshape(HW, Cin))
        if K_pad > K27:
            cols.append(jnp.zeros((HW, K_pad - K27), jnp.bfloat16))
        patches = jnp.concatenate(cols, axis=-1)                  # (HW, K_pad) bf16

        acc = jnp.dot(patches, w_ref[...], preferred_element_type=jnp.float32)
        out_ref[0, 0] = acc.astype(out_ref.dtype)                 # bf16 writeback

        # per-tile partial BN statistics from the f32 accumulator (two-pass BN)
        s1 = jnp.sum(acc, axis=0, keepdims=True)                  # (1, Cout_p)
        s2 = jnp.sum(acc * acc, axis=0, keepdims=True)            # (1, Cout_p)
        stats_ref[0, 0] = jnp.concatenate([s1, s2], axis=0)       # (2, Cout_p)

    return kernel


def conv3x3_stage(x, wk, K_pad, Cout_p, scale_in=None, shift_in=None):
    """Conv3d(3x3x3, pad=1) over an NDHWC activation.

    x:  (N, D, H, W, Cin) bf16 (Cin may include zero-padded channels).
    wk: (K_pad, Cout_p) bf16 weight, rows ordered (kd, kh, kw, cin).
    If scale_in/shift_in are given, relu(x*scale+shift) (the previous layer's
    BatchNorm+ReLU) is applied in-kernel to the input planes.
    Returns raw conv output (N, D, H*W, Cout_p) bf16 and per-(n, d) partial BN
    stats (N, D, 2, Cout_p) f32 (rows: sum, sum-of-squares).
    """
    N, D, H, W, Cin = x.shape
    HW = H * W
    fuse_in_bn = scale_in is not None
    if not fuse_in_bn:
        scale_in = jnp.zeros((1, Cin), jnp.float32)
        shift_in = jnp.zeros((1, Cin), jnp.float32)

    kernel = _make_conv_kernel(H, W, Cin, D, K_pad, fuse_in_bn)

    def plane_spec(kd):
        def idx(n, d):
            pd = jnp.minimum(jnp.maximum(d + kd - 1, 0), D - 1)   # clamp; masked in-kernel
            return (n, pd, 0, 0, 0)
        return pl.BlockSpec((1, 1, H, W, Cin), idx)

    out, stats = pl.pallas_call(
        kernel,
        out_shape=(jax.ShapeDtypeStruct((N, D, HW, Cout_p), jnp.bfloat16),
                   jax.ShapeDtypeStruct((N, D, 2, Cout_p), jnp.float32)),
        grid=(N, D),
        in_specs=[plane_spec(0), plane_spec(1), plane_spec(2),
                  pl.BlockSpec((K_pad, Cout_p), lambda n, d: (0, 0)),   # resident weight
                  pl.BlockSpec((1, Cin), lambda n, d: (0, 0)),
                  pl.BlockSpec((1, Cin), lambda n, d: (0, 0))],
        out_specs=[pl.BlockSpec((1, 1, HW, Cout_p), lambda n, d: (n, d, 0, 0)),
                   pl.BlockSpec((1, 1, 2, Cout_p), lambda n, d: (n, d, 0, 0))],
        compiler_params=pltpu.CompilerParams(
            dimension_semantics=("parallel", "parallel"),
            vmem_limit_bytes=_vmem_limit_bytes()),
    )(x, x, x, wk, scale_in, shift_in)
    return out, stats


def _prep_weight(w, Cin_p, Cout_p):
    # w: (3, 3, 3, Cin, Cout) -> (K_pad, Cout_p) bf16, rows ordered (kd, kh, kw, cin).
    cin, cout = w.shape[3], w.shape[4]
    wp = jnp.pad(w, ((0, 0), (0, 0), (0, 0), (0, Cin_p - cin), (0, Cout_p - cout)))
    wk = wp.reshape(27 * Cin_p, Cout_p)
    K_pad = _round_up(27 * Cin_p, LANE)
    if K_pad != 27 * Cin_p:
        wk = jnp.pad(wk, ((0, K_pad - 27 * Cin_p), (0, 0)))
    return wk.astype(jnp.bfloat16), K_pad


def _finalize_bn(stats, gamma, beta, count, Cout, Cout_p):
    s1 = jnp.sum(stats[:, :, 0, :], axis=(0, 1))
    s2 = jnp.sum(stats[:, :, 1, :], axis=(0, 1))
    mean = s1 / count
    # TODO(synk): E[x^2]-E[x]^2 can lose precision when |mean| >> std; use a
    #             centered second pass if BN statistics ever need to be exact.
    var = jnp.maximum(s2 / count - mean * mean, 0.0)
    gamma_p = jnp.pad(gamma, (0, Cout_p - Cout))
    beta_p = jnp.pad(beta, (0, Cout_p - Cout))
    scale = gamma_p * lax.rsqrt(var + BN_EPS)
    shift = beta_p - scale * mean
    return (scale.reshape(1, Cout_p).astype(jnp.float32),
            shift.reshape(1, Cout_p).astype(jnp.float32))


# ------------------------ final BN2 + ReLU apply (only standalone pass) ------------------------
def _bn_relu_kernel(x_ref, sc_ref, sh_ref, o_ref):
    x = x_ref[0, 0].astype(jnp.float32)
    o_ref[0, 0] = jnp.maximum(x * sc_ref[...] + sh_ref[...], 0.0)


def bn_relu_apply(x, scale, shift):
    N, D, HW, Cout_p = x.shape
    return pl.pallas_call(
        _bn_relu_kernel,
        out_shape=jax.ShapeDtypeStruct((N, D, HW, Cout_p), jnp.float32),
        grid=(N, D),
        in_specs=[pl.BlockSpec((1, 1, HW, Cout_p), lambda n, d: (n, d, 0, 0)),
                  pl.BlockSpec((1, Cout_p), lambda n, d: (0, 0)),
                  pl.BlockSpec((1, Cout_p), lambda n, d: (0, 0))],
        out_specs=pl.BlockSpec((1, 1, HW, Cout_p), lambda n, d: (n, d, 0, 0)),
        compiler_params=pltpu.CompilerParams(
            dimension_semantics=("parallel", "parallel"),
            vmem_limit_bytes=_vmem_limit_bytes()),
    )(x, scale, shift)


# ----------------------------------- Down -----------------------------------
def down_forward(x_ncdhw, params):
    # NOTE: Conv3d biases cancel exactly under train-mode BatchNorm (mean
    # subtraction), so b1/b2 are accepted for parity with the module but unused.
    N, Cin, _, _, _ = x_ncdhw.shape
    Cout = params["w1"].shape[-1]
    Cout_p = _round_up(Cout, LANE)

    pooled = maxpool3d_2(x_ncdhw)                          # (N, D2, H2, W2, Cin) bf16
    _, D2, H2, W2, _ = pooled.shape
    count = N * D2 * H2 * W2

    # conv1: real Cin channels in, Cout padded to Cout_p (lane-dense)
    w1k, K1 = _prep_weight(params["w1"], Cin, Cout_p)
    raw1, st1 = conv3x3_stage(pooled, w1k, K1, Cout_p)
    sc1, sh1 = _finalize_bn(st1, params["g1"], params["beta1"], count, Cout, Cout_p)

    # conv2: consumes padded raw1 directly (free reshape); BN1+ReLU fused in-kernel
    x1 = raw1.reshape(N, D2, H2, W2, Cout_p)
    w2k, K2 = _prep_weight(params["w2"], Cout_p, Cout_p)
    raw2, st2 = conv3x3_stage(x1, w2k, K2, Cout_p, scale_in=sc1, shift_in=sh1)
    sc2, sh2 = _finalize_bn(st2, params["g2"], params["beta2"], count, Cout, Cout_p)

    # final BN2+ReLU, then back to NCDHW
    y = bn_relu_apply(raw2, sc2, sh2)                      # (N, D2, H2*W2, Cout_p) f32
    y = y[:, :, :, :Cout].reshape(N, D2, H2, W2, Cout)
    return jnp.transpose(y, (0, 4, 1, 2, 3))


# ------------------------- pure-JAX reference (checking) -------------------------
def _ref_conv_bn_relu(y, w, b, g, bb):
    w_oidhw = jnp.transpose(w, (4, 3, 0, 1, 2))
    z = lax.conv_general_dilated(y, w_oidhw, (1, 1, 1), "SAME",
                                 dimension_numbers=("NCDHW", "OIDHW", "NCDHW"))
    z = z + b.reshape(1, -1, 1, 1, 1)
    mean = jnp.mean(z, axis=(0, 2, 3, 4), keepdims=True)
    var = jnp.mean(jnp.square(z - mean), axis=(0, 2, 3, 4), keepdims=True)
    z = (z - mean) / jnp.sqrt(var + BN_EPS)
    z = z * g.reshape(1, -1, 1, 1, 1) + bb.reshape(1, -1, 1, 1, 1)
    return jnp.maximum(z, 0.0)


def ref_down(x, params):
    y = lax.reduce_window(x, -jnp.inf, lax.max, (1, 1, 2, 2, 2), (1, 1, 2, 2, 2), "VALID")
    y = _ref_conv_bn_relu(y, params["w1"], params["b1"], params["g1"], params["beta1"])
    y = _ref_conv_bn_relu(y, params["w2"], params["b2"], params["g2"], params["beta2"])
    return y


if __name__ == "__main__":
    key = jax.random.PRNGKey(0)
    N, Cin, Cout, D, H, W = 2, 4, 8, 8, 8, 8
    k1, k2, k3, k4, k5 = jax.random.split(key, 5)

    x = jax.random.normal(k1, (N, Cin, D, H, W), jnp.float32)
    params = {
        # conv weights stored as (kd, kh, kw, Cin, Cout); BN gamma=1, beta=0 (module init)
        "w1": jax.random.normal(k2, (3, 3, 3, Cin, Cout), jnp.float32) * 0.1,
        "b1": jax.random.normal(k3, (Cout,), jnp.float32) * 0.1,
        "g1": jnp.ones((Cout,), jnp.float32),
        "beta1": jnp.zeros((Cout,), jnp.float32),
        "w2": jax.random.normal(k4, (3, 3, 3, Cout, Cout), jnp.float32) * 0.1,
        "b2": jax.random.normal(k5, (Cout,), jnp.float32) * 0.1,
        "g2": jnp.ones((Cout,), jnp.float32),
        "beta2": jnp.zeros((Cout,), jnp.float32),
    }

    down = jax.jit(down_forward)
    out = jax.block_until_ready(down(x, params))
    ref = jax.block_until_ready(ref_down(x, params))

    assert out.shape == (N, Cout, D // 2, H // 2, W // 2), out.shape
    # Tolerances account for bf16 matmul operands and bf16 inter-stage storage
    # (f32 accumulation); real bugs produce O(1) errors after unit-variance BN.
    abs_err = float(jnp.max(jnp.abs(out - ref)))
    rel_err = float(jnp.linalg.norm(out - ref) / (jnp.linalg.norm(ref) + 1e-12))
    assert abs_err < 2e-1, f"max abs err {abs_err}"
    assert rel_err < 6e-2, f"rel err {rel_err}"
    print("KERNEL_OK")
</pallas_src>

<mosaic_0001>
module attributes {stable_mosaic.version = 11 : i64} {
  func.func @_pool_kernel(%arg0: i32, %arg1: memref<1x2x4x2x4x2x4xbf16, #tpu.memory_space<vmem>>, %arg2: memref<1x4x4x4xbf16, #tpu.memory_space<vmem>>) attributes {dimension_semantics = [#tpu.dimension_semantics<parallel>], iteration_bounds = array<i64: 8>, scalar_prefetch = 0 : i64, scratch_operands = 0 : i64, tpu.core_type = #tpu.core_type<tc>, window_params = [{transform_indices = @transform_0, window_bounds = array<i64: 1, 2, 4, 2, 4, 2, 4>}, {transform_indices = @transform_1, window_bounds = array<i64: 1, 4, 4, 4>}]} {
    %c0 = arith.constant 0 : index
    %c0_0 = arith.constant 0 : index
    %c0_1 = arith.constant 0 : index
    %c0_2 = arith.constant 0 : index
    %c0_3 = arith.constant 0 : index
    %c0_4 = arith.constant 0 : index
    %c0_5 = arith.constant 0 : index
    %0 = vector.load %arg1[%c0, %c0_0, %c0_1, %c0_2, %c0_3, %c0_4, %c0_5] : memref<1x2x4x2x4x2x4xbf16, #tpu.memory_space<vmem>>, vector<1x2x4x2x4x2x4xbf16>
    %1 = vector.shape_cast %0 : vector<1x2x4x2x4x2x4xbf16> to vector<2x4x2x4x2x4xbf16>
    %2 = vector.extract_strided_slice %1 {offsets = [0, 0, 0, 0, 0, 0], sizes = [1, 4, 2, 4, 2, 4], strides = [1, 1, 1, 1, 1, 1]} : vector<2x4x2x4x2x4xbf16> to vector<1x4x2x4x2x4xbf16>
    %3 = vector.shape_cast %2 : vector<1x4x2x4x2x4xbf16> to vector<4x2x4x2x4xbf16>
    %4 = vector.extract_strided_slice %1 {offsets = [1, 0, 0, 0, 0, 0], sizes = [1, 4, 2, 4, 2, 4], strides = [1, 1, 1, 1, 1, 1]} : vector<2x4x2x4x2x4xbf16> to vector<1x4x2x4x2x4xbf16>
    %5 = vector.shape_cast %4 : vector<1x4x2x4x2x4xbf16> to vector<4x2x4x2x4xbf16>
    %6 = arith.maximumf %3, %5 : vector<4x2x4x2x4xbf16>
    %7 = vector.extract_strided_slice %6 {offsets = [0, 0, 0, 0, 0], sizes = [4, 1, 4, 2, 4], strides = [1, 1, 1, 1, 1]} : vector<4x2x4x2x4xbf16> to vector<4x1x4x2x4xbf16>
    %8 = vector.shape_cast %7 : vector<4x1x4x2x4xbf16> to vector<4x4x2x4xbf16>
    %9 = vector.extract_strided_slice %6 {offsets = [0, 1, 0, 0, 0], sizes = [4, 1, 4, 2, 4], strides = [1, 1, 1, 1, 1]} : vector<4x2x4x2x4xbf16> to vector<4x1x4x2x4xbf16>
    %10 = vector.shape_cast %9 : vector<4x1x4x2x4xbf16> to vector<4x4x2x4xbf16>
    %11 = arith.maximumf %8, %10 : vector<4x4x2x4xbf16>
    %cst = arith.constant dense<0xFF80> : vector<4x4x4xbf16>
    %12 = vector.multi_reduction <maximumf>, %11, %cst [2] : vector<4x4x2x4xbf16> to vector<4x4x4xbf16>
    %c0_6 = arith.constant 0 : index
    %c0_7 = arith.constant 0 : index
    %c0_8 = arith.constant 0 : index
    %c0_9 = arith.constant 0 : index
    %13 = vector.load %arg2[%c0_6, %c0_7, %c0_8, %c0_9] : memref<1x4x4x4xbf16, #tpu.memory_space<vmem>>, vector<1x4x4x4xbf16>
    %14 = vector.shape_cast %13 : vector<1x4x4x4xbf16> to vector<4x4x4xbf16>
    %15 = vector.shape_cast %12 : vector<4x4x4xbf16> to vector<1x4x4x4xbf16>
    tpu.vector_store %arg2[%c0_6, %c0_7, %c0_8, %c0_9], %15 {strides = array<i32>} : memref<1x4x4x4xbf16, #tpu.memory_space<vmem>>, vector<1x4x4x4xbf16>,
    return
  }
  func.func @transform_0(%arg0: i32) -> (i32, i32, i32, i32, i32, i32, i32) {
    %c0_i32 = arith.constant 0 : i32
    %c0_i32_0 = arith.constant 0 : i32
    %c0_i32_1 = arith.constant 0 : i32
    %c0_i32_2 = arith.constant 0 : i32
    %c0_i32_3 = arith.constant 0 : i32
    %c0_i32_4 = arith.constant 0 : i32
    %c0_i32_5 = arith.constant 0 : i32
    return %arg0, %c0_i32, %c0_i32_0, %c0_i32_1, %c0_i32_2, %c0_i32_3, %c0_i32_4 : i32, i32, i32, i32, i32, i32, i32
  }
  func.func @transform_1(%arg0: i32) -> (i32, i32, i32, i32) {
    %c0_i32 = arith.constant 0 : i32
    %c0_i32_0 = arith.constant 0 : i32
    %c0_i32_1 = arith.constant 0 : i32
    %c0_i32_2 = arith.constant 0 : i32
    return %arg0, %c0_i32, %c0_i32_0, %c0_i32_1 : i32, i32, i32, i32
  }
}

module attributes {stable_mosaic.version = 11 : i64} {
  func.func @kernel(%arg0: i32, %arg1: i32, %arg2: memref<1x1x4x4x4xbf16, #tpu.memory_space<vmem>>, %arg3: memref<1x1x4x4x4xbf16, #tpu.memory_space<vmem>>, %arg4: memref<1x1x4x4x4xbf16, #tpu.memory_space<vmem>>, %arg5: memref<128x128xbf16, #tpu.memory_space<vmem>>, %arg6: memref<1x4xf32, #tpu.memory_space<vmem>>, %arg7: memref<1x4xf32, #tpu.memory_space<vmem>>, %arg8: memref<1x1x16x128xbf16, #tpu.memory_space<vmem>>, %arg9: memref<1x1x2x128xf32, #tpu.memory_space<vmem>>) attributes {dimension_semantics = [#tpu.dimension_semantics<parallel>, #tpu.dimension_semantics<parallel>], iteration_bounds = array<i64: 2, 4>, scalar_prefetch = 0 : i64, scratch_operands = 0 : i64, tpu.core_type = #tpu.core_type<tc>, window_params = [{transform_indices = @transform_0, window_bounds = array<i64: 1, 1, 4, 4, 4>}, {transform_indices = @transform_1, window_bounds = array<i64: 1, 1, 4, 4, 4>}, {transform_indices = @transform_2, window_bounds = array<i64: 1, 1, 4, 4, 4>}, {pipeline_mode = #tpu.pipeline_mode<synchronous>, transform_indices = @transform_3, window_bounds = array<i64: 128, 128>}, {pipeline_mode = #tpu.pipeline_mode<synchronous>, transform_indices = @transform_4, window_bounds = array<i64: 1, 4>}, {pipeline_mode = #tpu.pipeline_mode<synchronous>, transform_indices = @transform_5, window_bounds = array<i64: 1, 4>}, {transform_indices = @transform_6, window_bounds = array<i64: 1, 1, 16, 128>}, {transform_indices = @transform_7, window_bounds = array<i64: 1, 1, 2, 128>}]} {
    %c0 = arith.constant 0 : index
    %c0_0 = arith.constant 0 : index
    %c0_1 = arith.constant 0 : index
    %c0_2 = arith.constant 0 : index
    %c0_3 = arith.constant 0 : index
    %0 = vector.load %arg2[%c0, %c0_0, %c0_1, %c0_2, %c0_3] : memref<1x1x4x4x4xbf16, #tpu.memory_space<vmem>>, vector<1x1x4x4x4xbf16>
    %1 = vector.shape_cast %0 : vector<1x1x4x4x4xbf16> to vector<4x4x4xbf16>
    %c1_i32 = arith.constant 1 : i32
    %2 = arith.cmpi sge, %arg1, %c1_i32 : i32
    %cst = arith.constant 0.000000e+00 : bf16
    %3 = vector.broadcast %cst : bf16 to vector<4x4x4xbf16>
    %4 = arith.select %2, %1, %3 : vector<4x4x4xbf16>
    %cst_4 = arith.constant 0.000000e+00 : bf16
    %5 = vector.broadcast %cst_4 : bf16 to vector<1x4x4xbf16>
    %6 = tpu.concatenate %5, %4, %5 in 0 : vector<1x4x4xbf16>, vector<4x4x4xbf16>, vector<1x4x4xbf16> -> vector<6x4x4xbf16>
    %cst_5 = arith.constant 0.000000e+00 : bf16
    %7 = vector.broadcast %cst_5 : bf16 to vector<6x1x4xbf16>
    %8 = tpu.concatenate %7, %6, %7 in 1 : vector<6x1x4xbf16>, vector<6x4x4xbf16>, vector<6x1x4xbf16> -> vector<6x6x4xbf16>
    %c0_6 = arith.constant 0 : index
    %c0_7 = arith.constant 0 : index
    %c0_8 = arith.constant 0 : index
    %c0_9 = arith.constant 0 : index
    %c0_10 = arith.constant 0 : index
    %9 = vector.load %arg3[%c0_6, %c0_7, %c0_8, %c0_9, %c0_10] : memref<1x1x4x4x4xbf16, #tpu.memory_space<vmem>>, vector<1x1x4x4x4xbf16>
    %10 = vector.shape_cast %9 : vector<1x1x4x4x4xbf16> to vector<4x4x4xbf16>
    %cst_11 = arith.constant 0.000000e+00 : bf16
    %11 = vector.broadcast %cst_11 : bf16 to vector<1x4x4xbf16>
    %12 = tpu.concatenate %11, %10, %11 in 0 : vector<1x4x4xbf16>, vector<4x4x4xbf16>, vector<1x4x4xbf16> -> vector<6x4x4xbf16>
    %cst_12 = arith.constant 0.000000e+00 : bf16
    %13 = vector.broadcast %cst_12 : bf16 to vector<6x1x4xbf16>
    %14 = tpu.concatenate %13, %12, %13 in 1 : vector<6x1x4xbf16>, vector<6x4x4xbf16>, vector<6x1x4xbf16> -> vector<6x6x4xbf16>
    %c0_13 = arith.constant 0 : index
    %c0_14 = arith.constant 0 : index
    %c0_15 = arith.constant 0 : index
    %c0_16 = arith.constant 0 : index
    %c0_17 = arith.constant 0 : index
    %15 = vector.load %arg4[%c0_13, %c0_14, %c0_15, %c0_16, %c0_17] : memref<1x1x4x4x4xbf16, #tpu.memory_space<vmem>>, vector<1x1x4x4x4xbf16>
    %16 = vector.shape_cast %15 : vector<1x1x4x4x4xbf16> to vector<4x4x4xbf16>
    %c2_i32 = arith.constant 2 : i32
    %17 = arith.cmpi sle, %arg1, %c2_i32 : i32
    %cst_18 = arith.constant 0.000000e+00 : bf16
    %18 = vector.broadcast %cst_18 : bf16 to vector<4x4x4xbf16>
    %19 = arith.select %17, %16, %18 : vector<4x4x4xbf16>
    %cst_19 = arith.constant 0.000000e+00 : bf16
    %20 = vector.broadcast %cst_19 : bf16 to vector<1x4x4xbf16>
    %21 = tpu.concatenate %20, %19, %20 in 0 : vector<1x4x4xbf16>, vector<4x4x4xbf16>, vector<1x4x4xbf16> -> vector<6x4x4xbf16>
    %cst_20 = arith.constant 0.000000e+00 : bf16
    %22 = vector.broadcast %cst_20 : bf16 to vector<6x1x4xbf16>
    %23 = tpu.concatenate %22, %21, %22 in 1 : vector<6x1x4xbf16>, vector<6x4x4xbf16>, vector<6x1x4xbf16> -> vector<6x6x4xbf16>
    %24 = vector.extract_strided_slice %8 {offsets = [0, 0, 0], sizes = [4, 4, 4], strides = [1, 1, 1]} : vector<6x6x4xbf16> to vector<4x4x4xbf16>
    %25 = vector.shape_cast %24 : vector<4x4x4xbf16> to vector<16x4xbf16>
    %26 = vector.extract_strided_slice %8 {offsets = [0, 1, 0], sizes = [4, 4, 4], strides = [1, 1, 1]} : vector<6x6x4xbf16> to vector<4x4x4xbf16>
    %27 = vector.shape_cast %26 : vector<4x4x4xbf16> to vector<16x4xbf16>
    %28 = vector.extract_strided_slice %8 {offsets = [0, 2, 0], sizes = [4, 4, 4], strides = [1, 1, 1]} : vector<6x6x4xbf16> to vector<4x4x4xbf16>
    %29 = vector.shape_cast %28 : vector<4x4x4xbf16> to vector<16x4xbf16>
    %30 = vector.extract_strided_slice %8 {offsets = [1, 0, 0], sizes = [4, 4, 4], strides = [1, 1, 1]} : vector<6x6x4xbf16> to vector<4x4x4xbf16>
    %31 = vector.shape_cast %30 : vector<4x4x4xbf16> to vector<16x4xbf16>
    %32 = vector.extract_strided_slice %8 {offsets = [1, 1, 0], sizes = [4, 4, 4], strides = [1, 1, 1]} : vector<6x6x4xbf16> to vector<4x4x4xbf16>
    %33 = vector.shape_cast %32 : vector<4x4x4xbf16> to vector<16x4xbf16>
    %34 = vector.extract_strided_slice %8 {offsets = [1, 2, 0], sizes = [4, 4, 4], strides = [1, 1, 1]} : vector<6x6x4xbf16> to vector<4x4x4xbf16>
    %35 = vector.shape_cast %34 : vector<4x4x4xbf16> to vector<16x4xbf16>
    %36 = vector.extract_strided_slice %8 {offsets = [2, 0, 0], sizes = [4, 4, 4], strides = [1, 1, 1]} : vector<6x6x4xbf16> to vector<4x4x4xbf16>
    %37 = vector.shape_cast %36 : vector<4x4x4xbf16> to vector<16x4xbf16>
    %38 = vector.extract_strided_slice %8 {offsets = [2, 1, 0], sizes = [4, 4, 4], strides = [1, 1, 1]} : vector<6x6x4xbf16> to vector<4x4x4xbf16>
    %39 = vector.shape_cast %38 : vector<4x4x4xbf16> to vector<16x4xbf16>
    %40 = vector.extract_strided_slice %8 {offsets = [2, 2, 0], sizes = [4, 4, 4], strides = [1, 1, 1]} : vector<6x6x4xbf16> to vector<4x4x4xbf16>
    %41 = vector.shape_cast %40 : vector<4x4x4xbf16> to vector<16x4xbf16>
    %42 = vector.extract_strided_slice %14 {offsets = [0, 0, 0], sizes = [4, 4, 4], strides = [1, 1, 1]} : vector<6x6x4xbf16> to vector<4x4x4xbf16>
    %43 = vector.shape_cast %42 : vector<4x4x4xbf16> to vector<16x4xbf16>
    %44 = vector.extract_strided_slice %14 {offsets = [0, 1, 0], sizes = [4, 4, 4], strides = [1, 1, 1]} : vector<6x6x4xbf16> to vector<4x4x4xbf16>
    %45 = vector.shape_cast %44 : vector<4x4x4xbf16> to vector<16x4xbf16>
    %46 = vector.extract_strided_slice %14 {offsets = [0, 2, 0], sizes = [4, 4, 4], strides = [1, 1, 1]} : vector<6x6x4xbf16> to vector<4x4x4xbf16>
    %47 = vector.shape_cast %46 : vector<4x4x4xbf16> to vector<16x4xbf16>
    %48 = vector.extract_strided_slice %14 {offsets = [1, 0, 0], sizes = [4, 4, 4], strides = [1, 1, 1]} : vector<6x6x4xbf16> to vector<4x4x4xbf16>
    %49 = vector.shape_cast %48 : vector<4x4x4xbf16> to vector<16x4xbf16>
    %50 = vector.extract_strided_slice %14 {offsets = [1, 1, 0], sizes = [4, 4, 4], strides = [1, 1, 1]} : vector<6x6x4xbf16> to vector<4x4x4xbf16>
    %51 = vector.shape_cast %50 : vector<4x4x4xbf16> to vector<16x4xbf16>
    %52 = vector.extract_strided_slice %14 {offsets = [1, 2, 0], sizes = [4, 4, 4], strides = [1, 1, 1]} : vector<6x6x4xbf16> to vector<4x4x4xbf16>
    %53 = vector.shape_cast %52 : vector<4x4x4xbf16> to vector<16x4xbf16>
    %54 = vector.extract_strided_slice %14 {offsets = [2, 0, 0], sizes = [4, 4, 4], strides = [1, 1, 1]} : vector<6x6x4xbf16> to vector<4x4x4xbf16>
    %55 = vector.shape_cast %54 : vector<4x4x4xbf16> to vector<16x4xbf16>
    %56 = vector.extract_strided_slice %14 {offsets = [2, 1, 0], sizes = [4, 4, 4], strides = [1, 1, 1]} : vector<6x6x4xbf16> to vector<4x4x4xbf16>
    %57 = vector.shape_cast %56 : vector<4x4x4xbf16> to vector<16x4xbf16>
    %58 = vector.extract_strided_slice %14 {offsets = [2, 2, 0], sizes = [4, 4, 4], strides = [1, 1, 1]} : vector<6x6x4xbf16> to vector<4x4x4xbf16>
    %59 = vector.shape_cast %58 : vector<4x4x4xbf16> to vector<16x4xbf16>
    %60 = vector.extract_strided_slice %23 {offsets = [0, 0, 0], sizes = [4, 4, 4], strides = [1, 1, 1]} : vector<6x6x4xbf16> to vector<4x4x4xbf16>
    %61 = vector.shape_cast %60 : vector<4x4x4xbf16> to vector<16x4xbf16>
    %62 = vector.extract_strided_slice %23 {offsets = [0, 1, 0], sizes = [4, 4, 4], strides = [1, 1, 1]} : vector<6x6x4xbf16> to vector<4x4x4xbf16>
    %63 = vector.shape_cast %62 : vector<4x4x4xbf16> to vector<16x4xbf16>
    %64 = vector.extract_strided_slice %23 {offsets = [0, 2, 0], sizes = [4, 4, 4], strides = [1, 1, 1]} : vector<6x6x4xbf16> to vector<4x4x4xbf16>
    %65 = vector.shape_cast %64 : vector<4x4x4xbf16> to vector<16x4xbf16>
    %66 = vector.extract_strided_slice %23 {offsets = [1, 0, 0], sizes = [4, 4, 4], strides = [1, 1, 1]} : vector<6x6x4xbf16> to vector<4x4x4xbf16>
    %67 = vector.shape_cast %66 : vector<4x4x4xbf16> to vector<16x4xbf16>
    %68 = vector.extract_strided_slice %23 {offsets = [1, 1, 0], sizes = [4, 4, 4], strides = [1, 1, 1]} : vector<6x6x4xbf16> to vector<4x4x4xbf16>
    %69 = vector.shape_cast %68 : vector<4x4x4xbf16> to vector<16x4xbf16>
    %70 = vector.extract_strided_slice %23 {offsets = [1, 2, 0], sizes = [4, 4, 4], strides = [1, 1, 1]} : vector<6x6x4xbf16> to vector<4x4x4xbf16>
    %71 = vector.shape_cast %70 : vector<4x4x4xbf16> to vector<16x4xbf16>
    %72 = vector.extract_strided_slice %23 {offsets = [2, 0, 0], sizes = [4, 4, 4], strides = [1, 1, 1]} : vector<6x6x4xbf16> to vector<4x4x4xbf16>
    %73 = vector.shape_cast %72 : vector<4x4x4xbf16> to vector<16x4xbf16>
    %74 = vector.extract_strided_slice %23 {offsets = [2, 1, 0], sizes = [4, 4, 4], strides = [1, 1, 1]} : vector<6x6x4xbf16> to vector<4x4x4xbf16>
    %75 = vector.shape_cast %74 : vector<4x4x4xbf16> to vector<16x4xbf16>
    %76 = vector.extract_strided_slice %23 {offsets = [2, 2, 0], sizes = [4, 4, 4], strides = [1, 1, 1]} : vector<6x6x4xbf16> to vector<4x4x4xbf16>
    %77 = vector.shape_cast %76 : vector<4x4x4xbf16> to vector<16x4xbf16>
    %cst_21 = arith.constant 0.000000e+00 : bf16
    %78 = vector.broadcast %cst_21 : bf16 to vector<16x20xbf16>
    %79 = tpu.concatenate %25, %27, %29, %31, %33, %35, %37, %39, %41, %43, %45, %47, %49, %51, %53, %55 in 1 : vector<16x4xbf16>, vector<16x4xbf16>, vector<16x4xbf16>, vector<16x4xbf16>, vector<16x4xbf16>, vector<16x4xbf16>, vector<16x4xbf16>, vector<16x4xbf16>, vector<16x4xbf16>, vector<16x4xbf16>, vector<16x4xbf16>, vector<16x4xbf16>, vector<16x4xbf16>, vector<16x4xbf16>, vector<16x4xbf16>, vector<16x4xbf16> -> vector<16x64xbf16>
    %80 = tpu.concatenate %57, %59, %61, %63, %65, %67, %69, %71, %73, %75, %77, %78 in 1 : vector<16x4xbf16>, vector<16x4xbf16>, vector<16x4xbf16>, vector<16x4xbf16>, vector<16x4xbf16>, vector<16x4xbf16>, vector<16x4xbf16>, vector<16x4xbf16>, vector<16x4xbf16>, vector<16x4xbf16>, vector<16x4xbf16>, vector<16x20xbf16> -> vector<16x64xbf16>
    %81 = tpu.concatenate %79, %80 in 1 : vector<16x64xbf16>, vector<16x64xbf16> -> vector<16x128xbf16>
    %c0_22 = arith.constant 0 : index
    %c0_23 = arith.constant 0 : index
    %82 = vector.load %arg5[%c0_22, %c0_23] : memref<128x128xbf16, #tpu.memory_space<vmem>>, vector<128x128xbf16>
    %cst_24 = arith.constant dense<0.000000e+00> : vector<16x128xf32>
    %83 = tpu.matmul %81, %82, %cst_24 {dimension_numbers = #tpu.dot_dimension_numbers<[1], [0], [0], [1], [0, 0, 1, 1], [], []>} : vector<16x128xbf16>, vector<128x128xbf16>, vector<16x128xf32> -> vector<16x128xf32>
    %84 = arith.truncf %83 : vector<16x128xf32> to vector<16x128xbf16>
    %c0_25 = arith.constant 0 : index
    %c0_26 = arith.constant 0 : index
    %c0_27 = arith.constant 0 : index
    %c0_28 = arith.constant 0 : index
    %85 = vector.load %arg8[%c0_25, %c0_26, %c0_27, %c0_28] : memref<1x1x16x128xbf16, #tpu.memory_space<vmem>>, vector<1x1x16x128xbf16>
    %86 = vector.shape_cast %85 : vector<1x1x16x128xbf16> to vector<16x128xbf16>
    %87 = vector.shape_cast %84 : vector<16x128xbf16> to vector<1x1x16x128xbf16>
    tpu.vector_store %arg8[%c0_25, %c0_26, %c0_27, %c0_28], %87 {strides = array<i32>} : memref<1x1x16x128xbf16, #tpu.memory_space<vmem>>, vector<1x1x16x128xbf16>,
    %cst_29 = arith.constant dense<0.000000e+00> : vector<128xf32>
    %88 = vector.multi_reduction <add>, %83, %cst_29 [0] : vector<16x128xf32> to vector<128xf32>
    %89 = vector.shape_cast %88 : vector<128xf32> to vector<1x128xf32>
    %90 = arith.mulf %83, %83 : vector<16x128xf32>
    %cst_30 = arith.constant dense<0.000000e+00> : vector<128xf32>
    %91 = vector.multi_reduction <add>, %90, %cst_30 [0] : vector<16x128xf32> to vector<128xf32>
    %92 = vector.shape_cast %91 : vector<128xf32> to vector<1x128xf32>
    %93 = tpu.concatenate %89, %92 in 0 : vector<1x128xf32>, vector<1x128xf32> -> vector<2x128xf32>
    %c0_31 = arith.constant 0 : index
    %c0_32 = arith.constant 0 : index
    %c0_33 = arith.constant 0 : index
    %c0_34 = arith.constant 0 : index
    %94 = vector.load %arg9[%c0_31, %c0_32, %c0_33, %c0_34] : memref<1x1x2x128xf32, #tpu.memory_space<vmem>>, vector<1x1x2x128xf32>
    %95 = vector.shape_cast %94 : vector<1x1x2x128xf32> to vector<2x128xf32>
    %96 = vector.shape_cast %93 : vector<2x128xf32> to vector<1x1x2x128xf32>
    tpu.vector_store %arg9[%c0_31, %c0_32, %c0_33, %c0_34], %96 {strides = array<i32>} : memref<1x1x2x128xf32, #tpu.memory_space<vmem>>, vector<1x1x2x128xf32>,
    return
  }
  func.func @transform_0(%arg0: i32, %arg1: i32) -> (i32, i32, i32, i32, i32) {
    %c0_i32 = arith.constant 0 : i32
    %0 = arith.addi %arg1, %c0_i32 : i32
    %c1_i32 = arith.constant 1 : i32
    %1 = arith.subi %0, %c1_i32 : i32
    %c0_i32_0 = arith.constant 0 : i32
    %2 = arith.maxsi %1, %c0_i32_0 : i32
    %c3_i32 = arith.constant 3 : i32
    %3 = arith.minsi %2, %c3_i32 : i32
    %c0_i32_1 = arith.constant 0 : i32
    %c0_i32_2 = arith.constant 0 : i32
    %c0_i32_3 = arith.constant 0 : i32
    %c0_i32_4 = arith.constant 0 : i32
    return %arg0, %3, %c0_i32_1, %c0_i32_2, %c0_i32_3 : i32, i32, i32, i32, i32
  }
  func.func @transform_1(%arg0: i32, %arg1: i32) -> (i32, i32, i32, i32, i32) {
    %c1_i32 = arith.constant 1 : i32
    %0 = arith.addi %arg1, %c1_i32 : i32
    %c1_i32_0 = arith.constant 1 : i32
    %1 = arith.subi %0, %c1_i32_0 : i32
    %c0_i32 = arith.constant 0 : i32
    %2 = arith.maxsi %1, %c0_i32 : i32
    %c3_i32 = arith.constant 3 : i32
    %3 = arith.minsi %2, %c3_i32 : i32
    %c0_i32_1 = arith.constant 0 : i32
    %c0_i32_2 = arith.constant 0 : i32
    %c0_i32_3 = arith.constant 0 : i32
    %c0_i32_4 = arith.constant 0 : i32
    return %arg0, %3, %c0_i32_1, %c0_i32_2, %c0_i32_3 : i32, i32, i32, i32, i32
  }
  func.func @transform_2(%arg0: i32, %arg1: i32) -> (i32, i32, i32, i32, i32) {
    %c2_i32 = arith.constant 2 : i32
    %0 = arith.addi %arg1, %c2_i32 : i32
    %c1_i32 = arith.constant 1 : i32
    %1 = arith.subi %0, %c1_i32 : i32
    %c0_i32 = arith.constant 0 : i32
    %2 = arith.maxsi %1, %c0_i32 : i32
    %c3_i32 = arith.constant 3 : i32
    %3 = arith.minsi %2, %c3_i32 : i32
    %c0_i32_0 = arith.constant 0 : i32
    %c0_i32_1 = arith.constant 0 : i32
    %c0_i32_2 = arith.constant 0 : i32
    %c0_i32_3 = arith.constant 0 : i32
    return %arg0, %3, %c0_i32_0, %c0_i32_1, %c0_i32_2 : i32, i32, i32, i32, i32
  }
  func.func @transform_3(%arg0: i32, %arg1: i32) -> (i32, i32) {
    %c0_i32 = arith.constant 0 : i32
    %c0_i32_0 = arith.constant 0 : i32
    %c0_i32_1 = arith.constant 0 : i32
    return %c0_i32, %c0_i32_0 : i32, i32
  }
  func.func @transform_4(%arg0: i32, %arg1: i32) -> (i32, i32) {
    %c0_i32 = arith.constant 0 : i32
    %c0_i32_0 = arith.constant 0 : i32
    %c0_i32_1 = arith.constant 0 : i32
    return %c0_i32, %c0_i32_0 : i32, i32
  }
  func.func @transform_5(%arg0: i32, %arg1: i32) -> (i32, i32) {
    %c0_i32 = arith.constant 0 : i32
    %c0_i32_0 = arith.constant 0 : i32
    %c0_i32_1 = arith.constant 0 : i32
    return %c0_i32, %c0_i32_0 : i32, i32
  }
  func.func @transform_6(%arg0: i32, %arg1: i32) -> (i32, i32, i32, i32) {
    %c0_i32 = arith.constant 0 : i32
    %c0_i32_0 = arith.constant 0 : i32
    %c0_i32_1 = arith.constant 0 : i32
    return %arg0, %arg1, %c0_i32, %c0_i32_0 : i32, i32, i32, i32
  }
  func.func @transform_7(%arg0: i32, %arg1: i32) -> (i32, i32, i32, i32) {
    %c0_i32 = arith.constant 0 : i32
    %c0_i32_0 = arith.constant 0 : i32
    %c0_i32_1 = arith.constant 0 : i32
    return %arg0, %arg1, %c0_i32, %c0_i32_0 : i32, i32, i32, i32
  }
}

module attributes {stable_mosaic.version = 11 : i64} {
  func.func @kernel(%arg0: i32, %arg1: i32, %arg2: memref<1x1x4x4x128xbf16, #tpu.memory_space<vmem>>, %arg3: memref<1x1x4x4x128xbf16, #tpu.memory_space<vmem>>, %arg4: memref<1x1x4x4x128xbf16, #tpu.memory_space<vmem>>, %arg5: memref<3456x128xbf16, #tpu.memory_space<vmem>>, %arg6: memref<1x128xf32, #tpu.memory_space<vmem>>, %arg7: memref<1x128xf32, #tpu.memory_space<vmem>>, %arg8: memref<1x1x16x128xbf16, #tpu.memory_space<vmem>>, %arg9: memref<1x1x2x128xf32, #tpu.memory_space<vmem>>) attributes {dimension_semantics = [#tpu.dimension_semantics<parallel>, #tpu.dimension_semantics<parallel>], iteration_bounds = array<i64: 2, 4>, scalar_prefetch = 0 : i64, scratch_operands = 0 : i64, tpu.core_type = #tpu.core_type<tc>, window_params = [{transform_indices = @transform_0, window_bounds = array<i64: 1, 1, 4, 4, 128>}, {transform_indices = @transform_1, window_bounds = array<i64: 1, 1, 4, 4, 128>}, {transform_indices = @transform_2, window_bounds = array<i64: 1, 1, 4, 4, 128>}, {pipeline_mode = #tpu.pipeline_mode<synchronous>, transform_indices = @transform_3, window_bounds = array<i64: 3456, 128>}, {pipeline_mode = #tpu.pipeline_mode<synchronous>, transform_indices = @transform_4, window_bounds = array<i64: 1, 128>}, {pipeline_mode = #tpu.pipeline_mode<synchronous>, transform_indices = @transform_5, window_bounds = array<i64: 1, 128>}, {transform_indices = @transform_6, window_bounds = array<i64: 1, 1, 16, 128>}, {transform_indices = @transform_7, window_bounds = array<i64: 1, 1, 2, 128>}]} {
    %c0 = arith.constant 0 : index
    %c0_0 = arith.constant 0 : index
    %c0_1 = arith.constant 0 : index
    %c0_2 = arith.constant 0 : index
    %c0_3 = arith.constant 0 : index
    %0 = vector.load %arg2[%c0, %c0_0, %c0_1, %c0_2, %c0_3] : memref<1x1x4x4x128xbf16, #tpu.memory_space<vmem>>, vector<1x1x4x4x128xbf16>
    %1 = vector.shape_cast %0 : vector<1x1x4x4x128xbf16> to vector<4x4x128xbf16>
    %2 = arith.extf %1 : vector<4x4x128xbf16> to vector<4x4x128xf32>
    %c0_4 = arith.constant 0 : index
    %c0_5 = arith.constant 0 : index
    %3 = vector.load %arg6[%c0_4, %c0_5] : memref<1x128xf32, #tpu.memory_space<vmem>>, vector<1x128xf32>
    %4 = vector.shape_cast %3 : vector<1x128xf32> to vector<1x1x128xf32>
    %5 = vector.broadcast %4 : vector<1x1x128xf32> to vector<4x4x128xf32>
    %6 = arith.mulf %2, %5 : vector<4x4x128xf32>
    %c0_6 = arith.constant 0 : index
    %c0_7 = arith.constant 0 : index
    %7 = vector.load %arg7[%c0_6, %c0_7] : memref<1x128xf32, #tpu.memory_space<vmem>>, vector<1x128xf32>
    %8 = vector.shape_cast %7 : vector<1x128xf32> to vector<1x1x128xf32>
    %9 = vector.broadcast %8 : vector<1x1x128xf32> to vector<4x4x128xf32>
    %10 = arith.addf %6, %9 : vector<4x4x128xf32>
    %cst = arith.constant 0.000000e+00 : f32
    %11 = vector.broadcast %cst : f32 to vector<4x4x128xf32>
    %12 = arith.maximumf %10, %11 : vector<4x4x128xf32>
    %13 = arith.truncf %12 : vector<4x4x128xf32> to vector<4x4x128xbf16>
    %c1_i32 = arith.constant 1 : i32
    %14 = arith.cmpi sge, %arg1, %c1_i32 : i32
    %cst_8 = arith.constant 0.000000e+00 : bf16
    %15 = vector.broadcast %cst_8 : bf16 to vector<4x4x128xbf16>
    %16 = arith.select %14, %13, %15 : vector<4x4x128xbf16>
    %cst_9 = arith.constant 0.000000e+00 : bf16
    %17 = vector.broadcast %cst_9 : bf16 to vector<1x4x128xbf16>
    %18 = tpu.concatenate %17, %16, %17 in 0 : vector<1x4x128xbf16>, vector<4x4x128xbf16>, vector<1x4x128xbf16> -> vector<6x4x128xbf16>
    %cst_10 = arith.constant 0.000000e+00 : bf16
    %19 = vector.broadcast %cst_10 : bf16 to vector<6x1x128xbf16>
    %20 = tpu.concatenate %19, %18, %19 in 1 : vector<6x1x128xbf16>, vector<6x4x128xbf16>, vector<6x1x128xbf16> -> vector<6x6x128xbf16>
    %c0_11 = arith.constant 0 : index
    %c0_12 = arith.constant 0 : index
    %c0_13 = arith.constant 0 : index
    %c0_14 = arith.constant 0 : index
    %c0_15 = arith.constant 0 : index
    %21 = vector.load %arg3[%c0_11, %c0_12, %c0_13, %c0_14, %c0_15] : memref<1x1x4x4x128xbf16, #tpu.memory_space<vmem>>, vector<1x1x4x4x128xbf16>
    %22 = vector.shape_cast %21 : vector<1x1x4x4x128xbf16> to vector<4x4x128xbf16>
    %23 = arith.extf %22 : vector<4x4x128xbf16> to vector<4x4x128xf32>
    %c0_16 = arith.constant 0 : index
    %c0_17 = arith.constant 0 : index
    %24 = vector.load %arg6[%c0_16, %c0_17] : memref<1x128xf32, #tpu.memory_space<vmem>>, vector<1x128xf32>
    %25 = vector.shape_cast %24 : vector<1x128xf32> to vector<1x1x128xf32>
    %26 = vector.broadcast %25 : vector<1x1x128xf32> to vector<4x4x128xf32>
    %27 = arith.mulf %23, %26 : vector<4x4x128xf32>
    %c0_18 = arith.constant 0 : index
    %c0_19 = arith.constant 0 : index
    %28 = vector.load %arg7[%c0_18, %c0_19] : memref<1x128xf32, #tpu.memory_space<vmem>>, vector<1x128xf32>
    %29 = vector.shape_cast %28 : vector<1x128xf32> to vector<1x1x128xf32>
    %30 = vector.broadcast %29 : vector<1x1x128xf32> to vector<4x4x128xf32>
    %31 = arith.addf %27, %30 : vector<4x4x128xf32>
    %cst_20 = arith.constant 0.000000e+00 : f32
    %32 = vector.broadcast %cst_20 : f32 to vector<4x4x128xf32>
    %33 = arith.maximumf %31, %32 : vector<4x4x128xf32>
    %34 = arith.truncf %33 : vector<4x4x128xf32> to vector<4x4x128xbf16>
    %cst_21 = arith.constant 0.000000e+00 : bf16
    %35 = vector.broadcast %cst_21 : bf16 to vector<1x4x128xbf16>
    %36 = tpu.concatenate %35, %34, %35 in 0 : vector<1x4x128xbf16>, vector<4x4x128xbf16>, vector<1x4x128xbf16> -> vector<6x4x128xbf16>
    %cst_22 = arith.constant 0.000000e+00 : bf16
    %37 = vector.broadcast %cst_22 : bf16 to vector<6x1x128xbf16>
    %38 = tpu.concatenate %37, %36, %37 in 1 : vector<6x1x128xbf16>, vector<6x4x128xbf16>, vector<6x1x128xbf16> -> vector<6x6x128xbf16>
    %c0_23 = arith.constant 0 : index
    %c0_24 = arith.constant 0 : index
    %c0_25 = arith.constant 0 : index
    %c0_26 = arith.constant 0 : index
    %c0_27 = arith.constant 0 : index
    %39 = vector.load %arg4[%c0_23, %c0_24, %c0_25, %c0_26, %c0_27] : memref<1x1x4x4x128xbf16, #tpu.memory_space<vmem>>, vector<1x1x4x4x128xbf16>
    %40 = vector.shape_cast %39 : vector<1x1x4x4x128xbf16> to vector<4x4x128xbf16>
    %41 = arith.extf %40 : vector<4x4x128xbf16> to vector<4x4x128xf32>
    %c0_28 = arith.constant 0 : index
    %c0_29 = arith.constant 0 : index
    %42 = vector.load %arg6[%c0_28, %c0_29] : memref<1x128xf32, #tpu.memory_space<vmem>>, vector<1x128xf32>
    %43 = vector.shape_cast %42 : vector<1x128xf32> to vector<1x1x128xf32>
    %44 = vector.broadcast %43 : vector<1x1x128xf32> to vector<4x4x128xf32>
    %45 = arith.mulf %41, %44 : vector<4x4x128xf32>
    %c0_30 = arith.constant 0 : index
    %c0_31 = arith.constant 0 : index
    %46 = vector.load %arg7[%c0_30, %c0_31] : memref<1x128xf32, #tpu.memory_space<vmem>>, vector<1x128xf32>
    %47 = vector.shape_cast %46 : vector<1x128xf32> to vector<1x1x128xf32>
    %48 = vector.broadcast %47 : vector<1x1x128xf32> to vector<4x4x128xf32>
    %49 = arith.addf %45, %48 : vector<4x4x128xf32>
    %cst_32 = arith.constant 0.000000e+00 : f32
    %50 = vector.broadcast %cst_32 : f32 to vector<4x4x128xf32>
    %51 = arith.maximumf %49, %50 : vector<4x4x128xf32>
    %52 = arith.truncf %51 : vector<4x4x128xf32> to vector<4x4x128xbf16>
    %c2_i32 = arith.constant 2 : i32
    %53 = arith.cmpi sle, %arg1, %c2_i32 : i32
    %cst_33 = arith.constant 0.000000e+00 : bf16
    %54 = vector.broadcast %cst_33 : bf16 to vector<4x4x128xbf16>
    %55 = arith.select %53, %52, %54 : vector<4x4x128xbf16>
    %cst_34 = arith.constant 0.000000e+00 : bf16
    %56 = vector.broadcast %cst_34 : bf16 to vector<1x4x128xbf16>
    %57 = tpu.concatenate %56, %55, %56 in 0 : vector<1x4x128xbf16>, vector<4x4x128xbf16>, vector<1x4x128xbf16> -> vector<6x4x128xbf16>
    %cst_35 = arith.constant 0.000000e+00 : bf16
    %58 = vector.broadcast %cst_35 : bf16 to vector<6x1x128xbf16>
    %59 = tpu.concatenate %58, %57, %58 in 1 : vector<6x1x128xbf16>, vector<6x4x128xbf16>, vector<6x1x128xbf16> -> vector<6x6x128xbf16>
    %60 = vector.extract_strided_slice %20 {offsets = [0, 0, 0], sizes = [4, 4, 128], strides = [1, 1, 1]} : vector<6x6x128xbf16> to vector<4x4x128xbf16>
    %61 = vector.shape_cast %60 : vector<4x4x128xbf16> to vector<16x128xbf16>
    %62 = vector.extract_strided_slice %20 {offsets = [0, 1, 0], sizes = [4, 4, 128], strides = [1, 1, 1]} : vector<6x6x128xbf16> to vector<4x4x128xbf16>
    %63 = vector.shape_cast %62 : vector<4x4x128xbf16> to vector<16x128xbf16>
    %64 = vector.extract_strided_slice %20 {offsets = [0, 2, 0], sizes = [4, 4, 128], strides = [1, 1, 1]} : vector<6x6x128xbf16> to vector<4x4x128xbf16>
    %65 = vector.shape_cast %64 : vector<4x4x128xbf16> to vector<16x128xbf16>
    %66 = vector.extract_strided_slice %20 {offsets = [1, 0, 0], sizes = [4, 4, 128], strides = [1, 1, 1]} : vector<6x6x128xbf16> to vector<4x4x128xbf16>
    %67 = vector.shape_cast %66 : vector<4x4x128xbf16> to vector<16x128xbf16>
    %68 = vector.extract_strided_slice %20 {offsets = [1, 1, 0], sizes = [4, 4, 128], strides = [1, 1, 1]} : vector<6x6x128xbf16> to vector<4x4x128xbf16>
    %69 = vector.shape_cast %68 : vector<4x4x128xbf16> to vector<16x128xbf16>
    %70 = vector.extract_strided_slice %20 {offsets = [1, 2, 0], sizes = [4, 4, 128], strides = [1, 1, 1]} : vector<6x6x128xbf16> to vector<4x4x128xbf16>
    %71 = vector.shape_cast %70 : vector<4x4x128xbf16> to vector<16x128xbf16>
    %72 = vector.extract_strided_slice %20 {offsets = [2, 0, 0], sizes = [4, 4, 128], strides = [1, 1, 1]} : vector<6x6x128xbf16> to vector<4x4x128xbf16>
    %73 = vector.shape_cast %72 : vector<4x4x128xbf16> to vector<16x128xbf16>
    %74 = vector.extract_strided_slice %20 {offsets = [2, 1, 0], sizes = [4, 4, 128], strides = [1, 1, 1]} : vector<6x6x128xbf16> to vector<4x4x128xbf16>
    %75 = vector.shape_cast %74 : vector<4x4x128xbf16> to vector<16x128xbf16>
    %76 = vector.extract_strided_slice %20 {offsets = [2, 2, 0], sizes = [4, 4, 128], strides = [1, 1, 1]} : vector<6x6x128xbf16> to vector<4x4x128xbf16>
    %77 = vector.shape_cast %76 : vector<4x4x128xbf16> to vector<16x128xbf16>
    %78 = vector.extract_strided_slice %38 {offsets = [0, 0, 0], sizes = [4, 4, 128], strides = [1, 1, 1]} : vector<6x6x128xbf16> to vector<4x4x128xbf16>
    %79 = vector.shape_cast %78 : vector<4x4x128xbf16> to vector<16x128xbf16>
    %80 = vector.extract_strided_slice %38 {offsets = [0, 1, 0], sizes = [4, 4, 128], strides = [1, 1, 1]} : vector<6x6x128xbf16> to vector<4x4x128xbf16>
    %81 = vector.shape_cast %80 : vector<4x4x128xbf16> to vector<16x128xbf16>
    %82 = vector.extract_strided_slice %38 {offsets = [0, 2, 0], sizes = [4, 4, 128], strides = [1, 1, 1]} : vector<6x6x128xbf16> to vector<4x4x128xbf16>
    %83 = vector.shape_cast %82 : vector<4x4x128xbf16> to vector<16x128xbf16>
    %84 = vector.extract_strided_slice %38 {offsets = [1, 0, 0], sizes = [4, 4, 128], strides = [1, 1, 1]} : vector<6x6x128xbf16> to vector<4x4x128xbf16>
    %85 = vector.shape_cast %84 : vector<4x4x128xbf16> to vector<16x128xbf16>
    %86 = vector.extract_strided_slice %38 {offsets = [1, 1, 0], sizes = [4, 4, 128], strides = [1, 1, 1]} : vector<6x6x128xbf16> to vector<4x4x128xbf16>
    %87 = vector.shape_cast %86 : vector<4x4x128xbf16> to vector<16x128xbf16>
    %88 = vector.extract_strided_slice %38 {offsets = [1, 2, 0], sizes = [4, 4, 128], strides = [1, 1, 1]} : vector<6x6x128xbf16> to vector<4x4x128xbf16>
    %89 = vector.shape_cast %88 : vector<4x4x128xbf16> to vector<16x128xbf16>
    %90 = vector.extract_strided_slice %38 {offsets = [2, 0, 0], sizes = [4, 4, 128], strides = [1, 1, 1]} : vector<6x6x128xbf16> to vector<4x4x128xbf16>
    %91 = vector.shape_cast %90 : vector<4x4x128xbf16> to vector<16x128xbf16>
    %92 = vector.extract_strided_slice %38 {offsets = [2, 1, 0], sizes = [4, 4, 128], strides = [1, 1, 1]} : vector<6x6x128xbf16> to vector<4x4x128xbf16>
    %93 = vector.shape_cast %92 : vector<4x4x128xbf16> to vector<16x128xbf16>
    %94 = vector.extract_strided_slice %38 {offsets = [2, 2, 0], sizes = [4, 4, 128], strides = [1, 1, 1]} : vector<6x6x128xbf16> to vector<4x4x128xbf16>
    %95 = vector.shape_cast %94 : vector<4x4x128xbf16> to vector<16x128xbf16>
    %96 = vector.extract_strided_slice %59 {offsets = [0, 0, 0], sizes = [4, 4, 128], strides = [1, 1, 1]} : vector<6x6x128xbf16> to vector<4x4x128xbf16>
    %97 = vector.shape_cast %96 : vector<4x4x128xbf16> to vector<16x128xbf16>
    %98 = vector.extract_strided_slice %59 {offsets = [0, 1, 0], sizes = [4, 4, 128], strides = [1, 1, 1]} : vector<6x6x128xbf16> to vector<4x4x128xbf16>
    %99 = vector.shape_cast %98 : vector<4x4x128xbf16> to vector<16x128xbf16>
    %100 = vector.extract_strided_slice %59 {offsets = [0, 2, 0], sizes = [4, 4, 128], strides = [1, 1, 1]} : vector<6x6x128xbf16> to vector<4x4x128xbf16>
    %101 = vector.shape_cast %100 : vector<4x4x128xbf16> to vector<16x128xbf16>
    %102 = vector.extract_strided_slice %59 {offsets = [1, 0, 0], sizes = [4, 4, 128], strides = [1, 1, 1]} : vector<6x6x128xbf16> to vector<4x4x128xbf16>
    %103 = vector.shape_cast %102 : vector<4x4x128xbf16> to vector<16x128xbf16>
    %104 = vector.extract_strided_slice %59 {offsets = [1, 1, 0], sizes = [4, 4, 128], strides = [1, 1, 1]} : vector<6x6x128xbf16> to vector<4x4x128xbf16>
    %105 = vector.shape_cast %104 : vector<4x4x128xbf16> to vector<16x128xbf16>
    %106 = vector.extract_strided_slice %59 {offsets = [1, 2, 0], sizes = [4, 4, 128], strides = [1, 1, 1]} : vector<6x6x128xbf16> to vector<4x4x128xbf16>
    %107 = vector.shape_cast %106 : vector<4x4x128xbf16> to vector<16x128xbf16>
    %108 = vector.extract_strided_slice %59 {offsets = [2, 0, 0], sizes = [4, 4, 128], strides = [1, 1, 1]} : vector<6x6x128xbf16> to vector<4x4x128xbf16>
    %109 = vector.shape_cast %108 : vector<4x4x128xbf16> to vector<16x128xbf16>
    %110 = vector.extract_strided_slice %59 {offsets = [2, 1, 0], sizes = [4, 4, 128], strides = [1, 1, 1]} : vector<6x6x128xbf16> to vector<4x4x128xbf16>
    %111 = vector.shape_cast %110 : vector<4x4x128xbf16> to vector<16x128xbf16>
    %112 = vector.extract_strided_slice %59 {offsets = [2, 2, 0], sizes = [4, 4, 128], strides = [1, 1, 1]} : vector<6x6x128xbf16> to vector<4x4x128xbf16>
    %113 = vector.shape_cast %112 : vector<4x4x128xbf16> to vector<16x128xbf16>
    %114 = tpu.concatenate %61, %63, %65, %67, %69, %71, %73, %75, %77, %79, %81, %83, %85, %87, %89, %91 in 1 : vector<16x128xbf16>, vector<16x128xbf16>, vector<16x128xbf16>, vector<16x128xbf16>, vector<16x128xbf16>, vector<16x128xbf16>, vector<16x128xbf16>, vector<16x128xbf16>, vector<16x128xbf16>, vector<16x128xbf16>, vector<16x128xbf16>, vector<16x128xbf16>, vector<16x128xbf16>, vector<16x128xbf16>, vector<16x128xbf16>, vector<16x128xbf16> -> vector<16x2048xbf16>
    %115 = tpu.concatenate %93, %95, %97, %99, %101, %103, %105, %107, %109, %111, %113 in 1 : vector<16x128xbf16>, vector<16x128xbf16>, vector<16x128xbf16>, vector<16x128xbf16>, vector<16x128xbf16>, vector<16x128xbf16>, vector<16x128xbf16>, vector<16x128xbf16>, vector<16x128xbf16>, vector<16x128xbf16>, vector<16x128xbf16> -> vector<16x1408xbf16>
    %116 = tpu.concatenate %114, %115 in 1 : vector<16x2048xbf16>, vector<16x1408xbf16> -> vector<16x3456xbf16>
    %c0_36 = arith.constant 0 : index
    %c0_37 = arith.constant 0 : index
    %117 = vector.load %arg5[%c0_36, %c0_37] : memref<3456x128xbf16, #tpu.memory_space<vmem>>, vector<3456x128xbf16>
    %cst_38 = arith.constant dense<0.000000e+00> : vector<16x128xf32>
    %118 = tpu.matmul %116, %117, %cst_38 {dimension_numbers = #tpu.dot_dimension_numbers<[1], [0], [0], [1], [0, 0, 1, 1], [], []>} : vector<16x3456xbf16>, vector<3456x128xbf16>, vector<16x128xf32> -> vector<16x128xf32>
    %119 = arith.truncf %118 : vector<16x128xf32> to vector<16x128xbf16>
    %c0_39 = arith.constant 0 : index
    %c0_40 = arith.constant 0 : index
    %c0_41 = arith.constant 0 : index
    %c0_42 = arith.constant 0 : index
    %120 = vector.load %arg8[%c0_39, %c0_40, %c0_41, %c0_42] : memref<1x1x16x128xbf16, #tpu.memory_space<vmem>>, vector<1x1x16x128xbf16>
    %121 = vector.shape_cast %120 : vector<1x1x16x128xbf16> to vector<16x128xbf16>
    %122 = vector.shape_cast %119 : vector<16x128xbf16> to vector<1x1x16x128xbf16>
    tpu.vector_store %arg8[%c0_39, %c0_40, %c0_41, %c0_42], %122 {strides = array<i32>} : memref<1x1x16x128xbf16, #tpu.memory_space<vmem>>, vector<1x1x16x128xbf16>,
    %cst_43 = arith.constant dense<0.000000e+00> : vector<128xf32>
    %123 = vector.multi_reduction <add>, %118, %cst_43 [0] : vector<16x128xf32> to vector<128xf32>
    %124 = vector.shape_cast %123 : vector<128xf32> to vector<1x128xf32>
    %125 = arith.mulf %118, %118 : vector<16x128xf32>
    %cst_44 = arith.constant dense<0.000000e+00> : vector<128xf32>
    %126 = vector.multi_reduction <add>, %125, %cst_44 [0] : vector<16x128xf32> to vector<128xf32>
    %127 = vector.shape_cast %126 : vector<128xf32> to vector<1x128xf32>
    %128 = tpu.concatenate %124, %127 in 0 : vector<1x128xf32>, vector<1x128xf32> -> vector<2x128xf32>
    %c0_45 = arith.constant 0 : index
    %c0_46 = arith.constant 0 : index
    %c0_47 = arith.constant 0 : index
    %c0_48 = arith.constant 0 : index
    %129 = vector.load %arg9[%c0_45, %c0_46, %c0_47, %c0_48] : memref<1x1x2x128xf32, #tpu.memory_space<vmem>>, vector<1x1x2x128xf32>
    %130 = vector.shape_cast %129 : vector<1x1x2x128xf32> to vector<2x128xf32>
    %131 = vector.shape_cast %128 : vector<2x128xf32> to vector<1x1x2x128xf32>
    tpu.vector_store %arg9[%c0_45, %c0_46, %c0_47, %c0_48], %131 {strides = array<i32>} : memref<1x1x2x128xf32, #tpu.memory_space<vmem>>, vector<1x1x2x128xf32>,
    return
  }
  func.func @transform_0(%arg0: i32, %arg1: i32) -> (i32, i32, i32, i32, i32) {
    %c0_i32 = arith.constant 0 : i32
    %0 = arith.addi %arg1, %c0_i32 : i32
    %c1_i32 = arith.constant 1 : i32
    %1 = arith.subi %0, %c1_i32 : i32
    %c0_i32_0 = arith.constant 0 : i32
    %2 = arith.maxsi %1, %c0_i32_0 : i32
    %c3_i32 = arith.constant 3 : i32
    %3 = arith.minsi %2, %c3_i32 : i32
    %c0_i32_1 = arith.constant 0 : i32
    %c0_i32_2 = arith.constant 0 : i32
    %c0_i32_3 = arith.constant 0 : i32
    %c0_i32_4 = arith.constant 0 : i32
    return %arg0, %3, %c0_i32_1, %c0_i32_2, %c0_i32_3 : i32, i32, i32, i32, i32
  }
  func.func @transform_1(%arg0: i32, %arg1: i32) -> (i32, i32, i32, i32, i32) {
    %c1_i32 = arith.constant 1 : i32
    %0 = arith.addi %arg1, %c1_i32 : i32
    %c1_i32_0 = arith.constant 1 : i32
    %1 = arith.subi %0, %c1_i32_0 : i32
    %c0_i32 = arith.constant 0 : i32
    %2 = arith.maxsi %1, %c0_i32 : i32
    %c3_i32 = arith.constant 3 : i32
    %3 = arith.minsi %2, %c3_i32 : i32
    %c0_i32_1 = arith.constant 0 : i32
    %c0_i32_2 = arith.constant 0 : i32
    %c0_i32_3 = arith.constant 0 : i32
    %c0_i32_4 = arith.constant 0 : i32
    return %arg0, %3, %c0_i32_1, %c0_i32_2, %c0_i32_3 : i32, i32, i32, i32, i32
  }
  func.func @transform_2(%arg0: i32, %arg1: i32) -> (i32, i32, i32, i32, i32) {
    %c2_i32 = arith.constant 2 : i32
    %0 = arith.addi %arg1, %c2_i32 : i32
    %c1_i32 = arith.constant 1 : i32
    %1 = arith.subi %0, %c1_i32 : i32
    %c0_i32 = arith.constant 0 : i32
    %2 = arith.maxsi %1, %c0_i32 : i32
    %c3_i32 = arith.constant 3 : i32
    %3 = arith.minsi %2, %c3_i32 : i32
    %c0_i32_0 = arith.constant 0 : i32
    %c0_i32_1 = arith.constant 0 : i32
    %c0_i32_2 = arith.constant 0 : i32
    %c0_i32_3 = arith.constant 0 : i32
    return %arg0, %3, %c0_i32_0, %c0_i32_1, %c0_i32_2 : i32, i32, i32, i32, i32
  }
  func.func @transform_3(%arg0: i32, %arg1: i32) -> (i32, i32) {
    %c0_i32 = arith.constant 0 : i32
    %c0_i32_0 = arith.constant 0 : i32
    %c0_i32_1 = arith.constant 0 : i32
    return %c0_i32, %c0_i32_0 : i32, i32
  }
  func.func @transform_4(%arg0: i32, %arg1: i32) -> (i32, i32) {
    %c0_i32 = arith.constant 0 : i32
    %c0_i32_0 = arith.constant 0 : i32
    %c0_i32_1 = arith.constant 0 : i32
    return %c0_i32, %c0_i32_0 : i32, i32
  }
  func.func @transform_5(%arg0: i32, %arg1: i32) -> (i32, i32) {
    %c0_i32 = arith.constant 0 : i32
    %c0_i32_0 = arith.constant 0 : i32
    %c0_i32_1 = arith.constant 0 : i32
    return %c0_i32, %c0_i32_0 : i32, i32
  }
  func.func @transform_6(%arg0: i32, %arg1: i32) -> (i32, i32, i32, i32) {
    %c0_i32 = arith.constant 0 : i32
    %c0_i32_0 = arith.constant 0 : i32
    %c0_i32_1 = arith.constant 0 : i32
    return %arg0, %arg1, %c0_i32, %c0_i32_0 : i32, i32, i32, i32
  }
  func.func @transform_7(%arg0: i32, %arg1: i32) -> (i32, i32, i32, i32) {
    %c0_i32 = arith.constant 0 : i32
    %c0_i32_0 = arith.constant 0 : i32
    %c0_i32_1 = arith.constant 0 : i32
    return %arg0, %arg1, %c0_i32, %c0_i32_0 : i32, i32, i32, i32
  }
}

module attributes {stable_mosaic.version = 11 : i64} {
  func.func @_bn_relu_kernel(%arg0: i32, %arg1: i32, %arg2: memref<1x1x16x128xbf16, #tpu.memory_space<vmem>>, %arg3: memref<1x128xf32, #tpu.memory_space<vmem>>, %arg4: memref<1x128xf32, #tpu.memory_space<vmem>>, %arg5: memref<1x1x16x128xf32, #tpu.memory_space<vmem>>) attributes {dimension_semantics = [#tpu.dimension_semantics<parallel>, #tpu.dimension_semantics<parallel>], iteration_bounds = array<i64: 2, 4>, scalar_prefetch = 0 : i64, scratch_operands = 0 : i64, tpu.core_type = #tpu.core_type<tc>, window_params = [{transform_indices = @transform_0, window_bounds = array<i64: 1, 1, 16, 128>}, {pipeline_mode = #tpu.pipeline_mode<synchronous>, transform_indices = @transform_1, window_bounds = array<i64: 1, 128>}, {pipeline_mode = #tpu.pipeline_mode<synchronous>, transform_indices = @transform_2, window_bounds = array<i64: 1, 128>}, {transform_indices = @transform_3, window_bounds = array<i64: 1, 1, 16, 128>}]} {
    %c0 = arith.constant 0 : index
    %c0_0 = arith.constant 0 : index
    %c0_1 = arith.constant 0 : index
    %c0_2 = arith.constant 0 : index
    %0 = vector.load %arg2[%c0, %c0_0, %c0_1, %c0_2] : memref<1x1x16x128xbf16, #tpu.memory_space<vmem>>, vector<1x1x16x128xbf16>
    %1 = vector.shape_cast %0 : vector<1x1x16x128xbf16> to vector<16x128xbf16>
    %2 = arith.extf %1 : vector<16x128xbf16> to vector<16x128xf32>
    %c0_3 = arith.constant 0 : index
    %c0_4 = arith.constant 0 : index
    %3 = vector.load %arg3[%c0_3, %c0_4] : memref<1x128xf32, #tpu.memory_space<vmem>>, vector<1x128xf32>
    %4 = vector.broadcast %3 : vector<1x128xf32> to vector<16x128xf32>
    %5 = arith.mulf %2, %4 : vector<16x128xf32>
    %c0_5 = arith.constant 0 : index
    %c0_6 = arith.constant 0 : index
    %6 = vector.load %arg4[%c0_5, %c0_6] : memref<1x128xf32, #tpu.memory_space<vmem>>, vector<1x128xf32>
    %7 = vector.broadcast %6 : vector<1x128xf32> to vector<16x128xf32>
    %8 = arith.addf %5, %7 : vector<16x128xf32>
    %cst = arith.constant 0.000000e+00 : f32
    %9 = vector.broadcast %cst : f32 to vector<16x128xf32>
    %10 = arith.maximumf %8, %9 : vector<16x128xf32>
    %c0_7 = arith.constant 0 : index
    %c0_8 = arith.constant 0 : index
    %c0_9 = arith.constant 0 : index
    %c0_10 = arith.constant 0 : index
    %11 = vector.load %arg5[%c0_7, %c0_8, %c0_9, %c0_10] : memref<1x1x16x128xf32, #tpu.memory_space<vmem>>, vector<1x1x16x128xf32>
    %12 = vector.shape_cast %11 : vector<1x1x16x128xf32> to vector<16x128xf32>
    %13 = vector.shape_cast %10 : vector<16x128xf32> to vector<1x1x16x128xf32>
    tpu.vector_store %arg5[%c0_7, %c0_8, %c0_9, %c0_10], %13 {strides = array<i32>} : memref<1x1x16x128xf32, #tpu.memory_space<vmem>>, vector<1x1x16x128xf32>,
    return
  }
  func.func @transform_0(%arg0: i32, %arg1: i32) -> (i32, i32, i32, i32) {
    %c0_i32 = arith.constant 0 : i32
    %c0_i32_0 = arith.constant 0 : i32
    %c0_i32_1 = arith.constant 0 : i32
    return %arg0, %arg1, %c0_i32, %c0_i32_0 : i32, i32, i32, i32
  }
  func.func @transform_1(%arg0: i32, %arg1: i32) -> (i32, i32) {
    %c0_i32 = arith.constant 0 : i32
    %c0_i32_0 = arith.constant 0 : i32
    %c0_i32_1 = arith.constant 0 : i32
    return %c0_i32, %c0_i32_0 : i32, i32
  }
  func.func @transform_2(%arg0: i32, %arg1: i32) -> (i32, i32) {
    %c0_i32 = arith.constant 0 : i32
    %c0_i32_0 = arith.constant 0 : i32
    %c0_i32_1 = arith.constant 0 : i32
    return %c0_i32, %c0_i32_0 : i32, i32
  }
  func.func @transform_3(%arg0: i32, %arg1: i32) -> (i32, i32, i32, i32) {
    %c0_i32 = arith.constant 0 : i32
    %c0_i32_0 = arith.constant 0 : i32
    %c0_i32_1 = arith.constant 0 : i32
    return %arg0, %arg1, %c0_i32, %c0_i32_0 : i32, i32, i32, i32
  }
}

</mosaic_0001>

<bundles_post_ra>
// kernel: down_forward.4
= control target key start
LH: loop header
LB: loop body
LE: loop exit
PB: predicated region body
PF: predicated region fallthrough
CT: control target
= control target key end

     0   :  { %s810_s6 = smov 0   ;;  %s961_s0 = inlined_call_operand.vmem [shape: bf16[8,2,4,2,4,2,4], index: 0, kind: input, shape index: {}]   ;;  %s962_s1 = inlined_call_operand.vmem [shape: bf16[8,4,4,4], index: 1, kind: output, shape index: {}]  }
   0x1 LB: > { %s773_s7 = sadd.s32 4294967295, %s798_s6   ;;  %p777_p0 = scmp.ge.s32.totalorder %s798_s6, 1  ;;  %s798_s6 = sphi %s810_s6, %s11_s6  }
   0x2   : > { %p86_p1 = scmp.lt.s32.totalorder %s798_s6, 9 }
   0x4   : > { %p87_p2 = pnand %p777_p0, %p86_p1 }
   0x5   : > { %p105_p3 = scmp.lt.s32.totalorder (!%p87_p2), %s773_s7, 7 }
   0x6   : > { %90 = sbr.rel (%p87_p2) target bundleno = 132 (0x84), region = 24 }
   0xb   : > { %s964_s7 = smov (!%p105_p3, %s773_s7), 7  ;;  %vm386_vm0 = vcmask 25600   ;;  %vm547_vm1 = vcmask 1041408   ;;  %vm664_vm2 = vcmask 1041409   ;;  %vm667_vm3 = vcmask 1042434  }
   0xc   : > { %s778_s8 = sshll.u32 %s964_s7, 6  ;;  %vm670_vm4 = vcmask 1043459   ;;  %s783_s12 = sshll.u32 %s964_s7, 3 }
   0xd   : > { %s824_s11 = scalar_lea.vmem %s961_s0, %s778_s8  ;;  %s912_s15 = scalar_lea.vmem %s962_s1, %s783_s12 }
   0xe   : > { %v115_v0 = vld [vmem:[%s824_s11 + $0x1] sm:$0x1]  ;;  %v119_v1 = vld [vmem:[%s824_s11 + $0x5] sm:$0x1]  ;;  %v116_v7 = vld [vmem:[%s824_s11 + $0x2] sm:$0x1] }
   0xf   : > { %v147_v2 = vld [vmem:[%s824_s11 + $0x21] sm:$0x1]  ;;  %v151_v3 = vld [vmem:[%s824_s11 + $0x25] sm:$0x1]  ;;  %v179_v4 = vunpack.c.l.bf16 %v115_v0  ;;  %v183_v5 = vunpack.c.l.bf16 %v119_v1  ;;  %v120_v8 = vld [vmem:[%s824_s11 + $0x6] sm:$0x1]  ;;  %v180_v12 = vunpack.c.l.bf16 %v116_v7 }
  0x10   : > { %v211_v6 = vunpack.c.l.bf16 %v147_v2  ;;  %v215_v9 = vunpack.c.l.bf16 %v151_v3  ;;  %v148_v10 = vld [vmem:[%s824_s11 + $0x22] sm:$0x1]  ;;  %v152_v11 = vld [vmem:[%s824_s11 + $0x26] sm:$0x1]  ;;  %v184_v13 = vunpack.c.l.bf16 %v120_v8  ;;  %v114_v14 = vld [vmem:[%s824_s11] sm:$0x1] }
  0x11   : > { %v212_v16 = vunpack.c.l.bf16 %v148_v10  ;;  %v216_v17 = vunpack.c.l.bf16 %v152_v11  ;;  %v118_v18 = vld [vmem:[%s824_s11 + $0x4] sm:$0x1]  ;;  %v146_v19 = vld [vmem:[%s824_s11 + $0x20] sm:$0x1]  ;;  %v178_v21 = vunpack.c.l.bf16 %v114_v14  ;;  %v117_v26 = vld [vmem:[%s824_s11 + $0x3] sm:$0x1] }
  0x12   : > { %v243_v15 = vmax.f32 %v179_v4, %v211_v6  ;;  %v150_v20 = vld [vmem:[%s824_s11 + $0x24] sm:$0x1]  ;;  %v247_v22 = vmax.f32 %v183_v5, %v215_v9  ;;  %v182_v23 = vunpack.c.l.bf16 %v118_v18  ;;  %v210_v24 = vunpack.c.l.bf16 %v146_v19  ;;  %v121_v27 = vld [vmem:[%s824_s11 + $0x7] sm:$0x1]  ;;  %v149_v28 = vld [vmem:[%s824_s11 + $0x23] sm:$0x1] }
  0x13   : > { %v214_v25 = vunpack.c.l.bf16 %v150_v20  ;;  %v244_v29 = vmax.f32 %v180_v12, %v212_v16  ;;  %v248_v30 = vmax.f32 %v184_v13, %v216_v17  ;;  %v153_v31 = vld [vmem:[%s824_s11 + $0x27] sm:$0x1]  ;;  %v181_v32 = vunpack.c.l.bf16 %v117_v26  ;;  %v123_v34 = vld [vmem:[%s824_s11 + $0x9] sm:$0x1]  ;;  %v127_v35 = vld [vmem:[%s824_s11 + $0xd] sm:$0x1] }
  0x14   : > { %v185_v33 = vunpack.c.l.bf16 %v121_v27  ;;  %v339_v36 = vmax.f32 %v243_v15, %v247_v22  ;;  %v242_v37 = vmax.f32 %v178_v21, %v210_v24  ;;  %v213_v39 = vunpack.c.l.bf16 %v149_v28  ;;  %v155_v40 = vld [vmem:[%s824_s11 + $0x29] sm:$0x1]  ;;  %v159_v41 = vld [vmem:[%s824_s11 + $0x2d] sm:$0x1]  ;;  %v124_v42 = vld [vmem:[%s824_s11 + $0xa] sm:$0x1] }
  0x15   : > { %v246_v38 = vmax.f32 %v182_v23, %v214_v25  ;;  %v340_v43 = vmax.f32 %v244_v29, %v248_v30  ;;  %v217_v44 = vunpack.c.l.bf16 %v153_v31  ;;  %v187_v45 = vunpack.c.l.bf16 %v123_v34  ;;  %v128_v47 = vld [vmem:[%s824_s11 + $0xe] sm:$0x1]  ;;  %v156_v52 = vld [vmem:[%s824_s11 + $0x2a] sm:$0x1]  ;;  %v122_v58 = vld [vmem:[%s824_s11 + $0x8] sm:$0x1] }
  0x16   : > { %v191_v46 = vunpack.c.l.bf16 %v127_v35  ;;  %v355_v48 = vpack.c.bf16 %v339_v36, %v339_v36  ;;  %v245_v50 = vmax.f32 %v181_v32, %v213_v39  ;;  %v219_v51 = vunpack.c.l.bf16 %v155_v40  ;;  %v160_v56 = vld [vmem:[%s824_s11 + $0x2e] sm:$0x1]  ;;  %v126_v11 = vld [vmem:[%s824_s11 + $0xc] sm:$0x1]  ;;  %v154_v12 = vld [vmem:[%s824_s11 + $0x28] sm:$0x1] }
  0x17   : > { %v338_v49 = vmax.f32 %v242_v37, %v246_v38  ;;  %v356_v53 = vpack.c.bf16 %v340_v43, %v340_v43  ;;  %v249_v54 = vmax.f32 %v185_v33, %v217_v44  ;;  %v223_v55 = vunpack.c.l.bf16 %v159_v41  ;;  %v158_v21 = vld [vmem:[%s824_s11 + $0x2c] sm:$0x1]  ;;  %v125_v34 = vld [vmem:[%s824_s11 + $0xb] sm:$0x1] }
  0x18   : > { %v188_v57 = vunpack.c.l.bf16 %v124_v42  ;;  %v371_v59 = vunpack.c.l.bf16 %v355_v48  ;;  %v251_v61 = vmax.f32 %v187_v45, %v219_v51  ;;  %v192_v62 = vunpack.c.l.bf16 %v128_v47 }
  0x19   : > { %v354_v60 = vpack.c.bf16 %v338_v49, %v338_v49  ;;  %v372_v63 = vunpack.c.l.bf16 %v356_v53  ;;  %v341_v0 = vmax.f32 %v245_v50, %v249_v54  ;;  %v255_v1 = vmax.f32 %v191_v46, %v223_v55  ;;  %v129_v46 = vld [vmem:[%s824_s11 + $0xf] sm:$0x1] }
  0x1a   : > { %v220_v2 = vunpack.c.l.bf16 %v156_v52  ;;  %v394_v3 = vsel %vm386_vm0, %v371_v59, -inf  ;;  %v224_v5 = vunpack.c.l.bf16 %v160_v56  ;;  %v186_v6 = vunpack.c.l.bf16 %v122_v58  ;;  %v157_v56 = vld [vmem:[%s824_s11 + $0x2b] sm:$0x1] }
  0x1b   : > { %v370_v4 = vunpack.c.l.bf16 %v354_v60  ;;  %v395_v7 = vrot.slane %v394_v3, 4  ;;  %v401_v8 = vsel %vm386_vm0, %v372_v63, -inf  ;;  %v357_v9 = vpack.c.bf16 %v341_v0, %v341_v0 }
  0x1c   : > { %v343_v10 = vmax.f32 %v251_v61, %v255_v1  ;;  %v402_v13 = vrot.slane %v401_v8, 4  ;;  %v252_v15 = vmax.f32 %v188_v57, %v220_v2  ;;  %v256_v16 = vmax.f32 %v192_v62, %v224_v5  ;;  %v161_v1 = vld [vmem:[%s824_s11 + $0x2f] sm:$0x1] }
  0x1d   : > { %v387_v14 = vsel %vm386_vm0, %v370_v4, -inf  ;;  %v396_v17 = vmax.f32 %v394_v3, %v395_v7  ;;  %v373_v19 = vunpack.c.l.bf16 %v357_v9  ;;  %v190_v24 = vunpack.c.l.bf16 %v126_v11 }
  0x1e   : > { %v388_v18 = vrot.slane %v387_v14, 4  ;;  %v359_v20 = vpack.c.bf16 %v343_v10, %v343_v10  ;;  %v403_v22 = vmax.f32 %v401_v8, %v402_v13  ;;  %v344_v23 = vmax.f32 %v252_v15, %v256_v16 }
  0x1f   : > { %v218_v25 = vunpack.c.l.bf16 %v154_v12  ;;  %v397_v26 = vrot.slane %v396_v17, 2  ;;  %v408_v28 = vsel %vm386_vm0, %v373_v19, -inf  ;;  %v222_v33 = vunpack.c.l.bf16 %v158_v21  ;;  %v135_v19 = vld [vmem:[%s824_s11 + $0x15] sm:$0x1] }
  0x20   : > { %v389_v27 = vmax.f32 %v387_v14, %v388_v18  ;;  %v375_v29 = vunpack.c.l.bf16 %v359_v20  ;;  %v404_v30 = vrot.slane %v403_v22, 2  ;;  %v409_v31 = vrot.slane %v408_v28, 4  ;;  %v131_v18 = vld [vmem:[%s824_s11 + $0x11] sm:$0x1] }
  0x21   : > { %v360_v32 = vpack.c.bf16 %v344_v23, %v344_v23  ;;  %v398_v35 = vmax.f32 %v396_v17, %v397_v26  ;;  %v250_v38 = vmax.f32 %v186_v6, %v218_v25  ;;  %v254_v45 = vmax.f32 %v190_v24, %v222_v33  ;;  %v163_v24 = vld [vmem:[%s824_s11 + $0x31] sm:$0x1] }
  0x22   : > { %v390_v36 = vrot.slane %v389_v27, 2  ;;  %v422_v37 = vsel %vm386_vm0, %v375_v29, -inf  ;;  %v405_v39 = vmax.f32 %v403_v22, %v404_v30  ;;  %v410_v40 = vmax.f32 %v408_v28, %v409_v31  ;;  %v167_v29 = vld [vmem:[%s824_s11 + $0x35] sm:$0x1] }
  0x23   : > { %v423_v41 = vrot.slane %v422_v37, 4  ;;  %v376_v42 = vunpack.c.l.bf16 %v360_v32  ;;  %v399_v43 = vrot.slane %v398_v35, 1  ;;  %v189_v47 = vunpack.c.l.bf16 %v125_v34  ;;  %v132_v34 = vld [vmem:[%s824_s11 + $0x12] sm:$0x1] }
  0x24   : > { %v391_v44 = vmax.f32 %v389_v27, %v390_v36  ;;  %v406_v48 = vrot.slane %v405_v39, 1  ;;  %v411_v49 = vrot.slane %v410_v40, 2  ;;  %v342_v55 = vmax.f32 %v250_v38, %v254_v45  ;;  %v168_v45 = vld [vmem:[%s824_s11 + $0x36] sm:$0x1] }
  0x25   : > { %v424_v50 = vmax.f32 %v422_v37, %v423_v41  ;;  %v429_v51 = vsel %vm386_vm0, %v376_v42, -inf  ;;  %v400_v52 = vmax.f32 %v398_v35, %v399_v43  ;;  %v193_v60 = vunpack.c.l.bf16 %v129_v46 }
  0x26   : > { %v392_v53 = vrot.slane %v391_v44, 1  ;;  %v430_v54 = vrot.slane %v429_v51, 4  ;;  %v407_v57 = vmax.f32 %v405_v39, %v406_v48  ;;  %v412_v58 = vmax.f32 %v410_v40, %v411_v49  ;;  %v136_v39 = vld [vmem:[%s824_s11 + $0x16] sm:$0x1] }
  0x27   : > { %v425_v59 = vrot.slane %v424_v50, 2  ;;  %v500_v61 = vpack.c.bf16 %v400_v52, %v400_v52  ;;  %v358_v0 = vpack.c.bf16 %v342_v55, %v342_v55  ;;  %v221_v5 = vunpack.c.l.bf16 %v157_v56  ;;  %v134_v55 = vld [vmem:[%s824_s11 + $0x14] sm:$0x1] }
  0x28   : > { %v393_v62 = vmax.f32 %v391_v44, %v392_v53  ;;  %v431_v63 = vmax.f32 %v429_v51, %v430_v54  ;;  %v501_v2 = vpack.c.bf16 %v407_v57, %v407_v57  ;;  %v413_v3 = vrot.slane %v412_v58, 1  ;;  %v164_v44 = vld [vmem:[%s824_s11 + $0x32] sm:$0x1] }
  0x29   : > { %v426_v4 = vmax.f32 %v424_v50, %v425_v59  ;;  %v532_v6 = vrot.slane %v500_v61, 2  ;;  %v374_v9 = vunpack.c.l.bf16 %v358_v0  ;;  %v225_v13 = vunpack.c.l.bf16 %v161_v1  ;;  %v130_v50 = vld [vmem:[%s824_s11 + $0x10] sm:$0x1] }
  0x2a   : > { %v499_v7 = vpack.c.bf16 %v393_v62, %v393_v62  ;;  %v432_v8 = vrot.slane %v431_v63, 2  ;;  %v533_v10 = vrot.slane %v501_v2, 2  ;;  %v414_v11 = vmax.f32 %v412_v58, %v413_v3 }
  0x2b   : > { %v427_v12 = vrot.slane %v426_v4, 1  ;;  %v553_v14 = vsel %vm547_vm1, %v500_v61, %v532_v6  ;;  %v415_v17 = vsel %vm386_vm0, %v374_v9, -inf  ;;  %v253_v27 = vmax.f32 %v189_v47, %v221_v5  ;;  %v162_v61 = vld [vmem:[%s824_s11 + $0x30] sm:$0x1] }
  0x2c   : > { %v531_v15 = vrot.slane %v499_v7, 2  ;;  %v433_v16 = vmax.f32 %v431_v63, %v432_v8  ;;  %600 = vst [vmem:[#allocation1 + $0x10] ss:$2 sm:$0xff] %v553_v14  ;;  %v556_v20 = vsel %vm547_vm1, %v501_v2, %v533_v10  ;;  %v502_v21 = vpack.c.bf16 %v414_v11, %v414_v11  ;;  %v166_v8 = vld [vmem:[%s824_s11 + $0x34] sm:$0x1] }
  0x2d   : > { %v428_v22 = vmax.f32 %v426_v4, %v427_v12  ;;  %v416_v23 = vrot.slane %v415_v17, 4  ;;  %604 = vst [vmem:[#allocation1 + $0x20] ss:$2 sm:$0xff] %v556_v20  ;;  %v257_v28 = vmax.f32 %v193_v60, %v225_v13  ;;  %v195_v33 = vunpack.c.l.bf16 %v131_v18 }
  0x2e   : > { %v550_v25 = vsel %vm547_vm1, %v499_v7, %v531_v15  ;;  %v434_v26 = vrot.slane %v433_v16, 1  ;;  %v534_v30 = vrot.slane %v502_v21, 2  ;;  %v199_v37 = vunpack.c.l.bf16 %v135_v19 }
  0x2f   : > { %596 = vst [vmem:[#allocation1] ss:$2 sm:$0xff] %v550_v25  ;;  %v504_v31 = vpack.c.bf16 %v428_v22, %v428_v22  ;;  %v417_v32 = vmax.f32 %v415_v17, %v416_v23  ;;  %v345_v36 = vmax.f32 %v253_v27, %v257_v28  ;;  %v227_v38 = vunpack.c.l.bf16 %v163_v24  ;;  %v133_v22 = vld [vmem:[%s824_s11 + $0x13] sm:$0x1] }
  0x30   : > { %v435_v35 = vmax.f32 %v433_v16, %v434_v26  ;;  %v559_v40 = vsel %vm547_vm1, %v502_v21, %v534_v30  ;;  %v231_v43 = vunpack.c.l.bf16 %v167_v29  ;;  %v196_v49 = vunpack.c.l.bf16 %v132_v34  ;;  %v137_v30 = vld [vmem:[%s824_s11 + $0x17] sm:$0x1] }
  0x31   : > { %v536_v41 = vrot.slane %v504_v31, 2  ;;  %v418_v42 = vrot.slane %v417_v32, 2  ;;  %608 = vst [vmem:[#allocation1 + $0x30] ss:$2 sm:$0xff] %v559_v40  ;;  %v361_v47 = vpack.c.bf16 %v345_v36, %v345_v36  ;;  %v259_v48 = vmax.f32 %v195_v33, %v227_v38 }
  0x32   : > { %v505_v46 = vpack.c.bf16 %v435_v35, %v435_v35  ;;  %v263_v53 = vmax.f32 %v199_v37, %v231_v43  ;;  %v200_v54 = vunpack.c.l.bf16 %v136_v39  ;;  %v228_v59 = vunpack.c.l.bf16 %v164_v44 }
  0x33   : > { %v565_v51 = vsel %vm547_vm1, %v504_v31, %v536_v41  ;;  %v419_v52 = vmax.f32 %v417_v32, %v418_v42  ;;  %v601_v56 = vld.sshfl [vmem:[#allocation1 + $0x10] sm:$0xff pattern:$0x75643120]  ;;  %v377_v58 = vunpack.c.l.bf16 %v361_v47  ;;  %v232_v60 = vunpack.c.l.bf16 %v168_v45 }
  0x34   : > { %v537_v57 = vrot.slane %v505_v46, 2  ;;  %614 = vst [vmem:[#allocation1 + $0x10] ss:$2 sm:$0xff] %v565_v51  ;;  %v648_v62 = vunpack.c.l.b16 %v601_v56  ;;  %v605_v63 = vld.sshfl [vmem:[#allocation1 + $0x20] sm:$0xff pattern:$0x75643120]  ;;  %v347_v1 = vmax.f32 %v259_v48, %v263_v53  ;;  %v194_v2 = vunpack.c.l.bf16 %v130_v50 }
  0x35   : > { %v420_v0 = vrot.slane %v419_v52, 1  ;;  %v649_v4 = vunpack.c.l.b16 %v605_v63  ;;  %v436_v6 = vsel %vm386_vm0, %v377_v58, -inf  ;;  %v260_v7 = vmax.f32 %v196_v49, %v228_v59  ;;  %v165_v31 = vld [vmem:[%s824_s11 + $0x33] sm:$0x1]  ;;  %v169_v41 = vld [vmem:[%s824_s11 + $0x37] sm:$0x1] }
  0x36   : > { %v568_v3 = vsel %vm547_vm1, %v505_v46, %v537_v57  ;;  %v597_v5 = vld.sshfl [vmem:[#allocation1] sm:$0xff pattern:$0x75643120]  ;;  %v663_v9 = vrot.slane %v648_v62, 7  ;;  %v437_v12 = vrot.slane %v436_v6, 4  ;;  %v363_v14 = vpack.c.bf16 %v347_v1, %v347_v1 }
  0x37   : > { %617 = vst [vmem:[#allocation1 + $0x20] ss:$2 sm:$0xff] %v568_v3  ;;  %v421_v10 = vmax.f32 %v419_v52, %v420_v0  ;;  %v647_v11 = vunpack.c.l.b16 %v597_v5  ;;  %v666_v13 = vrot.slane %v649_v4, 6  ;;  %v264_v15 = vmax.f32 %v200_v54, %v232_v60  ;;  %v139_v59 = vld [vmem:[%s824_s11 + $0x19] sm:$0x1] }
  0x38   : > { %v198_v16 = vunpack.c.l.bf16 %v134_v55  ;;  %v438_v18 = vmax.f32 %v436_v6, %v437_v12  ;;  %v609_v19 = vld.sshfl [vmem:[#allocation1 + $0x30] sm:$0xff pattern:$0x75643120]  ;;  %v226_v20 = vunpack.c.l.bf16 %v162_v61  ;;  %v230_v21 = vunpack.c.l.bf16 %v166_v8  ;;  %v143_v3 = vld [vmem:[%s824_s11 + $0x1d] sm:$0x1] }
  0x39   : > { %v503_v17 = vpack.c.bf16 %v421_v10, %v421_v10  ;;  %v650_v23 = vunpack.c.l.b16 %v609_v19  ;;  %v379_v24 = vunpack.c.l.bf16 %v363_v14  ;;  %v348_v25 = vmax.f32 %v260_v7, %v264_v15  ;;  %v171_v4 = vld [vmem:[%s824_s11 + $0x39] sm:$0x1] }
  0x3a   : > { %v439_v27 = vrot.slane %v438_v18, 2  ;;  %v258_v28 = vmax.f32 %v194_v2, %v226_v20  ;;  %v262_v29 = vmax.f32 %v198_v16, %v230_v21  ;;  %v197_v36 = vunpack.c.l.bf16 %v133_v22 }
  0x3b   : > { %v535_v26 = vrot.slane %v503_v17, 2  ;;  %v669_v32 = vrot.slane %v650_v23, 5  ;;  %v450_v33 = vsel %vm386_vm0, %v379_v24, -inf  ;;  %v615_v34 = vld.sshfl [vmem:[#allocation1 + $0x10] sm:$0xff pattern:$0x75643120]  ;;  %v364_v35 = vpack.c.bf16 %v348_v25, %v348_v25 }
  0x3c   : > { %v440_v38 = vmax.f32 %v438_v18, %v439_v27  ;;  %v451_v39 = vrot.slane %v450_v33, 4  ;;  %v652_v40 = vunpack.c.l.b16 %v615_v34  ;;  %v346_v44 = vmax.f32 %v258_v28, %v262_v29 }
  0x3d   : > { %v562_v37 = vsel %vm547_vm1, %v503_v17, %v535_v26  ;;  %v380_v42 = vunpack.c.l.bf16 %v364_v35  ;;  %v201_v45 = vunpack.c.l.bf16 %v137_v30  ;;  %v229_v46 = vunpack.c.l.bf16 %v165_v31  ;;  %v140_v30 = vld [vmem:[%s824_s11 + $0x1a] sm:$0x1]  ;;  %v144_v31 = vld [vmem:[%s824_s11 + $0x1e] sm:$0x1] }
  0x3e   : > { %611 = vst [vmem:[#allocation1] ss:$2 sm:$0xff] %v562_v37  ;;  %v618_v43 = vld.sshfl [vmem:[#allocation1 + $0x20] sm:$0xff pattern:$0x75643120]  ;;  %v441_v47 = vrot.slane %v440_v38, 1  ;;  %v452_v48 = vmax.f32 %v450_v33, %v451_v39  ;;  %v362_v52 = vpack.c.bf16 %v346_v44, %v346_v44  ;;  %v233_v53 = vunpack.c.l.bf16 %v169_v41 }
  0x3f   : > { %v672_v49 = vrot.slane %v652_v40, 7  ;;  %v653_v50 = vunpack.c.l.b16 %v618_v43  ;;  %v457_v51 = vsel %vm386_vm0, %v380_v42, -inf  ;;  %v261_v54 = vmax.f32 %v197_v36, %v229_v46  ;;  %v172_v36 = vld [vmem:[%s824_s11 + $0x3a] sm:$0x1]  ;;  %v176_v41 = vld [vmem:[%s824_s11 + $0x3e] sm:$0x1] }
  0x40   : > { %v442_v55 = vmax.f32 %v440_v38, %v441_v47  ;;  %v453_v56 = vrot.slane %v452_v48, 2  ;;  %v458_v57 = vrot.slane %v457_v51, 4  ;;  %v378_v60 = vunpack.c.l.bf16 %v362_v52  ;;  %v138_v42 = vld [vmem:[%s824_s11 + $0x18] sm:$0x1]  ;;  %v142_v47 = vld [vmem:[%s824_s11 + $0x1c] sm:$0x1] }
  0x41   : > { %v891_v58 = vrot.slane %v653_v50, 6  ;;  %v265_v61 = vmax.f32 %v201_v45, %v233_v53  ;;  %v665_v62 = vsel %vm664_vm2, %v663_v9, %v647_v11  ;;  %v203_v7 = vunpack.c.l.bf16 %v139_v59  ;;  %v175_v9 = vld [vmem:[%s824_s11 + $0x3d] sm:$0x1] }
  0x42   : > { %v506_v63 = vpack.c.bf16 %v442_v55, %v442_v55  ;;  %v454_v0 = vmax.f32 %v452_v48, %v453_v56  ;;  %v459_v1 = vmax.f32 %v457_v51, %v458_v57  ;;  %v668_v2 = vsel %vm667_vm3, %v666_v13, %v665_v62  ;;  %v170_v55 = vld [vmem:[%s824_s11 + $0x38] sm:$0x1]  ;;  %v174_v56 = vld [vmem:[%s824_s11 + $0x3c] sm:$0x1] }
  0x43   : > { %v443_v5 = vsel %vm386_vm0, %v378_v60, -inf  ;;  %v349_v6 = vmax.f32 %v261_v54, %v265_v61  ;;  %v671_v16 = vsel %vm670_vm4, %v669_v32, %v668_v2  ;;  %v207_v17 = vunpack.c.l.bf16 %v143_v3 }
  0x44   : > { %v538_v8 = vrot.slane %v506_v63, 2  ;;  %v455_v10 = vrot.slane %v454_v0, 1  ;;  %v460_v12 = vrot.slane %v459_v1, 2  ;;  %v444_v14 = vrot.slane %v443_v5, 4 }
  0x45   : > { %v612_v11 = vld.sshfl [vmem:[#allocation1] sm:$0xff pattern:$0x75643120]  ;;  %v365_v15 = vpack.c.bf16 %v349_v6, %v349_v6  ;;  %v235_v13 = vunpack.c.l.bf16 %v171_v4  ;;  %v690_v24 = vpack.c.b16 %v671_v16, %v671_v16  ;;  %v239_v25 = vunpack.c.l.bf16 %v175_v9 }
  0x46   : > { %v571_v18 = vsel %vm547_vm1, %v506_v63, %v538_v8  ;;  %v456_v19 = vmax.f32 %v454_v0, %v455_v10  ;;  %v461_v20 = vmax.f32 %v459_v1, %v460_v12  ;;  %v445_v21 = vmax.f32 %v443_v5, %v444_v14  ;;  %v141_v8 = vld [vmem:[%s824_s11 + $0x1b] sm:$0x1]  ;;  %v145_v10 = vld [vmem:[%s824_s11 + $0x1f] sm:$0x1] }
  0x47   : > { %620 = vst [vmem:[#allocation1 + $0x30] ss:$2 sm:$0xff] %v571_v18  ;;  %v651_v22 = vunpack.c.l.b16 %v612_v11  ;;  %v381_v23 = vunpack.c.l.bf16 %v365_v15  ;;  %v267_v29 = vmax.f32 %v203_v7, %v235_v13  ;;  %v694_v34 = vrot.slane %v690_v24, 2  ;;  %v173_v15 = vld [vmem:[%s824_s11 + $0x3b] sm:$0x1] }
  0x48   : > { %v508_v26 = vpack.c.bf16 %v456_v19, %v456_v19  ;;  %v462_v27 = vrot.slane %v461_v20, 1  ;;  %v446_v28 = vrot.slane %v445_v21, 2  ;;  %v271_v35 = vmax.f32 %v207_v17, %v239_v25  ;;  %v177_v19 = vld [vmem:[%s824_s11 + $0x3f] sm:$0x1] }
  0x49   : > { %v906_v32 = vsel %vm664_vm2, %v672_v49, %v651_v22  ;;  %v464_v33 = vsel %vm386_vm0, %v381_v23, -inf  ;;  %v700_v43 = vsel %vm547_vm1, %v690_v24, %v694_v34  ;;  %v204_v45 = vunpack.c.l.bf16 %v140_v30 }
  0x4a   : > { %v540_v37 = vrot.slane %v508_v26, 2  ;;  %v463_v38 = vmax.f32 %v461_v20, %v462_v27  ;;  %v447_v39 = vmax.f32 %v445_v21, %v446_v28  ;;  %v465_v40 = vrot.slane %v464_v33, 4  ;;  %714 = vst.msk [vmem:[%s912_s15] sm:$0x3] %vm386_vm0, %v700_v43 }
  0x4b   : > { %v351_v44 = vmax.f32 %v267_v29, %v271_v35  ;;  %v208_v46 = vunpack.c.l.bf16 %v144_v31  ;;  %v236_v53 = vunpack.c.l.bf16 %v172_v36  ;;  %v240_v54 = vunpack.c.l.bf16 %v176_v41 }
  0x4c   : > { %v577_v48 = vsel %vm547_vm1, %v508_v26, %v540_v37  ;;  %v509_v49 = vpack.c.bf16 %v463_v38, %v463_v38  ;;  %v448_v50 = vrot.slane %v447_v39, 1  ;;  %v466_v51 = vmax.f32 %v464_v33, %v465_v40 }
  0x4d   : > { %626 = vst [vmem:[#allocation1 + $0x10] ss:$2 sm:$0xff] %v577_v48  ;;  %v367_v52 = vpack.c.bf16 %v351_v44, %v351_v44  ;;  %v202_v57 = vunpack.c.l.bf16 %v138_v42  ;;  %v206_v63 = vunpack.c.l.bf16 %v142_v47  ;;  %v268_v2 = vmax.f32 %v204_v45, %v236_v53 }
  0x4e   : > { %v541_v59 = vrot.slane %v509_v49, 2  ;;  %v449_v60 = vmax.f32 %v447_v39, %v448_v50  ;;  %v467_v61 = vrot.slane %v466_v51, 2  ;;  %v621_v62 = vld.sshfl [vmem:[#allocation1 + $0x30] sm:$0xff pattern:$0x75643120]  ;;  %v272_v3 = vmax.f32 %v208_v46, %v240_v54 }
  0x4f   : > { %v654_v0 = vunpack.c.l.b16 %v621_v62  ;;  %v383_v1 = vunpack.c.l.bf16 %v367_v52  ;;  %v234_v7 = vunpack.c.l.bf16 %v170_v55  ;;  %v238_v11 = vunpack.c.l.bf16 %v174_v56 }
  0x50   : > { %v580_v4 = vsel %vm547_vm1, %v509_v49, %v541_v59  ;;  %v507_v5 = vpack.c.bf16 %v449_v60, %v449_v60  ;;  %v468_v6 = vmax.f32 %v466_v51, %v467_v61  ;;  %v352_v9 = vmax.f32 %v268_v2, %v272_v3 }
  0x51   : > { %629 = vst [vmem:[#allocation1 + $0x20] ss:$2 sm:$0xff] %v580_v4  ;;  %v676_v12 = vrot.slane %v654_v0, 5  ;;  %v478_v14 = vsel %vm386_vm0, %v383_v1, -inf  ;;  %v266_v18 = vmax.f32 %v202_v57, %v234_v7  ;;  %v270_v21 = vmax.f32 %v206_v63, %v238_v11 }
  0x52   : > { %v539_v16 = vrot.slane %v507_v5, 2  ;;  %v469_v17 = vrot.slane %v468_v6, 1  ;;  %v479_v13 = vrot.slane %v478_v14, 4  ;;  %v368_v20 = vpack.c.bf16 %v352_v9, %v352_v9 }
  0x53   : > { %v205_v22 = vunpack.c.l.bf16 %v141_v8  ;;  %v209_v23 = vunpack.c.l.bf16 %v145_v10  ;;  %v237_v27 = vunpack.c.l.bf16 %v173_v15  ;;  %v350_v29 = vmax.f32 %v266_v18, %v270_v21 }
  0x54   : > { %v574_v24 = vsel %vm547_vm1, %v507_v5, %v539_v16  ;;  %v470_v25 = vmax.f32 %v468_v6, %v469_v17  ;;  %v480_v26 = vmax.f32 %v478_v14, %v479_v13  ;;  %v384_v28 = vunpack.c.l.bf16 %v368_v20  ;;  %v627_v34 = vld.sshfl [vmem:[#allocation1 + $0x10] sm:$0xff pattern:$0x75643120] }
  0x55   : > { %623 = vst [vmem:[#allocation1] ss:$2 sm:$0xff] %v574_v24  ;;  %v241_v30 = vunpack.c.l.bf16 %v177_v19  ;;  %v269_v35 = vmax.f32 %v205_v22, %v237_v27  ;;  %v675_v36 = vsel %vm667_vm3, %v891_v58, %v906_v32  ;;  %v366_v38 = vpack.c.bf16 %v350_v29, %v350_v29 }
  0x56   : > { %v510_v31 = vpack.c.bf16 %v470_v25, %v470_v25  ;;  %v481_v33 = vrot.slane %v480_v26, 2  ;;  %v485_v37 = vsel %vm386_vm0, %v384_v28, -inf  ;;  %v677_v44 = vsel %vm670_vm4, %v676_v12, %v675_v36 }
  0x57   : > { %v273_v39 = vmax.f32 %v209_v23, %v241_v30  ;;  %v486_v42 = vrot.slane %v485_v37, 4  ;;  %v656_v45 = vunpack.c.l.b16 %v627_v34  ;;  %v382_v46 = vunpack.c.l.bf16 %v366_v38 }
  0x58   : > { %v542_v40 = vrot.slane %v510_v31, 2  ;;  %v482_v41 = vmax.f32 %v480_v26, %v481_v33  ;;  %v630_v43 = vld.sshfl [vmem:[#allocation1 + $0x20] sm:$0xff pattern:$0x75643120]  ;;  %v691_v48 = vpack.c.b16 %v677_v44, %v677_v44 }
  0x59   : > { %v353_v47 = vmax.f32 %v269_v35, %v273_v39  ;;  %v487_v51 = vmax.f32 %v485_v37, %v486_v42  ;;  %v657_v58 = vunpack.c.l.b16 %v630_v43  ;;  %v471_v32 = vsel %vm386_vm0, %v382_v46, -inf }
  0x5a   : > { %v583_v49 = vsel %vm547_vm1, %v510_v31, %v542_v40  ;;  %v483_v50 = vrot.slane %v482_v41, 1  ;;  %v695_v53 = vrot.slane %v691_v48, 2  ;;  %v472_v56 = vrot.slane %v471_v32, 4 }
  0x5b   : > { %632 = vst [vmem:[#allocation1 + $0x30] ss:$2 sm:$0xff] %v583_v49  ;;  %v369_v52 = vpack.c.bf16 %v353_v47, %v353_v47  ;;  %v488_v55 = vrot.slane %v487_v51, 2  ;;  %v678_v59 = vrot.slane %v656_v45, 7  ;;  %v680_v2 = vrot.slane %v657_v58, 6 }
  0x5c   : > { %v484_v54 = vmax.f32 %v482_v41, %v483_v50  ;;  %v624_v57 = vld.sshfl [vmem:[#allocation1] sm:$0xff pattern:$0x75643120]  ;;  %v703_v62 = vsel %vm547_vm1, %v691_v48, %v695_v53  ;;  %v473_v1 = vmax.f32 %v471_v32, %v472_v56 }
  0x5d   : > { %v655_v60 = vunpack.c.l.b16 %v624_v57  ;;  %v385_v61 = vunpack.c.l.bf16 %v369_v52  ;;  %v489_v0 = vmax.f32 %v487_v51, %v488_v55  ;;  %715 = vst.msk [vmem:[%s912_s15 + $0x2] sm:$0x3] %vm386_vm0, %v703_v62 }
  0x5e   : > { %v512_v63 = vpack.c.bf16 %v484_v54, %v484_v54  ;;  %v474_v6 = vrot.slane %v473_v1, 2 }
  0x5f   : > { %v492_v3 = vsel %vm386_vm0, %v385_v61, -inf  ;;  %v490_v5 = vrot.slane %v489_v0, 1  ;;  %v679_v8 = vsel %vm664_vm2, %v678_v59, %v655_v60 }
  0x60   : > { %v544_v4 = vrot.slane %v512_v63, 2  ;;  %v493_v7 = vrot.slane %v492_v3, 4  ;;  %v475_v14 = vmax.f32 %v473_v1, %v474_v6  ;;  %v681_v18 = vsel %vm667_vm3, %v680_v2, %v679_v8 }
  0x61   : > { %v491_v12 = vmax.f32 %v489_v0, %v490_v5 }
  0x62   : > { %v589_v10 = vsel %vm547_vm1, %v512_v63, %v544_v4  ;;  %v494_v9 = vmax.f32 %v492_v3, %v493_v7  ;;  %v633_v11 = vld.sshfl [vmem:[#allocation1 + $0x30] sm:$0xff pattern:$0x75643120]  ;;  %v476_v17 = vrot.slane %v475_v14, 1 }
  0x63   : > { %638 = vst [vmem:[#allocation1 + $0x10] ss:$2 sm:$0xff] %v589_v10  ;;  %v658_v15 = vunpack.c.l.b16 %v633_v11  ;;  %v513_v16 = vpack.c.bf16 %v491_v12, %v491_v12 }
  0x64   : > { %v495_v13 = vrot.slane %v494_v9, 2  ;;  %v477_v21 = vmax.f32 %v475_v14, %v476_v17 }
  0x65   : > { %v682_v19 = vrot.slane %v658_v15, 5  ;;  %v545_v20 = vrot.slane %v513_v16, 2 }
  0x66   : > { %v496_v22 = vmax.f32 %v494_v9, %v495_v13  ;;  %v511_v25 = vpack.c.bf16 %v477_v21, %v477_v21 }
  0x67   : > { %v683_v23 = vsel %vm670_vm4, %v682_v19, %v681_v18  ;;  %v592_v24 = vsel %vm547_vm1, %v513_v16, %v545_v20 }
  0x68   : > { %v497_v26 = vrot.slane %v496_v22, 1  ;;  %v692_v27 = vpack.c.b16 %v683_v23, %v683_v23  ;;  %641 = vst [vmem:[#allocation1 + $0x20] ss:$2 sm:$0xff] %v592_v24  ;;  %v543_v28 = vrot.slane %v511_v25, 2 }
  0x6a   : > { %v498_v29 = vmax.f32 %v496_v22, %v497_v26  ;;  %v696_v30 = vrot.slane %v692_v27, 2  ;;  %v586_v31 = vsel %vm547_vm1, %v511_v25, %v543_v28  ;;  %v639_v35 = vld.sshfl [vmem:[#allocation1 + $0x10] sm:$0xff pattern:$0x75643120] }
  0x6b   : > { %635 = vst [vmem:[#allocation1] ss:$2 sm:$0xff] %v586_v31  ;;  %v660_v37 = vunpack.c.l.b16 %v639_v35 }
  0x6c   : > { %v514_v33 = vpack.c.bf16 %v498_v29, %v498_v29  ;;  %v706_v34 = vsel %vm547_vm1, %v692_v27, %v696_v30 }
  0x6d   : > { %716 = vst.msk [vmem:[%s912_s15 + $0x4] sm:$0x3] %vm386_vm0, %v706_v34  ;;  %v684_v41 = vrot.slane %v660_v37, 7 }
  0x6e   : > { %v546_v36 = vrot.slane %v514_v33, 2 }
  0x6f   : > { %v642_v39 = vld.sshfl [vmem:[#allocation1 + $0x20] sm:$0xff pattern:$0x75643120] }
  0x70   : > { %v595_v38 = vsel %vm547_vm1, %v514_v33, %v546_v36  ;;  %v661_v40 = vunpack.c.l.b16 %v642_v39 }
  0x71   : > { %644 = vst [vmem:[#allocation1 + $0x30] ss:$2 sm:$0xff] %v595_v38 }
  0x72   : > { %v636_v42 = vld.sshfl [vmem:[#allocation1] sm:$0xff pattern:$0x75643120]  ;;  %v686_v44 = vrot.slane %v661_v40, 6 }
  0x73   : > { %v659_v43 = vunpack.c.l.b16 %v636_v42 }
  0x75   : > { %v685_v45 = vsel %vm664_vm2, %v684_v41, %v659_v43 }
  0x76   : > { %v687_v48 = vsel %vm667_vm3, %v686_v44, %v685_v45 }
  0x78   : > { %v645_v46 = vld.sshfl [vmem:[#allocation1 + $0x30] sm:$0xff pattern:$0x75643120] }
  0x79   : > { %v662_v47 = vunpack.c.l.b16 %v645_v46 }
  0x7b   : > { %v688_v49 = vrot.slane %v662_v47, 5 }
  0x7d   : > { %v689_v50 = vsel %vm670_vm4, %v688_v49, %v687_v48 }
  0x7e   : > { %v693_v51 = vpack.c.b16 %v689_v50, %v689_v50 }
  0x80   : > { %v697_v58 = vrot.slane %v693_v51, 2 }
  0x82   : > { %v709_v32 = vsel %vm547_vm1, %v693_v51, %v697_v58 }
  0x83   : > { %717 = vst.msk [vmem:[%s912_s15 + $0x6] sm:$0x3] %vm386_vm0, %v709_v32 }
  0x84 PF: > { %s11_s6 = sadd.s32 1, %s798_s6  }
  0x85   : > { %p8_p4 = scmp.ge.s32.totalorder %s11_s6, 10  }
  0x87   :  { %10 = sbr.rel (!%p8_p4) target bundleno = 1 (0x1), region = 57 }

// kernel: down_forward.5
= control target key start
LH: loop header
LB: loop body
LE: loop exit
PB: predicated region body
PF: predicated region fallthrough
CT: control target
= control target key end

     0   :  { %s1934_s24 = smov 0   ;;  %s1936_s25 = smov 0   ;;  %s2466_s0 = inlined_call_operand.vmem [shape: bf16[2,4,4,4,4], index: 0, kind: input, shape index: {}, may-alias: {0,1,2}]   ;;  %s2467_s1 = inlined_call_operand.vmem [shape: bf16[2,4,4,4,4], index: 1, kind: input, shape index: {}, may-alias: {0,1,2}]   ;;  %s2468_s2 = inlined_call_operand.vmem [shape: bf16[2,4,4,4,4], index: 2, kind: input, shape index: {}, may-alias: {0,1,2}]   ;;  %s2469_s3 = inlined_call_operand.vmem [shape: bf16[128,128], index: 3, kind: input, shape index: {}]   ;;  %s2470_s4 = inlined_call_operand.vmem [shape: f32[1,4], index: 4, kind: input, shape index: {}, may-alias: {4,5}]   ;;  %s2471_s5 = inlined_call_operand.vmem [shape: f32[1,4], index: 5, kind: input, shape index: {}, may-alias: {4,5}]   ;;  %s2472_s6 = inlined_call_operand.vmem [shape: bf16[2,4,16,128], index: 6, kind: output, shape index: {0}]   ;;  %s2473_s7 = inlined_call_operand.vmem [shape: f32[2,4,2,128], index: 7, kind: output, shape index: {1}]  }
   0x1   :  { %s1938_s26 = smov 0   ;;  %s1940_s27 = smov 0  }
   0x2   :  { %s1942_s28 = smov 0  }
   0x3 LB: > { %s27_s4 = sadd.s32 1, %s1867_s26  ;;  %s30_s5 = sadd.s32 1, %s1871_s27  ;;  %s1875_s28 = sphi %s1942_s28, %s18_s28   ;;  %s1871_s27 = sphi %s1940_s27, %s2489_s27   ;;  %s1867_s26 = sphi %s1938_s26, %s2488_s26   ;;  %s1863_s25 = sphi %s1936_s25, %s2487_s25   ;;  %s1859_s24 = sphi %s1934_s24, %s2486_s24  }
   0x4   : > { %p28_p0 = scmp.ge.s32.totalorder %s27_s4, 4  ;;  %p1668_p1 = scmp.ge.s32.totalorder %s1875_s28, 1 }
   0x5   : > { %p350_p2 = scmp.lt.s32.totalorder %s1875_s28, 9 }
   0x6   : > { %s2491_s4 = smov (%p28_p0, %s27_s4), 0  ;;  %s2493_s5 = smov (!%p28_p0, %s30_s5), %s1871_s27 }
   0x7   : > { %p351_p3 = pnand %p1668_p1, %p350_p2  ;;  %p32_p4 = scmp.ge.s32.totalorder %s2493_s5, 2 }
   0x8   : > { %s430_s29 = sadd.s32 (!%p351_p3), 4294967295, %s1859_s24  ;;  %p435_p5 = scmp.lt.s32.totalorder (!%p351_p3), %s1863_s25, 1 }
   0x9   : > { %s2495_s5 = smov (%p32_p4, %s2493_s5), 0  ;;  %354 = sbr.rel (%p351_p3) target bundleno = 716 (0x2cc), region = 44 }
   0xa   : > { %p431_p6 = scmp.gt.s32.totalorder (!%p351_p3), %s430_s29, 0  ;;  %p1669_p7 = scmp.lt.s32.totalorder (!%p351_p3), %s430_s29, 3 }
   0xb   : > { %p508_p9 = scmp.ge.s32.totalorder (!%p351_p3), %s1859_s24, 1  ;;  %p449_p10 = scmp.gt.s32.totalorder (!%p351_p3), %s1859_s24, 0 }
   0xc   : > { %p1677_p11 = scmp.lt.s32.totalorder (!%p351_p3), %s1859_s24, 3  ;;  %s466_s22 = sadd.s32 (!%p351_p3), 1, %s1859_s24 }
   0xd   : > { %p467_p13 = scmp.gt.s32.totalorder (!%p351_p3), %s466_s22, 0  ;;  %p1685_p0 = scmp.lt.s32.totalorder (!%p351_p3), %s466_s22, 3 }
   0xe   : > { %vm565_vm0 = vcmask 1040384   ;;  %vm566_vm1 = vsmask.f32 256  ;;  %v1877_v0 = vmov 0   ;;  %vm573_vm3 = vcmask 1042432   ;;  %s2497_s29 = smov (!%p431_p6, %s430_s29), 0 }
   0xf   : > { %v528_v1 = vrot.slane %v1877_v0, 7  ;;  %vm1969_vm2 = vmand %vm565_vm0, %vm566_vm1  ;;  %vm574_vm4 = vsmask.f32 2304  ;;  %s2499_s25 = smov (!%p435_p5, %s1863_s25), 1  ;;  %s2501_s29 = smov (!%p1669_p7, %s2497_s29), 3  ;;  %v1997_v7 = vunpack.c.l.b16 %v1877_v0  ;;  %v2000_v8 = vunpack.c.h.b16 %v1877_v0 }
  0x10   : > { %vm1975_vm5 = vmand %vm573_vm3, %vm574_vm4  ;;  %p437_p8 = scmp.lt.s32.totalorder %s2501_s29, 3  ;;  %s1987_s30 = sshll.u32 %s2499_s25, 4  ;;  %vm694_vm10 = vsmask.f32 1280  ;;  %vm695_vm11 = vsmask.f32 3336 }
  0x11   : > { %v568_v3 = vsel %vm1969_vm2, 0, %v528_v1  ;;  %s509_s11 = scalar_select %p508_p9, 1, 0  ;;  %vm696_vm12 = vmor %vm694_vm10, %vm695_vm11  ;;  %vm697_vm13 = vsmask.f32 5392  ;;  %vm757_vm3 = vcmask 1042434  }
  0x12   : > { %v1983_v5 = vsel %vm1975_vm5, %v568_v3, 0  ;;  %s2503_s29 = smov (!%p437_p8, %s2501_s29), 3  ;;  %vm699_vm14 = vsmask.f32 7448  ;;  %vm698_vm15 = vmor %vm696_vm12, %vm697_vm13  ;;  %p629_p1 = scmp.le.s32.totalorder %s1859_s24, 2 }
  0x13   : > { %959 = vst [vmem:[#allocation1] ss:$4 sm:$0xff] %v1983_v5  ;;  %s1674_s8 = sshll.u32 %s2503_s29, 2  ;;  %v510_v6 = vstv %s509_s11  ;;  %v702_v14 = vshrl.u32 %v1983_v5, 16  ;;  %v705_v15 = vshll.u32 %v1983_v5, 16  ;;  %v690_v20 = vrot.slane %v1983_v5, 2  ;;  %vm2053_vm1 = vmor %vm698_vm15, %vm699_vm14 }
  0x14   : > { %s441_s9 = sadd.s32 %s1987_s30, %s1674_s8  ;;  %vm511_vm6 = vcmp.eq.s32.totalorder %v510_v6, 1  ;;  %vm758_vm4 = vmor %vm565_vm0, %vm757_vm3  ;;  %s1884_s19 = smov 28   ;;  %vm1156_vm14 = vcmask 97280   ;;  %vm1159_vm15 = vcmask 130048   ;;  %vm1165_vm3 = vcmask 195584  }
  0x15   : > { %s1676_s10 = sshll.u32 %s441_s9, 1  ;;  %v512_v9 = vsel %vm511_vm6, 1, %v1877_v0  ;;  %v704_v27 = vrot.slane %v702_v14, 6  ;;  %v707_v28 = vrot.slane %v705_v15, 7  ;;  %v711_v36 = vshll.u32 %v690_v20, 16  ;;  %s1885_s20 = smov 32  }
  0x16   : > { %s1994_s14 = scalar_lea.vmem %s2466_s0, %s1676_s10  ;;  %v1698_v10 = vunpack.i.l.s16 %v512_v9  ;;  %vm759_vm6 = vcmask 1044484   ;;  %s1694_s11 = sshll.u32 %s2499_s25, 3 }
  0x17   : > { %v504_v11 = vld [vmem:[%s1994_s14] sm:$0x3]  ;;  %v505_v12 = vld [vmem:[%s1994_s14 + $0x2] sm:$0x3]  ;;  %v506_v13 = vld [vmem:[%s1994_s14 + $0x4] sm:$0x3]  ;;  %v708_v35 = vor.u32 %v707_v28, %v704_v27 }
  0x18   : > { %vm518_vm7 = vcmp.ne.s32.totalorder %v1698_v10, %v1997_v7  ;;  %vm519_vm8 = vcmp.ne.s32.totalorder %v1698_v10, %v2000_v8  ;;  %v713_v46 = vrot.slane %v711_v36, 7  ;;  %v507_v60 = vld [vmem:[%s1994_s14 + $0x6] sm:$0x3]  ;;  %v765_v27 = vrot.slane %v690_v20, 7  ;;  %s450_s15 = scalar_select %p449_p10, %s1859_s24, 0 }
  0x19   : > { %vm2010_vm9 = vmpackc.low %vm519_vm8, %vm518_vm7  ;;  %v709_v45 = vrot.slane %v708_v35, 2  ;;  %vm761_vm8 = vcmask 1046534   ;;  %s468_s23 = scalar_select %p467_p13, %s466_s22, 0 }
  0x1a   : > { %v521_v17 = vsel %vm2010_vm9, %v504_v11, 0  ;;  %v522_v18 = vsel %vm2010_vm9, %v505_v12, 0  ;;  %v523_v19 = vsel %vm2010_vm9, %v506_v13, 0  ;;  %v524_v12 = vsel %vm2010_vm9, %v507_v60, 0  ;;  %vm760_vm7 = vmor %vm758_vm4, %vm759_vm6  ;;  %s2505_s15 = smov (!%p1677_p11, %s450_s15), 3  ;;  %s1879_s14 = smov 8  }
  0x1b   : > { %v533_v21 = vshrl.u32 %v521_v17, 16  ;;  %v536_v22 = vshll.u32 %v521_v17, 16  ;;  %v540_v23 = vshrl.u32 %v522_v18, 16  ;;  %v543_v24 = vshll.u32 %v522_v18, 16  ;;  %vm2084_vm9 = vmor %vm760_vm7, %vm761_vm8  ;;  %p455_p12 = scmp.lt.s32.totalorder %s2505_s15, 3  ;;  %s2509_s23 = smov (!%p1685_p0, %s468_s23), 3 }
  0x1c   : > { %v547_v25 = vshrl.u32 %v523_v19, 16  ;;  %v550_v26 = vshll.u32 %v523_v19, 16  ;;  %v2061_v9 = vsel %vm2053_vm1, %v709_v45, %v713_v46  ;;  %s630_s29 = scalar_select %p629_p1, 1, 0  ;;  %vm1168_vm4 = vcmask 228352  }
  0x1d   : > { %v535_v29 = vrot.slane %v533_v21, 7  ;;  %v542_v30 = vrot.slane %v540_v23, 7  ;;  %s2507_s15 = smov (!%p455_p12, %s2505_s15), 3  ;;  %p473_p2 = scmp.lt.s32.totalorder %s2509_s23, 3  ;;  %vm1171_vm6 = vcmask 261120   ;;  %vm1174_vm7 = vcmask 293888  }
  0x1e   : > { %v549_v31 = vrot.slane %v547_v25, 7  ;;  %v557_v25 = vshll.u32 %v524_v12, 16  ;;  %s1682_s16 = sshll.u32 %s2507_s15, 2  ;;  %s1880_s15 = smov 12   ;;  %vm1177_vm8 = vcmask 326656  }
  0x1f   : > { %v538_v32 = vor.u32 %v536_v22, %v535_v29  ;;  %v545_v33 = vor.u32 %v543_v24, %v542_v30  ;;  %v554_v22 = vshrl.u32 %v524_v12, 16  ;;  %s459_s17 = sadd.s32 %s1682_s16, %s1987_s30  ;;  %s2511_s23 = smov (!%p473_p2, %s2509_s23), 3 }
  0x20   : > { %v552_v34 = vor.u32 %v550_v26, %v549_v31  ;;  %v1702_v26 = vrot.slane %v1983_v5, 9  ;;  %s1684_s18 = sshll.u32 %s459_s17, 1  ;;  %s1690_s8 = sshll.u32 %s2511_s23, 2 }
  0x21   : > { %v569_v37 = vsel %vm1969_vm2, 0, %v538_v32  ;;  %v570_v38 = vsel %vm1969_vm2, 0, %v545_v33  ;;  %v556_v24 = vrot.slane %v554_v22, 7  ;;  %s2144_s21 = scalar_lea.vmem %s2467_s1, %s1684_s18  ;;  %s477_s9 = sadd.s32 %s1690_s8, %s1987_s30 }
  0x22   : > { %v571_v39 = vsel %vm1969_vm2, 0, %v552_v34  ;;  %v2031_v40 = vsel %vm1975_vm5, %v569_v37, 0  ;;  %v2035_v41 = vsel %vm1975_vm5, %v570_v38, 0  ;;  %v2093_v36 = vsel %vm2084_vm9, %v1702_v26, %v765_v27  ;;  %s1692_s10 = sshll.u32 %s477_s9, 1  ;;  %s1878_s30 = smov 4  }
  0x23   : > { %v2039_v42 = vsel %vm1975_vm5, %v571_v39, 0  ;;  %961 = vst [vmem:[#allocation1 + $0x1] ss:$4 sm:$0xff] %v2031_v40  ;;  %v691_v43 = vrot.slane %v2031_v40, 2  ;;  %v692_v44 = vrot.slane %v2035_v41, 2  ;;  %v716_v48 = vshrl.u32 %v2031_v40, 16  ;;  %s2257_s13 = scalar_lea.vmem %s2468_s2, %s1692_s10 }
  0x24   : > { %963 = vst [vmem:[#allocation1 + $0x2] ss:$4 sm:$0xff] %v2035_v41  ;;  %v693_v47 = vrot.slane %v2039_v42, 2  ;;  %v719_v49 = vshll.u32 %v2031_v40, 16  ;;  %v730_v50 = vshrl.u32 %v2035_v41, 16  ;;  %v733_v52 = vshll.u32 %v2035_v41, 16 }
  0x25   : > { %965 = vst [vmem:[#allocation1 + $0x3] ss:$4 sm:$0xff] %v2039_v42  ;;  %v725_v51 = vshll.u32 %v691_v43, 16  ;;  %v739_v53 = vshll.u32 %v692_v44, 16  ;;  %v744_v54 = vshrl.u32 %v2039_v42, 16  ;;  %v718_v56 = vrot.slane %v716_v48, 6 }
  0x26   : > { %v721_v57 = vrot.slane %v719_v49, 7  ;;  %v732_v58 = vrot.slane %v730_v50, 6  ;;  %v747_v59 = vshll.u32 %v2039_v42, 16  ;;  %v735_v61 = vrot.slane %v733_v52, 7  ;;  %s1881_s16 = smov 16   ;;  %s1882_s17 = smov 20  }
  0x27   : > { %v746_v62 = vrot.slane %v744_v54, 6  ;;  %v727_v1 = vrot.slane %v725_v51, 7  ;;  %v753_v6 = vshll.u32 %v693_v47, 16  ;;  %v741_v11 = vrot.slane %v739_v53, 7  ;;  %s1883_s18 = smov 24   ;;  %s1887_s22 = smov 40  }
  0x28   : > { %v722_v63 = vor.u32 %v721_v57, %v718_v56  ;;  %v749_v3 = vrot.slane %v747_v59, 7  ;;  %v736_v10 = vor.u32 %v735_v61, %v732_v58  ;;  %v1703_v29 = vrot.slane %v2031_v40, 9  ;;  %s1888_s23 = smov 52   ;;  %s1890_s8 = smov 56  }
  0x29   : > { %v755_v15 = vrot.slane %v753_v6, 7  ;;  %v769_v30 = vrot.slane %v691_v43, 7  ;;  %v1704_v31 = vrot.slane %v2035_v41, 9  ;;  %v773_v32 = vrot.slane %v692_v44, 7  ;;  %s1891_s9 = smov 48   ;;  %s1892_s10 = smov 60  }
  0x2a   : > { %v723_v13 = vrot.slane %v722_v63, 2  ;;  %v750_v14 = vor.u32 %v749_v3, %v746_v62  ;;  %v737_v17 = vrot.slane %v736_v10, 2  ;;  %v559_v33 = vor.u32 %v557_v25, %v556_v24  ;;  %v581_v62 = vld [vmem:[%s2144_s21] sm:$0x3]  ;;  %v582_v63 = vld [vmem:[%s2144_s21 + $0x2] sm:$0x3] }
  0x2b   : > { %v1705_v34 = vrot.slane %v2039_v42, 9  ;;  %v777_v35 = vrot.slane %v693_v47, 7  ;;  %v770_v20 = vsel %vm2084_vm9, %v1703_v29, %v769_v30  ;;  %v2099_v37 = vsel %vm2084_vm9, %v1704_v31, %v773_v32  ;;  %s2513_s24 = smov (!%p1677_p11, %s1859_s24), 3 }
  0x2c   : > { %v2065_v18 = vld.sshfl [vmem:[#allocation1] sm:$0xff pattern:$0x73625140]  ;;  %v728_v19 = vsel %vm2053_vm1, %v723_v13, %v727_v1  ;;  %v751_v21 = vrot.slane %v750_v14, 2  ;;  %v2072_v23 = vsel %vm2053_vm1, %v737_v17, %v741_v11  ;;  %v572_v39 = vsel %vm1969_vm2, 0, %v559_v33 }
  0x2d   : > { %968 = vst [vmem:[#allocation1] ss:$4 sm:$0xff] %v2061_v9  ;;  %v2107_v43 = vsel %vm2084_vm9, %v1705_v34, %v777_v35  ;;  %v580_v44 = vsel %vm1975_vm5, %v572_v39, 0  ;;  %v583_v1 = vld [vmem:[%s2144_s21 + $0x4] sm:$0x3]  ;;  %v586_v3 = vshrl.u32 %v581_v62, 16 }
  0x2e   : > { %971 = vst [vmem:[#allocation1 + $0x1] ss:$4 sm:$0xff] %v728_v19  ;;  %v2077_v16 = vsel %vm2053_vm1, %v751_v21, %v755_v15  ;;  %v782_v45 = vshrl.u32 %v580_v44, 16  ;;  %v785_v46 = vshll.u32 %v580_v44, 16  ;;  %v780_v47 = vrot.slane %v580_v44, 2 }
  0x2f   : > { %974 = vst [vmem:[#allocation1 + $0x2] ss:$4 sm:$0xff] %v2072_v23  ;;  %v593_v6 = vshrl.u32 %v582_v63, 16  ;;  %v600_v10 = vshrl.u32 %v583_v1, 16  ;;  %v589_v11 = vshll.u32 %v581_v62, 16  ;;  %v596_v13 = vshll.u32 %v582_v63, 16 }
  0x30   : > { %977 = vst [vmem:[#allocation1 + $0x3] ss:$4 sm:$0xff] %v2077_v16  ;;  %v784_v48 = vrot.slane %v782_v45, 6  ;;  %v787_v49 = vrot.slane %v785_v46, 7  ;;  %v791_v52 = vshll.u32 %v780_v47, 16  ;;  %v797_v58 = vrot.slane %v780_v47, 7 }
  0x31   : > { %v595_v12 = vrot.slane %v593_v6, 7  ;;  %v602_v14 = vrot.slane %v600_v10, 7  ;;  %v603_v15 = vshll.u32 %v583_v1, 16  ;;  %v584_v63 = vld [vmem:[%s2144_s21 + $0x6] sm:$0x3]  ;;  %s1886_s21 = smov 36  }
  0x32   : > { %v788_v51 = vor.u32 %v787_v49, %v784_v48  ;;  %v793_v54 = vrot.slane %v791_v52, 7  ;;  %v607_v10 = vshrl.u32 %v584_v63, 16 }
  0x33   : > { %v605_v21 = vor.u32 %v603_v15, %v602_v14  ;;  %v610_v14 = vshll.u32 %v584_v63, 16 }
  0x34   : > { %v789_v53 = vrot.slane %v788_v51, 2 }
  0x36   : > { %v794_v57 = vsel %vm2053_vm1, %v789_v53, %v793_v54 }
  0x37   : > { %v2101_v38 = vld.sshfl [vmem:[#allocation1] sm:$0xff pattern:$0x73625140] }
  0x38   : > { %983 = vst [vmem:[#allocation1] ss:$4 sm:$0xff] %v2093_v36 }
  0x39   : > { %986 = vst [vmem:[#allocation1 + $0x1] ss:$4 sm:$0xff] %v770_v20 }
  0x3a   : > { %989 = vst [vmem:[#allocation1 + $0x2] ss:$4 sm:$0xff] %v2099_v37 }
  0x3b   : > { %992 = vst [vmem:[#allocation1 + $0x3] ss:$4 sm:$0xff] %v2107_v43 }
  0x42   : > { %v2114_v50 = vld.sshfl [vmem:[#allocation1] sm:$0xff pattern:$0x73625140] }
  0x43   : > { %997 = vst [vmem:[#allocation1] ss:$4 sm:$0xff] %v2031_v40  ;;  %v1706_v40 = vrot.slane %v580_v44, 9 }
  0x44   : > { %999 = vst [vmem:[#allocation1 + $0x1] ss:$4 sm:$0xff] %v2035_v41 }
  0x45   : > { %1001 = vst [vmem:[#allocation1 + $0x2] ss:$4 sm:$0xff] %v2039_v42  ;;  %v798_v60 = vsel %vm2084_vm9, %v1706_v40, %v797_v58 }
  0x46   : > { %1003 = vst [vmem:[#allocation1 + $0x3] ss:$4 sm:$0xff] %v580_v44 }
  0x4d   : > { %v2122_v56 = vld.sshfl [vmem:[#allocation1] sm:$0xff pattern:$0x73625140] }
  0x4e   : > { %1008 = vst [vmem:[#allocation1] ss:$4 sm:$0xff] %v728_v19  ;;  %v598_v19 = vor.u32 %v596_v13, %v595_v12  ;;  %v609_v13 = vrot.slane %v607_v10, 7 }
  0x4f   : > { %1010 = vst [vmem:[#allocation1 + $0x1] ss:$4 sm:$0xff] %v2072_v23 }
  0x50   : > { %1012 = vst [vmem:[#allocation1 + $0x2] ss:$4 sm:$0xff] %v2077_v16 }
  0x51   : > { %1015 = vst [vmem:[#allocation1 + $0x3] ss:$4 sm:$0xff] %v794_v57 }
  0x58   : > { %v2130_v59 = vld.sshfl [vmem:[#allocation1] sm:$0xff pattern:$0x73625140] }
  0x59   : > { %1020 = vst [vmem:[#allocation1] ss:$4 sm:$0xff] %v770_v20 }
  0x5a   : > { %1022 = vst [vmem:[#allocation1 + $0x1] ss:$4 sm:$0xff] %v2099_v37 }
  0x5b   : > { %1024 = vst [vmem:[#allocation1 + $0x2] ss:$4 sm:$0xff] %v2107_v43 }
  0x5c   : > { %1027 = vst [vmem:[#allocation1 + $0x3] ss:$4 sm:$0xff] %v798_v60 }
  0x63   : > { %v2137_v61 = vld.sshfl [vmem:[#allocation1] sm:$0xff pattern:$0x73625140] }
  0x64   : > { %1032 = vst [vmem:[#allocation1] ss:$4 sm:$0xff] %v2035_v41 }
  0x65   : > { %1034 = vst [vmem:[#allocation1 + $0x1] ss:$4 sm:$0xff] %v2039_v42  ;;  %v588_v42 = vrot.slane %v586_v3, 7 }
  0x66   : > { %1036 = vst [vmem:[#allocation1 + $0x2] ss:$4 sm:$0xff] %v580_v44 }
  0x67   : > { %1038 = vst [vmem:[#allocation1 + $0x3] ss:$4 sm:$0xff] %v1983_v5  ;;  %v591_v17 = vor.u32 %v589_v11, %v588_v42 }
  0x69   : > { %v617_v22 = vsel %vm1969_vm2, 0, %v591_v17 }
  0x6a   : > { %v2166_v25 = vsel %vm1975_vm5, %v617_v22, 0  ;;  %v612_v22 = vor.u32 %v610_v14, %v609_v13 }
  0x6b   : > { %v806_v29 = vshrl.u32 %v2166_v25, 16  ;;  %v809_v30 = vshll.u32 %v2166_v25, 16  ;;  %v802_v35 = vrot.slane %v2166_v25, 2  ;;  %v1707_v15 = vrot.slane %v2166_v25, 9 }
  0x6d   : > { %v808_v20 = vrot.slane %v806_v29, 6  ;;  %v815_v51 = vshll.u32 %v802_v35, 16  ;;  %v849_v17 = vrot.slane %v802_v35, 7 }
  0x6e   : > { %v2150_v41 = vld.sshfl [vmem:[#allocation1] sm:$0xff pattern:$0x73625140] }
  0x6f   : > { %1043 = vst [vmem:[#allocation1] ss:$4 sm:$0xff] %v2072_v23  ;;  %v618_v23 = vsel %vm1969_vm2, 0, %v598_v19  ;;  %v817_v58 = vrot.slane %v815_v51, 7  ;;  %v850_v29 = vsel %vm2084_vm9, %v1707_v15, %v849_v17 }
  0x70   : > { %1045 = vst [vmem:[#allocation1 + $0x1] ss:$4 sm:$0xff] %v2077_v16  ;;  %v619_v16 = vsel %vm1969_vm2, 0, %v605_v21  ;;  %v2171_v26 = vsel %vm1975_vm5, %v618_v23, 0 }
  0x71   : > { %1047 = vst [vmem:[#allocation1 + $0x2] ss:$4 sm:$0xff] %v794_v57  ;;  %v2175_v27 = vsel %vm1975_vm5, %v619_v16, 0  ;;  %v820_v31 = vshrl.u32 %v2171_v26, 16  ;;  %v823_v32 = vshll.u32 %v2171_v26, 16  ;;  %v803_v39 = vrot.slane %v2171_v26, 2 }
  0x72   : > { %1049 = vst [vmem:[#allocation1 + $0x3] ss:$4 sm:$0xff] %v2061_v9  ;;  %v834_v33 = vshrl.u32 %v2175_v27, 16  ;;  %v837_v34 = vshll.u32 %v2175_v27, 16  ;;  %v804_v45 = vrot.slane %v2175_v27, 2  ;;  %v1708_v19 = vrot.slane %v2171_v26, 9 }
  0x73   : > { %v825_v44 = vrot.slane %v823_v32, 7  ;;  %v829_v53 = vshll.u32 %v803_v39, 16  ;;  %v853_v21 = vrot.slane %v803_v39, 7  ;;  %v1709_v23 = vrot.slane %v2175_v27, 9 }
  0x74   : > { %v836_v46 = vrot.slane %v834_v33, 6  ;;  %v839_v47 = vrot.slane %v837_v34, 7  ;;  %v843_v57 = vshll.u32 %v804_v45, 16  ;;  %v857_v16 = vrot.slane %v804_v45, 7 }
  0x75   : > { %v831_v62 = vrot.slane %v829_v53, 7  ;;  %v620_v32 = vsel %vm1969_vm2, 0, %v612_v22 }
  0x76   : > { %v840_v54 = vor.u32 %v839_v47, %v836_v46  ;;  %v845_v3 = vrot.slane %v843_v57, 7  ;;  %v2224_v33 = vsel %vm2084_vm9, %v1709_v23, %v857_v16  ;;  %v624_v34 = vsel %vm1975_vm5, %v620_v32, 0 }
  0x77   : > { %v862_v35 = vshrl.u32 %v624_v34, 16 }
  0x78   : > { %v841_v1 = vrot.slane %v840_v54, 2  ;;  %v631_v54 = vstv %s630_s29  ;;  %s1889_s29 = smov 44  }
  0x79   : > { %v2159_v24 = vld.sshfl [vmem:[#allocation1] sm:$0xff pattern:$0x73625140]  ;;  %v864_v39 = vrot.slane %v862_v35, 6  ;;  %vm632_vm10 = vcmp.eq.s32.totalorder %v631_v54, 1 }
  0x7a   : > { %1054 = vst [vmem:[#allocation1] ss:$4 sm:$0xff] %v2099_v37  ;;  %v811_v37 = vrot.slane %v809_v30, 7  ;;  %v2204_v12 = vsel %vm2053_vm1, %v841_v1, %v845_v3  ;;  %v2216_v30 = vsel %vm2084_vm9, %v1708_v19, %v853_v21  ;;  %v626_v1 = vld [vmem:[%s2257_s13 + $0x2] sm:$0x3] }
  0x7b   : > { %1056 = vst [vmem:[#allocation1 + $0x1] ss:$4 sm:$0xff] %v2107_v43  ;;  %v822_v43 = vrot.slane %v820_v31, 6  ;;  %v627_v3 = vld [vmem:[%s2257_s13 + $0x4] sm:$0x3] }
  0x7c   : > { %1058 = vst [vmem:[#allocation1 + $0x2] ss:$4 sm:$0xff] %v798_v60  ;;  %v812_v49 = vor.u32 %v811_v37, %v808_v20  ;;  %v865_v20 = vshll.u32 %v624_v34, 16  ;;  %v860_v37 = vrot.slane %v624_v34, 2 }
  0x7d   : > { %1060 = vst [vmem:[#allocation1 + $0x3] ss:$4 sm:$0xff] %v2093_v36  ;;  %v826_v52 = vor.u32 %v825_v44, %v822_v43 }
  0x7e   : > { %v813_v40 = vrot.slane %v812_v49, 2  ;;  %v867_v43 = vrot.slane %v865_v20, 7  ;;  %v871_v46 = vshll.u32 %v860_v37, 16  ;;  %v877_v53 = vrot.slane %v860_v37, 7 }
  0x7f   : > { %v827_v60 = vrot.slane %v826_v52, 2 }
  0x80   : > { %v818_v6 = vsel %vm2053_vm1, %v813_v40, %v817_v58  ;;  %v868_v45 = vor.u32 %v867_v43, %v864_v39  ;;  %v873_v49 = vrot.slane %v871_v46, 7  ;;  %v633_v58 = vsel %vm632_vm10, 1, %v1877_v0  ;;  %v625_v0 = vld [vmem:[%s2257_s13] sm:$0x3] }
  0x81   : > { %v2198_v42 = vsel %vm2053_vm1, %v827_v60, %v831_v62  ;;  %v1700_v60 = vunpack.i.l.s16 %v633_v58  ;;  %vm1183_vm10 = vcmask 392192  }
  0x82   : > { %v869_v47 = vrot.slane %v868_v45, 2 }
  0x83   : > { %vm639_vm11 = vcmp.ne.s32.totalorder %v1700_v60, %v1997_v7  ;;  %vm640_vm12 = vcmp.ne.s32.totalorder %v1700_v60, %v2000_v8 }
  0x84   : > { %v2187_v48 = vld.sshfl [vmem:[#allocation1] sm:$0xff pattern:$0x73625140]  ;;  %v874_v52 = vsel %vm2053_vm1, %v869_v47, %v873_v49  ;;  %vm2264_vm13 = vmpackc.low %vm640_vm12, %vm639_vm11  ;;  %vm1186_vm11 = vcmask 424960   ;;  %vm1189_vm12 = vcmask 457728  }
  0x85   : > { %1065 = vst [vmem:[#allocation1] ss:$4 sm:$0xff] %v1983_v5  ;;  %v643_v7 = vsel %vm2264_vm13, %v626_v1, 0  ;;  %v644_v8 = vsel %vm2264_vm13, %v627_v3, 0 }
  0x86   : > { %1067 = vst [vmem:[#allocation1 + $0x1] ss:$4 sm:$0xff] %v2166_v25  ;;  %v661_v13 = vshrl.u32 %v644_v8, 16  ;;  %v657_v19 = vshll.u32 %v643_v7, 16  ;;  %v664_v22 = vshll.u32 %v644_v8, 16 }
  0x87   : > { %1069 = vst [vmem:[#allocation1 + $0x2] ss:$4 sm:$0xff] %v2171_v26 }
  0x88   : > { %1071 = vst [vmem:[#allocation1 + $0x3] ss:$4 sm:$0xff] %v2175_v27  ;;  %v663_v21 = vrot.slane %v661_v13, 7 }
  0x8f   : > { %v2200_v11 = vld.sshfl [vmem:[#allocation1] sm:$0xff pattern:$0x73625140] }
  0x90   : > { %1076 = vst [vmem:[#allocation1] ss:$4 sm:$0xff] %v2061_v9 }
  0x91   : > { %1079 = vst [vmem:[#allocation1 + $0x1] ss:$4 sm:$0xff] %v818_v6 }
  0x92   : > { %1082 = vst [vmem:[#allocation1 + $0x2] ss:$4 sm:$0xff] %v2198_v42 }
  0x93   : > { %1085 = vst [vmem:[#allocation1 + $0x3] ss:$4 sm:$0xff] %v2204_v12 }
  0x9a   : > { %v2218_v31 = vld.sshfl [vmem:[#allocation1] sm:$0xff pattern:$0x73625140] }
  0x9b   : > { %1090 = vst [vmem:[#allocation1] ss:$4 sm:$0xff] %v2093_v36 }
  0x9c   : > { %1093 = vst [vmem:[#allocation1 + $0x1] ss:$4 sm:$0xff] %v850_v29 }
  0x9d   : > { %1096 = vst [vmem:[#allocation1 + $0x2] ss:$4 sm:$0xff] %v2216_v30 }
  0x9e   : > { %1099 = vst [vmem:[#allocation1 + $0x3] ss:$4 sm:$0xff] %v2224_v33 }
  0xa5   : > { %v2231_v44 = vld.sshfl [vmem:[#allocation1] sm:$0xff pattern:$0x73625140] }
  0xa6   : > { %1104 = vst [vmem:[#allocation1] ss:$4 sm:$0xff] %v2166_v25  ;;  %v1710_v25 = vrot.slane %v624_v34, 9 }
  0xa7   : > { %1106 = vst [vmem:[#allocation1 + $0x1] ss:$4 sm:$0xff] %v2171_v26 }
  0xa8   : > { %1108 = vst [vmem:[#allocation1 + $0x2] ss:$4 sm:$0xff] %v2175_v27  ;;  %v878_v40 = vsel %vm2084_vm9, %v1710_v25, %v877_v53 }
  0xa9   : > { %1110 = vst [vmem:[#allocation1 + $0x3] ss:$4 sm:$0xff] %v624_v34 }
  0xb0   : > { %v2237_v51 = vld.sshfl [vmem:[#allocation1] sm:$0xff pattern:$0x73625140] }
  0xb1   : > { %1115 = vst [vmem:[#allocation1] ss:$4 sm:$0xff] %v818_v6  ;;  %v642_v6 = vsel %vm2264_vm13, %v625_v0, 0 }
  0xb2   : > { %1117 = vst [vmem:[#allocation1 + $0x1] ss:$4 sm:$0xff] %v2198_v42  ;;  %v650_v15 = vshll.u32 %v642_v6, 16 }
  0xb3   : > { %1119 = vst [vmem:[#allocation1 + $0x2] ss:$4 sm:$0xff] %v2204_v12 }
  0xb4   : > { %1122 = vst [vmem:[#allocation1 + $0x3] ss:$4 sm:$0xff] %v874_v52 }
  0xbb   : > { %v2244_v57 = vld.sshfl [vmem:[#allocation1] sm:$0xff pattern:$0x73625140] }
  0xbc   : > { %1127 = vst [vmem:[#allocation1] ss:$4 sm:$0xff] %v850_v29  ;;  %v666_v29 = vor.u32 %v664_v22, %v663_v21 }
  0xbd   : > { %1129 = vst [vmem:[#allocation1 + $0x1] ss:$4 sm:$0xff] %v2216_v30 }
  0xbe   : > { %1131 = vst [vmem:[#allocation1 + $0x2] ss:$4 sm:$0xff] %v2224_v33 }
  0xbf   : > { %1134 = vst [vmem:[#allocation1 + $0x3] ss:$4 sm:$0xff] %v878_v40 }
  0xc6   : > { %v2252_v62 = vld.sshfl [vmem:[#allocation1] sm:$0xff pattern:$0x73625140] }
  0xc7   : > { %1139 = vst [vmem:[#allocation1] ss:$4 sm:$0xff] %v2171_v26  ;;  %v647_v26 = vshrl.u32 %v642_v6, 16 }
  0xc8   : > { %1141 = vst [vmem:[#allocation1 + $0x1] ss:$4 sm:$0xff] %v2175_v27  ;;  %v654_v27 = vshrl.u32 %v643_v7, 16 }
  0xc9   : > { %1143 = vst [vmem:[#allocation1 + $0x2] ss:$4 sm:$0xff] %v624_v34  ;;  %v649_v14 = vrot.slane %v647_v26, 7 }
  0xca   : > { %1145 = vst [vmem:[#allocation1 + $0x3] ss:$4 sm:$0xff] %v1983_v5  ;;  %v656_v17 = vrot.slane %v654_v27, 7  ;;  %v628_v27 = vld [vmem:[%s2257_s13 + $0x6] sm:$0x3]  ;;  %s1893_s13 = smov 64  }
  0xcb   : > { %v652_v23 = vor.u32 %v650_v15, %v649_v14  ;;  %v645_v22 = vsel %vm2264_vm13, %v628_v27, 0  ;;  %vm1192_vm13 = vcmask 490496  }
  0xcc   : > { %v659_v16 = vor.u32 %v657_v19, %v656_v17 }
  0xcd   : > { %v678_v32 = vsel %vm1969_vm2, 0, %v652_v23 }
  0xce   : > { %v2294_v35 = vsel %vm1975_vm5, %v678_v32, 0  ;;  %v668_v32 = vshrl.u32 %v645_v22, 16 }
  0xcf   : > { %v889_v39 = vshll.u32 %v2294_v35, 16  ;;  %v882_v47 = vrot.slane %v2294_v35, 2 }
  0xd0   : > { %v670_v63 = vrot.slane %v668_v32, 7 }
  0xd1   : > { %v2277_v10 = vld.sshfl [vmem:[#allocation1] sm:$0xff pattern:$0x73625140]  ;;  %v895_v3 = vshll.u32 %v882_v47, 16 }
  0xd2   : > { %1195 = vst [vmem:[#allocation1] ss:$4 sm:$0xff] %v2198_v42  ;;  %v679_v42 = vsel %vm1969_vm2, 0, %v659_v16 }
  0xd3   : > { %1197 = vst [vmem:[#allocation1 + $0x1] ss:$4 sm:$0xff] %v2204_v12  ;;  %v680_v12 = vsel %vm1969_vm2, 0, %v666_v29  ;;  %v2298_v20 = vsel %vm1975_vm5, %v679_v42, 0  ;;  %v897_v14 = vrot.slane %v895_v3, 7 }
  0xd4   : > { %1199 = vst [vmem:[#allocation1 + $0x2] ss:$4 sm:$0xff] %v874_v52  ;;  %v2303_v37 = vsel %vm1975_vm5, %v680_v12, 0  ;;  %v903_v43 = vshll.u32 %v2298_v20, 16  ;;  %v891_v52 = vrot.slane %v889_v39, 7  ;;  %v883_v25 = vrot.slane %v2298_v20, 2 }
  0xd5   : > { %1201 = vst [vmem:[#allocation1 + $0x3] ss:$4 sm:$0xff] %v2061_v9  ;;  %v914_v45 = vshrl.u32 %v2303_v37, 16  ;;  %v917_v46 = vshll.u32 %v2303_v37, 16  ;;  %v884_v58 = vrot.slane %v2303_v37, 2  ;;  %v671_v12 = vshll.u32 %v645_v22, 16 }
  0xd6   : > { %v905_v54 = vrot.slane %v903_v43, 7  ;;  %v909_v7 = vshll.u32 %v883_v25, 16  ;;  %v929_v39 = vrot.slane %v882_v47, 7  ;;  %v933_v43 = vrot.slane %v883_v25, 7  ;;  %v1774_v22 = vld [vmem:[%s2469_s3 + $0x38] sm:$0xff] }
  0xd7   : > { %v916_v60 = vrot.slane %v914_v45, 6  ;;  %v919_v0 = vrot.slane %v917_v46, 7  ;;  %v923_v26 = vshll.u32 %v884_v58, 16  ;;  %v1713_v45 = vrot.slane %v2303_v37, 9  ;;  %1413 = vmatpush.bf16.msra.mxu0 %v1774_v22 }
  0xd8   : > { %v911_v17 = vrot.slane %v909_v7, 7  ;;  %v937_v46 = vrot.slane %v884_v58, 7 }
  0xd9   : > { %v920_v8 = vor.u32 %v919_v0, %v916_v60  ;;  %v925_v21 = vrot.slane %v923_v26, 7 }
  0xda   : > { %v938_v47 = vsel %vm2084_vm9, %v1713_v45, %v937_v46  ;;  %v1771_v45 = vld [vmem:[%s2469_s3 + $0x20] sm:$0xff] }
  0xdb   : > { %v921_v19 = vrot.slane %v920_v8, 2 }
  0xdc   : > { %v2284_v34 = vld.sshfl [vmem:[#allocation1] sm:$0xff pattern:$0x73625140] }
  0xdd   : > { %1203 = vst [vmem:[#allocation1] ss:$4 sm:$0xff] %v2216_v30  ;;  %v886_v30 = vshrl.u32 %v2294_v35, 16  ;;  %v2330_v42 = vsel %vm2053_vm1, %v921_v19, %v925_v21 }
  0xde   : > { %1205 = vst [vmem:[#allocation1 + $0x1] ss:$4 sm:$0xff] %v2224_v33  ;;  %v900_v33 = vshrl.u32 %v2298_v20, 16 }
  0xdf   : > { %1207 = vst [vmem:[#allocation1 + $0x2] ss:$4 sm:$0xff] %v878_v40  ;;  %v888_v49 = vrot.slane %v886_v30, 6  ;;  %v1711_v30 = vrot.slane %v2294_v35, 9 }
  0xe0   : > { %1209 = vst [vmem:[#allocation1 + $0x3] ss:$4 sm:$0xff] %v2093_v36  ;;  %v902_v53 = vrot.slane %v900_v33, 6  ;;  %v1712_v33 = vrot.slane %v2298_v20, 9 }
  0xe1   : > { %v892_v1 = vor.u32 %v891_v52, %v888_v49  ;;  %v673_v49 = vor.u32 %v671_v12, %v670_v63  ;;  %v930_v52 = vsel %vm2084_vm9, %v1711_v30, %v929_v39  ;;  %v1773_v30 = vld [vmem:[%s2469_s3 + $0x30] sm:$0xff] }
  0xe2   : > { %v906_v6 = vor.u32 %v905_v54, %v902_v53  ;;  %v934_v54 = vsel %vm2084_vm9, %v1712_v33, %v933_v43  ;;  %1414 = vmatpush.bf16.msra.mxu0 %v1773_v30  ;;  %v1772_v33 = vld [vmem:[%s2469_s3 + $0x28] sm:$0xff] }
  0xe3   : > { %v893_v13 = vrot.slane %v892_v1, 2  ;;  %v681_v25 = vsel %vm1969_vm2, 0, %v673_v49  ;;  %vm1150_vm2 = vcmask 31744  }
  0xe4   : > { %v907_v15 = vrot.slane %v906_v6, 2 }
  0xe5   : > { %v898_v23 = vsel %vm2053_vm1, %v893_v13, %v897_v14 }
  0xe6   : > { %v2326_v16 = vsel %vm2053_vm1, %v907_v15, %v911_v17  ;;  %1415 = vmatpush.bf16.msra.mxu0 %v1772_v33 }
  0xe7   : > { %v1210_v40 = vld.sshfl [vmem:[#allocation1] sm:$0xff pattern:$0x73625140] }
  0xe8   : > { %1212 = vrot.lane.b32.xlu0 %v1210_v40, %s1878_s30  ;;  %1214 = vst [vmem:[#allocation1] ss:$4 sm:$0xff] %v1983_v5  ;;  %v685_v40 = vsel %vm1975_vm5, %v681_v25, 0  ;;  %vm1153_vm5 = vcmask 64512   ;;  %v1769_v25 = vld [vmem:[%s2469_s3 + $0x10] sm:$0xff] }
  0xe9   : > { %1216 = vst [vmem:[#allocation1 + $0x1] ss:$4 sm:$0xff] %v2294_v35  ;;  %v942_v58 = vshrl.u32 %v685_v40, 16  ;;  %v945_v60 = vshll.u32 %v685_v40, 16  ;;  %v940_v1 = vrot.slane %v685_v40, 2 }
  0xea   : > { %1218 = vst [vmem:[#allocation1 + $0x2] ss:$4 sm:$0xff] %v2298_v20  ;;  %1416 = vmatpush.bf16.msra.mxu0 %v1771_v45 }
  0xeb   : > { %1220 = vst [vmem:[#allocation1 + $0x3] ss:$4 sm:$0xff] %v2303_v37  ;;  %v944_v3 = vrot.slane %v942_v58, 6  ;;  %v947_v6 = vrot.slane %v945_v60, 7  ;;  %v951_v7 = vshll.u32 %v940_v1, 16  ;;  %v957_v13 = vrot.slane %v940_v1, 7 }
  0xed   : > { %v948_v2 = vor.u32 %v947_v6, %v944_v3  ;;  %v953_v8 = vrot.slane %v951_v7, 7  ;;  %v1768_v6 = vld [vmem:[%s2469_s3 + $0x8] sm:$0xff] }
  0xef   : > { %v949_v4 = vrot.slane %v948_v2, 2  ;;  %v1767_v2 = vld [vmem:[%s2469_s3] sm:$0xff] }
  0xf1   : > { %v954_v27 = vsel %vm2053_vm1, %v949_v4, %v953_v8  ;;  %vm1162_vm1 = vcmask 162816  }
  0xf2   : > { %v1221_v29 = vld.sshfl [vmem:[#allocation1] sm:$0xff pattern:$0x73625140] }
  0xf3   : > { %1225 = vst [vmem:[#allocation1] ss:$4 sm:$0xff] %v2061_v9  ;;  %1223 = vrot.lane.b32.xlu0 %v1221_v29, %s1879_s14 }
  0xf4   : > { %1228 = vst [vmem:[#allocation1 + $0x1] ss:$4 sm:$0xff] %v898_v23 }
  0xf5   : > { %1231 = vst [vmem:[#allocation1 + $0x2] ss:$4 sm:$0xff] %v2326_v16 }
  0xf6   : > { %1234 = vst [vmem:[#allocation1 + $0x3] ss:$4 sm:$0xff] %v2330_v42 }
  0xfd   : > { %v1235_v53 = vld.sshfl [vmem:[#allocation1] sm:$0xff pattern:$0x73625140] }
  0xfe   : > { %1237 = vrot.lane.b32.xlu1 %v1235_v53, %s1880_s15  ;;  %1239 = vst [vmem:[#allocation1] ss:$4 sm:$0xff] %v2093_v36 }
  0xff   : > { %1242 = vst [vmem:[#allocation1 + $0x1] ss:$4 sm:$0xff] %v930_v52 }
 0x100   : > { %1245 = vst [vmem:[#allocation1 + $0x2] ss:$4 sm:$0xff] %v934_v54 }
 0x101   : > { %1248 = vst [vmem:[#allocation1 + $0x3] ss:$4 sm:$0xff] %v938_v47 }
 0x108   : > { %v1249_v0 = vld.sshfl [vmem:[#allocation1] sm:$0xff pattern:$0x73625140] }
 0x109   : > { %1251 = vrot.lane.b32.xlu1 %v1249_v0, %s1881_s16  ;;  %1253 = vst [vmem:[#allocation1] ss:$4 sm:$0xff] %v2294_v35  ;;  %v1714_v35 = vrot.slane %v685_v40, 9 }
 0x10a   : > { %1255 = vst [vmem:[#allocation1 + $0x1] ss:$4 sm:$0xff] %v2298_v20 }
 0x10b   : > { %1257 = vst [vmem:[#allocation1 + $0x2] ss:$4 sm:$0xff] %v2303_v37  ;;  %v958_v15 = vsel %vm2084_vm9, %v1714_v35, %v957_v13  ;;  %vm1180_vm9 = vcmask 359424  }
 0x10c   : > { %1259 = vst [vmem:[#allocation1 + $0x3] ss:$4 sm:$0xff] %v685_v40 }
 0x113   : > { %v1260_v26 = vld.sshfl [vmem:[#allocation1] sm:$0xff pattern:$0x73625140] }
 0x114   : > { %1264 = vst [vmem:[#allocation1] ss:$4 sm:$0xff] %v898_v23  ;;  %1262 = vrot.lane.b32.xlu2 %v1260_v26, %s1882_s17 }
 0x115   : > { %1266 = vst [vmem:[#allocation1 + $0x1] ss:$4 sm:$0xff] %v2326_v16 }
 0x116   : > { %1268 = vst [vmem:[#allocation1 + $0x2] ss:$4 sm:$0xff] %v2330_v42 }
 0x117   : > { %1271 = vst [vmem:[#allocation1 + $0x3] ss:$4 sm:$0xff] %v954_v27 }
 0x11e   : > { %v1272_v14 = vld.sshfl [vmem:[#allocation1] sm:$0xff pattern:$0x73625140] }
 0x11f   : > { %1276 = vst [vmem:[#allocation1] ss:$4 sm:$0xff] %v930_v52  ;;  %1274 = vrot.lane.b32.xlu2 %v1272_v14, %s1883_s18 }
 0x120   : > { %1278 = vst [vmem:[#allocation1 + $0x1] ss:$4 sm:$0xff] %v934_v54 }
 0x121   : > { %1280 = vst [vmem:[#allocation1 + $0x2] ss:$4 sm:$0xff] %v938_v47 }
 0x122   : > { %1283 = vst [vmem:[#allocation1 + $0x3] ss:$4 sm:$0xff] %v958_v15 }
 0x129   : > { %v1284_v55 = vld.sshfl [vmem:[#allocation1] sm:$0xff pattern:$0x73625140] }
 0x12a   : > { %1286 = vrot.lane.b32.xlu0 %v1284_v55, %s1884_s19  ;;  %1288 = vst [vmem:[#allocation1] ss:$4 sm:$0xff] %v2298_v20 }
 0x12b   : > { %1290 = vst [vmem:[#allocation1 + $0x1] ss:$4 sm:$0xff] %v2303_v37 }
 0x12c   : > { %1292 = vst [vmem:[#allocation1 + $0x2] ss:$4 sm:$0xff] %v685_v40 }
 0x12d   : > { %1294 = vst [vmem:[#allocation1 + $0x3] ss:$4 sm:$0xff] %v1983_v5 }
 0x134   : > { %v1295_v17 = vld.sshfl [vmem:[#allocation1] sm:$0xff pattern:$0x73625140] }
 0x135   : > { %1297 = vrot.lane.b32.xlu1 %v1295_v17, %s1885_s20  ;;  %1299 = vst [vmem:[#allocation1] ss:$4 sm:$0xff] %v2326_v16 }
 0x136   : > { %1301 = vst [vmem:[#allocation1 + $0x1] ss:$4 sm:$0xff] %v2330_v42 }
 0x137   : > { %1303 = vst [vmem:[#allocation1 + $0x2] ss:$4 sm:$0xff] %v954_v27 }
 0x138   : > { %1305 = vst [vmem:[#allocation1 + $0x3] ss:$4 sm:$0xff] %v2061_v9 }
 0x13d   : > { %980 = vrot.lane.b32.xlu1 %v2101_v38, %s1878_s30 }
 0x13f   : > { %v1306_v28 = vld.sshfl [vmem:[#allocation1] sm:$0xff pattern:$0x73625140] }
 0x140   : > { %1310 = vst [vmem:[#allocation1] ss:$4 sm:$0xff] %v934_v54  ;;  %1308 = vrot.lane.b32.xlu2 %v1306_v28, %s1886_s21 }
 0x141   : > { %1312 = vst [vmem:[#allocation1 + $0x1] ss:$4 sm:$0xff] %v938_v47  ;;  %v1770_v47 = vld [vmem:[%s2469_s3 + $0x18] sm:$0xff] }
 0x142   : > { %1314 = vst [vmem:[#allocation1 + $0x2] ss:$4 sm:$0xff] %v958_v15  ;;  %1417 = vmatpush.bf16.msra.mxu0 %v1770_v47 }
 0x143   : > { %1316 = vst [vmem:[#allocation1 + $0x3] ss:$4 sm:$0xff] %v2093_v36 }
 0x145   : > { %1018 = vrot.lane.b32.xlu1 %v2130_v59, %s1881_s16  ;;  %s1696_s16 = sshll.u32 %s2499_s25, 2 }
 0x146   : > { %1418 = vmatpush.bf16.msra.mxu0 %v1769_v25 }
 0x148   : > { %995 = vrot.lane.b32.xlu2 %v2114_v50, %s1879_s14 }
 0x14a   : > { %v1317_v5 = vld.sshfl [vmem:[#allocation1] sm:$0xff pattern:$0x73625140]  ;;  %1419 = vmatpush.bf16.msra.mxu0 %v1768_v6 }
 0x14b   : > { %1319 = vrot.lane.b32.xlu0 %v1317_v5, %s1887_s22 }
 0x14d   : > { %1052 = vrot.lane.b32.xlu1 %v2159_v24, %s1884_s19 }
 0x14e   : > { %1420 = vmatpush.bf16.msra.mxu0 %v1767_v2 }
 0x150   : > { %1030 = vrot.lane.b32.xlu2 %v2137_v61, %s1882_s17  ;;  %s499_s17 = sadd.s32 %s1696_s16, %s2513_s24 }
 0x153   : > { %1006 = vrot.lane.b32.xlu0 %v2122_v56, %s1880_s15 }
 0x155   : > { %1088 = vrot.lane.b32.xlu1 %v2218_v31, %s1887_s22 }
 0x158   : > { %1063 = vrot.lane.b32.xlu2 %v2187_v48, %s1885_s20 }
 0x15a   : > { %v1213_v36 = vpop.permute.xlu0 %1212 }
 0x15b   : > { %1041 = vrot.lane.b32.xlu0 %v2150_v41, %s1883_s18  ;;  %v1322_v50 = vsel %vm1150_vm2, %v2284_v34, %v1213_v36  ;;  %s1697_s18 = sshll.u32 %s499_s17, 1 }
 0x15d   : > { %1125 = vrot.lane.b32.xlu1 %v2244_v57, %s1888_s23 }
 0x160   : > { %1102 = vrot.lane.b32.xlu2 %v2231_v44, %s1889_s29 }
 0x163   : > { %1074 = vrot.lane.b32.xlu0 %v2200_v11, %s1886_s21  ;;  %s501_s21 = scalar_lea.vmem %s2473_s7, %s1697_s18 }
 0x165   : > { %v1224_v59 = vpop.permute.xlu0 %1223 }
 0x166   : > { %v1324_v41 = vsel %vm1153_vm5, %v1322_v50, %v1224_v59 }
 0x168   : > { %1137 = vrot.lane.b32.xlu2 %v2252_v62, %s1890_s8 }
 0x16b   : > { %1113 = vrot.lane.b32.xlu0 %v2237_v51, %s1891_s9 }
 0x16e   : > { %v1263_v38 = vpop.permute.xlu2 %1262 }
 0x170   : > { %v1238_v9 = vpop.permute.xlu1 %1237 }
 0x171   : > { %v1326_v24 = vsel %vm1156_vm14, %v1324_v41, %v1238_v9 }
 0x173   : > { %1148 = vrot.lane.b32.xlu0 %v2277_v10, %s1892_s10  ;;  %s1693_s10 = sshll.u32 %s2513_s24, 1 }
 0x174   : > { %s491_s12 = sadd.s32 %s1694_s11, %s1693_s10 }
 0x179   : > { %v1275_v61 = vpop.permute.xlu2 %1274 }
 0x17b   : > { %v1252_v56 = vpop.permute.xlu1 %1251 }
 0x17c   : > { %v1328_v48 = vsel %vm1159_vm15, %v1326_v24, %v1252_v56 }
 0x17d   : > { %v1330_v31 = vsel %vm1162_vm1, %v1328_v48, %v1263_v38 }
 0x17e   : > { %v1332_v51 = vsel %vm1165_vm3, %v1330_v31, %v1275_v61 }
 0x19a   : > { %v1309_v44 = vpop.permute.xlu2 %1308 }
 0x19c   : > { %v1287_v57 = vpop.permute.xlu0 %1286 }
 0x19d   : > { %v1334_v62 = vsel %vm1168_vm4, %v1332_v51, %v1287_v57 }
 0x1a2   : > { %v996_v34 = vpop.permute.xlu2 %995 }
 0x1a7   : > { %v1298_v11 = vpop.permute.xlu1 %1297 }
 0x1a8   : > { %v1336_v20 = vsel %vm1171_vm6, %v1334_v62, %v1298_v11 }
 0x1a9   : > { %v1338_v37 = vsel %vm1174_vm7, %v1336_v20, %v1309_v44 }
 0x1aa   : > { %v1031_v42 = vpop.permute.xlu2 %1030 }
 0x1af   : > { %v981_v10 = vpop.permute.xlu1 %980 }
 0x1b0   : > { %v1152_v16 = vsel %vm1150_vm2, %v2065_v18, %v981_v10  ;;  %vm1345_vm2 = vcmask 523264  }
 0x1b1   : > { %v1155_v32 = vsel %vm1153_vm5, %v1152_v16, %v996_v34 }
 0x1b2   : > { %v1064_v49 = vpop.permute.xlu2 %1063 }
 0x1b7   : > { %v1019_v29 = vpop.permute.xlu1 %1018 }
 0x1ba   : > { %v1103_v1 = vpop.permute.xlu2 %1102 }
 0x1bd   : > { %v1320_v19 = vpop.permute.xlu0 %1319 }
 0x1be   : > { %v1340_v21 = vsel %vm1177_vm8, %v1338_v37, %v1320_v19 }
 0x1bf   : > { %v1341_v23 = vsel %vm1180_vm9, %v1340_v21, 0  ;;  %v1053_v43 = vpop.permute.xlu1 %1052 }
 0x1c0   : > { %1343 = vrot.lane.b32.xlu1 %v1341_v23, %s1893_s13  ;;  %s1695_s13 = sshll.u32 %s491_s12, 2 }
 0x1c1   : > { %s493_s15 = scalar_lea.vmem %s2472_s6, %s1695_s13 }
 0x1c2   : > { %v1138_v27 = vpop.permute.xlu2 %1137 }
 0x1c5   : > { %v1007_v63 = vpop.permute.xlu0 %1006 }
 0x1c6   : > { %v1158_v12 = vsel %vm1156_vm14, %v1155_v32, %v1007_v63 }
 0x1c7   : > { %v1161_v39 = vsel %vm1159_vm15, %v1158_v12, %v1019_v29  ;;  %v1089_v60 = vpop.permute.xlu1 %1088 }
 0x1c8   : > { %v1164_v18 = vsel %vm1162_vm1, %v1161_v39, %v1031_v42 }
 0x1cd   : > { %v1042_v46 = vpop.permute.xlu0 %1041 }
 0x1ce   : > { %v1167_v52 = vsel %vm1165_vm3, %v1164_v18, %v1042_v46 }
 0x1cf   : > { %v1170_v53 = vsel %vm1168_vm4, %v1167_v52, %v1053_v43  ;;  %v1126_v8 = vpop.permute.xlu1 %1125 }
 0x1d0   : > { %v1173_v54 = vsel %vm1171_vm6, %v1170_v53, %v1064_v49 }
 0x1d5   : > { %v1075_v40 = vpop.permute.xlu0 %1074 }
 0x1d6   : > { %v1176_v58 = vsel %vm1174_vm7, %v1173_v54, %v1075_v40 }
 0x1d7   : > { %v1179_v0 = vsel %vm1177_vm8, %v1176_v58, %v1089_v60 }
 0x1d8   : > { %v1182_v3 = vsel %vm1180_vm9, %v1179_v0, %v1103_v1 }
 0x1dd   : > { %v1114_v7 = vpop.permute.xlu0 %1113 }
 0x1de   : > { %v1185_v4 = vsel %vm1183_vm10, %v1182_v3, %v1114_v7 }
 0x1df   : > { %v1188_v26 = vsel %vm1186_vm11, %v1185_v4, %v1126_v8 }
 0x1e0   : > { %v1191_v35 = vsel %vm1189_vm12, %v1188_v26, %v1138_v27 }
 0x1e5   : > { %v1149_v13 = vpop.permute.xlu0 %1148 }
 0x1e6   : > { %v1194_v14 = vsel %vm1192_vm13, %v1191_v35, %v1149_v13 }
 0x232   : > { %v1344_v15 = vpop.permute.xlu1 %1343 }
 0x233   : > { %v1347_v55 = vsel %vm1345_vm2, %v1194_v14, %v1344_v15 }
 0x234   : > { %1421 = vmatmul.bf16.vlgmr.msra.gmra.mxu0 %v1347_v55 }
 0x2b1   : > { %v1422_v17 = vpop.f32.mrf.mxu0 }
 0x2b2   : > { %v1438_v5 = vmul.f32 %v1422_v17, %v1422_v17 }
 0x2b9   : > { %v1424_v28 = vpop.f32.mrf.mxu0 }
 0x2ba   : > { %v1778_v9 = vpack.c.bf16 %v1424_v28, %v1422_v17  ;;  %v1431_v36 = vadd.f32 %v1424_v28, %v1422_v17  ;;  %v1439_v38 = vmul.f32 %v1424_v28, %v1424_v28 }
 0x2bc   : > { %1779 = vst [vmem:[%s493_s15] sm:$0xff] %v1778_v9   ;;  %v1432_v50 = vrot.slane %v1431_v36, 4  ;;  %v1440_v56 = vadd.f32 %v1439_v38, %v1438_v5 }
 0x2be   : > { %v1433_v59 = vadd.f32 %v1432_v50, %v1431_v36  ;;  %v1441_v61 = vrot.slane %v1440_v56, 4 }
 0x2c0   : > { %v1434_v41 = vrot.slane %v1433_v59, 2  ;;  %v1442_v24 = vadd.f32 %v1441_v61, %v1440_v56 }
 0x2c2   : > { %v1435_v48 = vadd.f32 %v1434_v41, %v1433_v59  ;;  %v1443_v11 = vrot.slane %v1442_v24, 2 }
 0x2c4   : > { %v1436_v31 = vrot.slane %v1435_v48, 1  ;;  %v1444_v44 = vadd.f32 %v1443_v11, %v1442_v24 }
 0x2c6   : > { %v1445_v51 = vrot.slane %v1444_v44, 1  ;;  %v1437_v57 = vadd.f32 %v1436_v31, %v1435_v48 }
 0x2c8   : > { %v1446_v62 = vadd.f32 %v1445_v51, %v1444_v44 }
 0x2ca   : > { %v1448_v10 = vsel %vm565_vm0, %v1437_v57, %v1446_v62 }
 0x2cb   : > { %1449 = vst [vmem:[%s501_s21] sm:$0x3] %v1448_v10 }
 0x2cc PF: > { %s18_s28 = sadd.s32 1, %s1875_s28   ;;  %s2486_s24 = smov %s1867_s26 }
 0x2cd   : > { %p15_p3 = scmp.ge.s32.totalorder %s18_s28, 10   ;;  %s2487_s25 = smov %s1871_s27 }
 0x2ce   : > { %s2488_s26 = smov %s2491_s4  ;;  %s2489_s27 = smov %s2495_s5 }
 0x2cf   :  { %17 = sbr.rel (!%p15_p3) target bundleno = 3 (0x3), region = 173 }

// kernel: down_forward.7
= control target key start
LH: loop header
LB: loop body
LE: loop exit
PB: predicated region body
PF: predicated region fallthrough
CT: control target
= control target key end

     0   :  { %8 = vsyncpa [#allocation3], 0  ;;  %s664_s0 = inlined_call_operand.vmem [shape: bf16[2,4,16,128], index: 0, kind: input, shape index: {}]   ;;  %s665_s1 = inlined_call_operand.vmem [shape: f32[1,128], index: 1, kind: input, shape index: {}]   ;;  %s666_s2 = inlined_call_operand.vmem [shape: f32[1,128], index: 2, kind: input, shape index: {}]   ;;  %s667_s3 = inlined_call_operand.hbm [shape: f32[2,4,16,128], index: 3, kind: output, shape index: {}]  }
   0x1   :  { %10 = vsyncpa [#allocation3 + $0x1], 0  ;;  %s532_s12 = smov 0   ;;  %s534_s13 = smov 0  }
   0x2   :  { %s536_s14 = smov 0   ;;  %s538_s15 = smov 0  }
   0x3   :  { %s540_s16 = smov 0   ;;  %s542_s17 = smov 0  }
   0x4   :  { %s544_s18 = smov 0   ;;  %s546_s19 = smov 0  }
   0x5 LB: > { %672 = sst [smem:[#allocation5_spill]] %s500_s17  ;;  %s320_s20 = sadd.s32 4294967295, %s508_s19   ;;  %s508_s19 = sphi %s546_s19, %s16_s19   ;;  %s504_s18 = sphi %s544_s18, %s681_s18   ;;  %s500_s17 = sphi %s542_s17, %s680_s17   ;;  %s496_s16 = sphi %s540_s16, %s679_s16   ;;  %s492_s15 = sphi %s538_s15, %s678_s15   ;;  %s488_s14 = sphi %s536_s14, %s684_s14   ;;  %s484_s13 = sphi %s534_s13, %s683_s13   ;;  %s480_s12 = sphi %s532_s12, %s682_s12  }
   0x6   : > { %673 = sst [smem:[#allocation6_spill]] %s504_s18  ;;  %s321_s21 = sadd.s32 4294967294, %s508_s19  }
   0x7   : > { %s25_s22 = sadd.s32 1, %s500_s17  ;;  %s28_s23 = sadd.s32 1, %s504_s18 }
   0x8   : > { %p26_p0 = scmp.ge.s32.totalorder %s25_s22, 4  ;;  %p117_p1 = scmp.ne.s32.totalorder %s488_s14, %s484_s13 }
   0x9   : > { %p118_p2 = scmp.eq.s32.totalorder %s320_s20, 7  ;;  %p123_p5 = scmp.ne.s32.totalorder %s484_s13, %s480_s12 }
   0xa   : > { %s686_s22 = smov (%p26_p0, %s25_s22), 0  ;;  %s688_s23 = smov (!%p26_p0, %s28_s23), %s504_s18 }
   0xb   : > { %674 = sst [smem:[#allocation7_spill]] %s686_s22  ;;  %s103_s24 = ssub.s32 %s500_s17, %s686_s22 }
   0xc   : > { %p583_p3 = por %p118_p2, %p117_p1  ;;  %p30_p4 = scmp.ge.s32.totalorder %s688_s23, 2 }
   0xd   : > { %p124_p6 = scmp.eq.s32.totalorder %s321_s21, 7  ;;  %p324_p7 = scmp.ge.s32.totalorder %s508_s19, 1 }
   0xe   : > { %s690_s23 = smov (%p30_p4, %s688_s23), 0  ;;  %p160_p9 = scmp.lt.s32.totalorder %s508_s19, 9 }
   0xf   : > { %676 = sst [smem:[#allocation8_spill]] %s690_s23  ;;  %p592_p8 = por %p124_p6, %p123_p5 }
  0x10   : > { %s102_s27 = ssub.s32 %s504_s18, %s690_s23  ;;  %s107_s28 = sadd.s32 1, %s488_s14 }
  0x11   : > { %s104_s29 = sor.u32 %s103_s24, %s102_s27  ;;  %p161_p10 = pnand %p324_p7, %p160_p9 }
  0x12   : > { %p105_p11 = scmp.eq.s32.totalorder %s104_s29, 0  ;;  %p188_p12 = scmp.lt.s32.totalorder (!%p161_p10), %s496_s16, 1 }
  0x13   : > { %164 = sbr.rel (%p161_p10) target bundleno = 45 (0x2d), region = 32  ;;  %p190_p13 = scmp.lt.s32.totalorder (!%p161_p10), %s492_s15, 3 }
  0x14   : > { %s601_s30 = scalar_select %p105_p11, %s488_s14, %s107_s28  }
  0x15   : > { %s185_s4 = sand.u32 (!%p161_p10), 1, %s484_s13   ;;  %s330_s11 = sshll.u32 (!%p161_p10), %s492_s15, 1 }
  0x16   : > { %s325_s8 = sshll.u32 (!%p161_p10), %s185_s4, 4  ;;  %s331_s21 = sshll.u32 (!%p161_p10), %s496_s16, 3 }
  0x17   : > { %s229_s22 = sadd.s32 (!%p161_p10), %s331_s21, %s330_s11  ;;  %s218_s17 = scalar_lea.sflag (!%p161_p10), [#allocation3], %s185_s4 }
  0x18   : > { %s189_s5 = scalar_select %p188_p12, %s496_s16, 1  ;;  %v412_v0 = vld [vmem:[%s665_s1] ss:$0 sm:$0xff] }
  0x19   : > { %s191_s6 = scalar_select %p190_p13, %s492_s15, 3  ;;  %v413_v3 = vld [vmem:[%s666_s2] ss:$0 sm:$0xff] }
  0x1a   : > { %s327_s7 = sshll.u32 %s189_s5, 3  ;;  %s332_s18 = sshll.u32 %s229_s22, 3 }
  0x1b   : > { %s326_s9 = sshll.u32 %s191_s6, 1  ;;  %s231_s6 = scalar_lea.hbm %s667_s3, %s332_s18 }
  0x1c   : > { %s194_s10 = sadd.s32 %s327_s7, %s326_s9  ;;  %s187_s7 = scalar_lea.vmem [#allocation2], %s325_s8 }
  0x1d   : > { %s328_s20 = sshll.u32 %s194_s10, 2  ;;  %s232_s23 = sshll.u32 %s187_s7, 4  ;;  %s233_s23 = int_to_ptr.vmem [resolvable:$true] %s232_s23 }
  0x1e   : > { %s196_s28 = scalar_lea.vmem %s664_s0, %s328_s20  ;;  %s234_s9 = sshll.u32 %s231_s6, 4  ;;  %s235_s9 = int_to_ptr.hbm [resolvable:$true] %s234_s9 }
  0x1f   : > { %v336_v1 = vld [vmem:[%s196_s28] sm:$0xff]   ;;  %s428_s22 = sshra.s32 %s235_s9, 4  ;;  %s434_s11 = scalar_lea.hbm %s667_s3, 128  ;;  %s429_s22 = int_to_ptr.hbm [resolvable:$true] %s428_s22 }
  0x20   : > { %v337_v2 = vunpack.c.l.bf16 %v336_v1  ;;  %v338_v4 = vunpack.c.h.bf16 %v336_v1  ;;  %s430_s10 = scalar_lea.hbm %s429_s22, 16  ;;  %p435_p4 = scmp.lt.s32.totalorder %s429_s22, %s667_s3 }
  0x21   : > { %p431_p0 = scmp.ne.s32.totalorder %s429_s22, %s430_s10  ;;  %p436_p5 = scmp.lt.s32.totalorder %s434_s11, %s430_s10 }
  0x22   : > { %v205_v5 = vmul.f32 %v412_v0, %v337_v2  ;;  %v206_v6 = vmul.f32 %v412_v0, %v338_v4 }
  0x23   : > { %p432_p1 = pnand %p431_p0, %p583_p3  ;;  %p437_p6 = por %p436_p5, %p435_p4 }
  0x24   : > { %v211_v7 = vadd.f32 %v413_v3, %v205_v5  ;;  %v212_v8 = vadd.f32 %v413_v3, %v206_v6 }
  0x25   : > { %p433_p2 = pneg %p432_p1 }
  0x26   : > { %v213_v9 = vmax.f32 %v211_v7, 0.0  ;;  %v214_v10 = vmax.f32 %v212_v8, 0.0 }
  0x27   : > { %p438_p7 = pnand %p437_p6, %p433_p2 }
  0x28   : > { %215 = vst [vmem:[%s187_s7] sm:$0xff] %v213_v9 }
  0x29   : > { %216 = vst [vmem:[%s187_s7 + $0x8] sm:$0xff] %v214_v10 }
  0x2a   : > { %441 = shalt.err (!%p438_p7)
}
  0x2b   : > { %s510_s4 = smov 128   ;;  %s511_s24 = smov 8  }
  0x2c   : > { %339 = dma.vmem_to_hbm [thread:$0]  (%p583_p3), %s233_s23, 256, %s235_s9, %s218_s17, %s510_s4, %s510_s4, %s511_s24  }
  0x2d PF: > { %p345_p9 = scmp.ge.s32.totalorder %s508_s19, 2  ;;  %s249_s27 = sand.u32 1, %s480_s12  }
  0x2e   : > { %s250_s28 = scalar_lea.sflag [#allocation3], %s249_s27 }
  0x2f   : > { %p342_p10 = pnand %p345_p9, %p592_p8 }
  0x31   : > { %p343_p11 = pneg %p342_p10 }
  0x33   : > { %475 = dma.done.wait (%p343_p11), %s250_s28, 256  }
  0x34   : > { %477 = vsyncadd (%p343_p11), %s250_s28, 4294967040  ;;  %s16_s19 = sadd.s32 1, %s508_s19   ;;  %s678_s15 = sld [smem:[#allocation5_spill]] }
  0x35   : > { %p13_p12 = scmp.ge.s32.totalorder %s16_s19, 10   ;;  %s679_s16 = sld [smem:[#allocation6_spill]] }
  0x36   : > { %s680_s17 = sld [smem:[#allocation7_spill]]  ;;  %s682_s12 = smov %s484_s13 }
  0x37   : > { %s681_s18 = sld [smem:[#allocation8_spill]]  ;;  %s683_s13 = smov %s488_s14 }
  0x38   : > { %s684_s14 = smov %s601_s30  ;;  %15 = sbr.rel (!%p13_p12) target bundleno = 5 (0x5), region = 67 }
  0x3d   :  { %256 = vsyncpa [#allocation3], 1 }
  0x3e   :  { %258 = vsyncpa [#allocation3 + $0x1], 1 }

// kernel: down_forward.6
= control target key start
LH: loop header
LB: loop body
LE: loop exit
PB: predicated region body
PF: predicated region fallthrough
CT: control target
= control target key end

     0   :  { %s4898_s24 = smov 0   ;;  %s4900_s25 = smov 0   ;;  %s6158_s0 = inlined_call_operand.vmem [shape: bf16[2,4,4,4,128], index: 0, kind: input, shape index: {}, may-alias: {0,1,2}]   ;;  %s6159_s1 = inlined_call_operand.vmem [shape: bf16[2,4,4,4,128], index: 1, kind: input, shape index: {}, may-alias: {0,1,2}]   ;;  %s6160_s2 = inlined_call_operand.vmem [shape: bf16[2,4,4,4,128], index: 2, kind: input, shape index: {}, may-alias: {0,1,2}]   ;;  %s6161_s3 = inlined_call_operand.vmem [shape: bf16[3456,128], index: 3, kind: input, shape index: {}]   ;;  %s6162_s4 = inlined_call_operand.vmem [shape: f32[1,128], index: 4, kind: input, shape index: {}]   ;;  %s6163_s5 = inlined_call_operand.vmem [shape: f32[1,128], index: 5, kind: input, shape index: {}]   ;;  %s6164_s6 = inlined_call_operand.vmem [shape: bf16[2,4,16,128], index: 6, kind: output, shape index: {0}]   ;;  %s6165_s7 = inlined_call_operand.vmem [shape: f32[2,4,2,128], index: 7, kind: output, shape index: {1}]  }
   0x1   :  { %s4902_s26 = smov 0   ;;  %s4904_s27 = smov 0  }
   0x2   :  { %s4906_s28 = smov 0  }
   0x3 LB: > { %s27_s29 = sadd.s32 1, %s4847_s26  ;;  %s30_s30 = sadd.s32 1, %s4851_s27  ;;  %s4855_s28 = sphi %s4906_s28, %s18_s28   ;;  %s4851_s27 = sphi %s4904_s27, %s6187_s27   ;;  %s4847_s26 = sphi %s4902_s26, %s6186_s26   ;;  %s4843_s25 = sphi %s4900_s25, %s6185_s25   ;;  %s4839_s24 = sphi %s4898_s24, %s6184_s24  }
   0x4   : > { %p28_p0 = scmp.ge.s32.totalorder %s27_s29, 4  ;;  %p3624_p1 = scmp.ge.s32.totalorder %s4855_s28, 1 }
   0x5   : > { %p350_p2 = scmp.lt.s32.totalorder %s4855_s28, 9 }
   0x6   : > { %s6189_s29 = smov (%p28_p0, %s27_s29), 0  ;;  %s6191_s30 = smov (!%p28_p0, %s30_s30), %s4851_s27 }
   0x7   : > { %p351_p3 = pnand %p3624_p1, %p350_p2  ;;  %p32_p4 = scmp.ge.s32.totalorder %s6191_s30, 2 }
   0x8   : > { %s430_s12 = sadd.s32 (!%p351_p3), 4294967295, %s4839_s24  ;;  %p435_p5 = scmp.lt.s32.totalorder (!%p351_p3), %s4843_s25, 1 }
   0x9   : > { %s6193_s30 = smov (%p32_p4, %s6191_s30), 0  ;;  %354 = sbr.rel (%p351_p3) target bundleno = 499 (0x1f3), region = 44 }
   0xa   : > { %p431_p6 = scmp.gt.s32.totalorder (!%p351_p3), %s430_s12, 0  ;;  %p3625_p7 = scmp.lt.s32.totalorder (!%p351_p3), %s430_s12, 3 }
   0xb   : > { %p535_p9 = scmp.ge.s32.totalorder (!%p351_p3), %s4839_s24, 1  ;;  %p449_p10 = scmp.gt.s32.totalorder (!%p351_p3), %s4839_s24, 0 }
   0xc   : > { %p3633_p11 = scmp.lt.s32.totalorder (!%p351_p3), %s4839_s24, 3  ;;  %s5595_s8 = sadd.s32 (!%p351_p3), 1, %s4839_s24 }
   0xd   : > { %p467_p13 = scmp.gt.s32.totalorder (!%p351_p3), %s5595_s8, 0  ;;  %p3641_p0 = scmp.lt.s32.totalorder (!%p351_p3), %s5595_s8, 3 }
   0xe   : > { %v4558_v0 = vld [vmem:[%s6161_s3 + $0x38] sm:$0xff]  ;;  %v4557_v2 = vld [vmem:[%s6161_s3 + $0x30] sm:$0xff]  ;;  %s6195_s12 = smov (!%p431_p6, %s430_s12), 0  ;;  %s6197_s25 = smov (!%p435_p5, %s4843_s25), 1  ;;  %v4556_v7 = vld [vmem:[%s6161_s3 + $0x28] sm:$0xff]  ;;  %v4857_v16 = vmov 0  }
   0xf   : > { %v4566_v1 = vld [vmem:[%s6161_s3 + $0x78] sm:$0xff]  ;;  %3005 = vmatpush.bf16.msra.mxu0 %v4558_v0  ;;  %v4565_v3 = vld [vmem:[%s6161_s3 + $0x70] sm:$0xff]  ;;  %s6199_s12 = smov (!%p3625_p7, %s6195_s12), 3  ;;  %v4564_v8 = vld [vmem:[%s6161_s3 + $0x68] sm:$0xff]  ;;  %s4971_s16 = sshll.u32 %s6197_s25, 4  ;;  %v546_v17 = vrot.slane %v4857_v16, 7 }
  0x10   : > { %3019 = vmatpush.bf16.msra.mxu1 %v4566_v1  ;;  %v4574_v4 = vld [vmem:[%s6161_s3 + $0xb8] sm:$0xff]  ;;  %v4573_v5 = vld [vmem:[%s6161_s3 + $0xb0] sm:$0xff]  ;;  %p437_p8 = scmp.lt.s32.totalorder %s6199_s12, 3  ;;  %v4572_v10 = vld [vmem:[%s6161_s3 + $0xa8] sm:$0xff]  ;;  %vm583_vm0 = vcmask 1040384   ;;  %vm591_vm1 = vcmask 1042432  }
  0x11   : > { %3033 = vmatpush.bf16.msra.mxu2 %v4574_v4  ;;  %v4582_v6 = vld [vmem:[%s6161_s3 + $0xf8] sm:$0xff]  ;;  %v4581_v9 = vld [vmem:[%s6161_s3 + $0xf0] sm:$0xff]  ;;  %v4555_v11 = vld [vmem:[%s6161_s3 + $0x20] sm:$0xff]  ;;  %vm584_vm2 = vsmask.f32 256  ;;  %vm806_vm14 = vcmask 1042434  }
  0x12   : > { %3047 = vmatpush.bf16.msra.mxu3 %v4582_v6  ;;  %s6201_s12 = smov (!%p437_p8, %s6199_s12), 3  ;;  %v4563_v12 = vld [vmem:[%s6161_s3 + $0x60] sm:$0xff]  ;;  %v4580_v13 = vld [vmem:[%s6161_s3 + $0xe8] sm:$0xff]  ;;  %v4554_v14 = vld [vmem:[%s6161_s3 + $0x18] sm:$0xff]  ;;  %vm592_vm3 = vsmask.f32 2304 }
  0x13   : > { %3006 = vmatpush.bf16.msra.mxu0 %v4557_v2  ;;  %s3630_s23 = sshll.u32 %s6201_s12, 2  ;;  %v4571_v15 = vld [vmem:[%s6161_s3 + $0xa0] sm:$0xff]  ;;  %v4562_v18 = vld [vmem:[%s6161_s3 + $0x58] sm:$0xff]  ;;  %vm5018_vm4 = vmand %vm583_vm0, %vm584_vm2  ;;  %vm743_vm7 = vsmask.f32 1280  ;;  %p687_p2 = scmp.le.s32.totalorder %s4839_s24, 2 }
  0x14   : > { %3020 = vmatpush.bf16.msra.mxu1 %v4565_v3  ;;  %s441_s13 = sadd.s32 %s4971_s16, %s3630_s23  ;;  %v4999_v19 = vld [vmem:[%s6162_s4] ss:$0 sm:$0xff]  ;;  %v4570_v20 = vld [vmem:[%s6161_s3 + $0x98] sm:$0xff]  ;;  %v4553_v31 = vld [vmem:[%s6161_s3 + $0x10] sm:$0xff]  ;;  %v586_v34 = vsel %vm5018_vm4, 0, %v546_v17  ;;  %s3650_s21 = sshll.u32 %s6197_s25, 3 }
  0x15   : > { %3034 = vmatpush.bf16.msra.mxu2 %v4573_v5  ;;  %s3632_s12 = sshll.u32 %s441_s13, 1  ;;  %v4579_v21 = vld [vmem:[%s6161_s3 + $0xe0] sm:$0xff]  ;;  %v4561_v32 = vld [vmem:[%s6161_s3 + $0x50] sm:$0xff]  ;;  %v4578_v36 = vld [vmem:[%s6161_s3 + $0xd8] sm:$0xff]  ;;  %vm744_vm8 = vsmask.f32 3336 }
  0x16   : > { %3048 = vmatpush.bf16.msra.mxu3 %v4581_v9  ;;  %s443_s19 = scalar_lea.vmem %s6158_s0, %s3632_s12  ;;  %v5014_v26 = vld [vmem:[%s6163_s5] ss:$0 sm:$0xff]  ;;  %vm5038_vm5 = vmand %vm591_vm1, %vm592_vm3  ;;  %v4569_v40 = vld [vmem:[%s6161_s3 + $0x90] sm:$0xff]  ;;  %vm746_vm9 = vsmask.f32 5392  ;;  %vm808_vm1 = vcmask 1044484  }
  0x17   : > { %3007 = vmatpush.bf16.msra.mxu0 %v4556_v7  ;;  %v503_v22 = vld [vmem:[%s443_s19] sm:$0x3]  ;;  %s5009_s10 = scalar_select %p535_p9, 1, 0  ;;  %v504_v23 = vld [vmem:[%s443_s19 + $0x2] sm:$0x3]  ;;  %vm5125_vm11 = vmor %vm743_vm7, %vm744_vm8 }
  0x18   : > { %3021 = vmatpush.bf16.msra.mxu1 %v4564_v8  ;;  %v505_v24 = vld [vmem:[%s443_s19 + $0x4] sm:$0x3]  ;;  %v507_v25 = vunpack.c.l.bf16 %v503_v22  ;;  %v508_v27 = vunpack.c.l.bf16 %v504_v23  ;;  %v506_v30 = vld [vmem:[%s443_s19 + $0x6] sm:$0x3]  ;;  %v5049_v43 = vsel %vm5038_vm5, %v586_v34, 0  ;;  %v4552_v47 = vld [vmem:[%s6161_s3 + $0x8] sm:$0xff] }
  0x19   : > { %3035 = vmatpush.bf16.msra.mxu2 %v4572_v10  ;;  %v509_v28 = vunpack.c.l.bf16 %v505_v24  ;;  %v510_v35 = vunpack.c.l.bf16 %v506_v30  ;;  %v537_v42 = vstv %s5009_s10  ;;  %1008 = vst [vmem:[#allocation1] ss:$4 sm:$0xff] %v5049_v43  ;;  %v751_v46 = vshrl.u32 %v5049_v43, 16  ;;  %v4560_v48 = vld [vmem:[%s6161_s3 + $0x48] sm:$0xff]  ;;  %v4577_v52 = vld [vmem:[%s6161_s3 + $0xd0] sm:$0xff]  ;;  %v4551_v63 = vld [vmem:[%s6161_s3] sm:$0xff] }
  0x1a   : > { %3049 = vmatpush.bf16.msra.mxu3 %v4580_v13  ;;  %v515_v33 = vmul.f32 %v4999_v19, %v507_v25  ;;  %v516_v37 = vmul.f32 %v4999_v19, %v508_v27  ;;  %v754_v50 = vshll.u32 %v5049_v43, 16  ;;  %vm5066_vm6 = vcmp.eq.s32.totalorder %v537_v42, 1  ;;  %v4568_v56 = vld [vmem:[%s6161_s3 + $0x88] sm:$0xff]  ;;  %v4559_v0 = vld [vmem:[%s6161_s3 + $0x40] sm:$0xff]  ;;  %v4590_v3 = vld [vmem:[%s6161_s3 + $0x138] sm:$0xff]  ;;  %s450_s14 = scalar_select %p449_p10, %s4839_s24, 0 }
  0x1b   : > { %3008 = vmatpush.bf16.msra.mxu0 %v4555_v11  ;;  %v517_v38 = vmul.f32 %v4999_v19, %v509_v28  ;;  %v518_v51 = vmul.f32 %v4999_v19, %v510_v35  ;;  %v739_v58 = vrot.slane %v5049_v43, 2  ;;  %v753_v61 = vrot.slane %v751_v46, 6  ;;  %v4598_v4 = vld [vmem:[%s6161_s3 + $0x178] sm:$0xff]  ;;  %v4567_v9 = vld [vmem:[%s6161_s3 + $0x80] sm:$0xff]  ;;  %v4576_v10 = vld [vmem:[%s6161_s3 + $0xc8] sm:$0xff]  ;;  %s6211_s24 = smov (!%p3633_p11, %s4839_s24), 3 }
  0x1c   : > { %3022 = vmatpush.bf16.msra.mxu1 %v4563_v12  ;;  %v523_v41 = vadd.f32 %v5014_v26, %v515_v33  ;;  %v524_v44 = vadd.f32 %v5014_v26, %v516_v37  ;;  %v756_v62 = vrot.slane %v754_v50, 7  ;;  %v4589_v23 = vld [vmem:[%s6161_s3 + $0x130] sm:$0xff]  ;;  %v4575_v27 = vld [vmem:[%s6161_s3 + $0xc0] sm:$0xff]  ;;  %vm748_vm10 = vsmask.f32 7448  ;;  %v4588_v37 = vld [vmem:[%s6161_s3 + $0x128] sm:$0xff] }
  0x1d   : > { %3036 = vmatpush.bf16.msra.mxu2 %v4571_v15  ;;  %v525_v45 = vadd.f32 %v5014_v26, %v517_v38  ;;  %v526_v2 = vadd.f32 %v5014_v26, %v518_v51  ;;  %v4606_v15 = vld [vmem:[%s6161_s3 + $0x1b8] sm:$0xff]  ;;  %v4597_v24 = vld [vmem:[%s6161_s3 + $0x170] sm:$0xff]  ;;  %v4596_v38 = vld [vmem:[%s6161_s3 + $0x168] sm:$0xff]  ;;  %vm810_vm3 = vcmask 1046534   ;;  %s6203_s14 = smov (!%p3633_p11, %s450_s14), 3  ;;  %s3649_s20 = sshll.u32 %s6211_s24, 1 }
  0x1e   : > { %3050 = vmatpush.bf16.msra.mxu3 %v4579_v21  ;;  %v527_v49 = vmax.f32 %v523_v41, 0.0  ;;  %v528_v53 = vmax.f32 %v524_v44, 0.0  ;;  %v757_v17 = vor.u32 %v756_v62, %v753_v61  ;;  %v4613_v46 = vld [vmem:[%s6161_s3 + $0x1f0] sm:$0xff]  ;;  %vm5167_vm12 = vmor %vm5125_vm11, %vm746_vm9  ;;  %v4594_v55 = vld [vmem:[%s6161_s3 + $0x158] sm:$0xff]  ;;  %p455_p12 = scmp.lt.s32.totalorder %s6203_s14, 3 }
  0x1f   : > { %3009 = vmatpush.bf16.msra.mxu0 %v4554_v14  ;;  %v529_v54 = vmax.f32 %v525_v45, 0.0  ;;  %v530_v22 = vmax.f32 %v526_v2, 0.0  ;;  %v4604_v45 = vld [vmem:[%s6161_s3 + $0x1a8] sm:$0xff]  ;;  %v4587_v2 = vld [vmem:[%s6161_s3 + $0x120] sm:$0xff]  ;;  %vm5190_vm13 = vmor %vm5167_vm12, %vm748_vm10  ;;  %s688_s10 = scalar_select %p687_p2, 1, 0 }
  0x20   : > { %3023 = vmatpush.bf16.msra.mxu1 %v4562_v18  ;;  %v531_v57 = vpack.c.bf16 %v527_v49, %v527_v49  ;;  %v532_v59 = vpack.c.bf16 %v528_v53, %v528_v53  ;;  %v5104_v18 = vshll.u32 %v739_v58, 16  ;;  %v758_v35 = vrot.slane %v757_v17, 2  ;;  %vm5220_vm15 = vmor %vm583_vm0, %vm806_vm14  ;;  %v4585_v34 = vld [vmem:[%s6161_s3 + $0x110] sm:$0xff]  ;;  %v4592_v53 = vld [vmem:[%s6161_s3 + $0x148] sm:$0xff]  ;;  %s6205_s14 = smov (!%p455_p12, %s6203_s14), 3 }
  0x21   : > { %3037 = vmatpush.bf16.msra.mxu2 %v4570_v20  ;;  %v533_v60 = vpack.c.bf16 %v529_v54, %v529_v54  ;;  %v534_v44 = vpack.c.bf16 %v530_v22, %v530_v22  ;;  %vm809_vm2 = vmor %vm5220_vm15, %vm808_vm1  ;;  %s3638_s11 = sshll.u32 %s6205_s14, 2  ;;  %v4755_v39 = vld [vmem:[%s6161_s3 + $0x660] sm:$0xff] }
  0x22   : > { %3051 = vmatpush.bf16.msra.mxu3 %v4578_v36  ;;  %v539_v1 = vsel %vm5066_vm6, %v531_v57, 0  ;;  %v540_v5 = vsel %vm5066_vm6, %v532_v59, 0  ;;  %v762_v36 = vrot.slane %v5104_v18, 7  ;;  %s459_s18 = sadd.s32 %s3638_s11, %s4971_s16  ;;  %s3652_s11 = sshll.u32 %s6197_s25, 2 }
  0x23   : > { %3010 = vmatpush.bf16.msra.mxu0 %v4553_v31  ;;  %v541_v6 = vsel %vm5066_vm6, %v533_v60, 0  ;;  %v551_v7 = vshrl.u32 %v539_v1, 16  ;;  %v554_v8 = vshll.u32 %v539_v1, 16  ;;  %v558_v11 = vshrl.u32 %v540_v5, 16  ;;  %v4605_v31 = vld [vmem:[%s6161_s3 + $0x1b0] sm:$0xff]  ;;  %s3640_s14 = sshll.u32 %s459_s18, 1  ;;  %s499_s15 = sadd.s32 %s3652_s11, %s6211_s24 }
  0x24   : > { %3024 = vmatpush.bf16.msra.mxu1 %v4561_v32  ;;  %v561_v12 = vshll.u32 %v540_v5, 16  ;;  %v565_v13 = vshrl.u32 %v541_v6, 16  ;;  %v568_v14 = vshll.u32 %v541_v6, 16  ;;  %v4614_v32 = vld [vmem:[%s6161_s3 + $0x1f8] sm:$0xff]  ;;  %s5401_s23 = scalar_lea.vmem %s6159_s1, %s3640_s14  ;;  %s3653_s12 = sshll.u32 %s499_s15, 1 }
  0x25   : > { %3038 = vmatpush.bf16.msra.mxu2 %v4569_v40  ;;  %v553_v16 = vrot.slane %v551_v7, 7  ;;  %v560_v20 = vrot.slane %v558_v11, 7  ;;  %v4603_v11 = vld [vmem:[%s6161_s3 + $0x1a0] sm:$0xff] }
  0x26   : > { %3052 = vmatpush.bf16.msra.mxu3 %v4577_v52  ;;  %v567_v21 = vrot.slane %v565_v13, 7 }
  0x27   : > { %3011 = vmatpush.bf16.msra.mxu0 %v4552_v47  ;;  %v556_v25 = vor.u32 %v554_v8, %v553_v16  ;;  %v563_v28 = vor.u32 %v561_v12, %v560_v20  ;;  %v5206_v16 = vsel %vm5190_vm13, %v758_v35, %v762_v36  ;;  %v4593_v35 = vld [vmem:[%s6161_s3 + $0x150] sm:$0xff] }
  0x28   : > { %3025 = vmatpush.bf16.msra.mxu1 %v4560_v48  ;;  %v570_v30 = vor.u32 %v568_v14, %v567_v21  ;;  %v542_v14 = vsel %vm5066_vm6, %v534_v44, 0  ;;  %v4586_v21 = vld [vmem:[%s6161_s3 + $0x118] sm:$0xff]  ;;  %vm5257_vm6 = vmor %vm809_vm2, %vm810_vm3 }
  0x29   : > { %3039 = vmatpush.bf16.msra.mxu2 %v4568_v56  ;;  %v587_v33 = vsel %vm5018_vm4, 0, %v556_v25  ;;  %v588_v40 = vsel %vm5018_vm4, 0, %v563_v28  ;;  %v572_v28 = vshrl.u32 %v542_v14, 16 }
  0x2a   : > { %3053 = vmatpush.bf16.msra.mxu3 %v4576_v10  ;;  %v589_v41 = vsel %vm5018_vm4, 0, %v570_v30  ;;  %v5142_v42 = vsel %vm5038_vm5, %v587_v33, 0  ;;  %v5152_v47 = vsel %vm5038_vm5, %v588_v40, 0  ;;  %v4602_v30 = vld [vmem:[%s6161_s3 + $0x198] sm:$0xff]  ;;  %v4611_v33 = vld [vmem:[%s6161_s3 + $0x1e0] sm:$0xff]  ;;  %v3654_v40 = vrot.slane %v5049_v43, 9 }
  0x2b   : > { %3012 = vmatpush.bf16.msra.mxu0 %v4551_v63  ;;  %v5156_v48 = vsel %vm5038_vm5, %v589_v41, 0  ;;  %1010 = vst [vmem:[#allocation1 + $0x1] ss:$4 sm:$0xff] %v5142_v42  ;;  %v740_v49 = vrot.slane %v5142_v42, 2  ;;  %v765_v50 = vshrl.u32 %v5142_v42, 16  ;;  %v741_v51 = vrot.slane %v5152_v47, 2 }
  0x2c   : > { %3026 = vmatpush.bf16.msra.mxu1 %v4559_v0  ;;  %1012 = vst [vmem:[#allocation1 + $0x2] ss:$4 sm:$0xff] %v5152_v47  ;;  %v742_v52 = vrot.slane %v5156_v48, 2  ;;  %v768_v54 = vshll.u32 %v5142_v42, 16  ;;  %v779_v56 = vshrl.u32 %v5152_v47, 16  ;;  %v782_v60 = vshll.u32 %v5152_v47, 16 }
  0x2d   : > { %3040 = vmatpush.bf16.msra.mxu2 %v4567_v9  ;;  %1014 = vst [vmem:[#allocation1 + $0x3] ss:$4 sm:$0xff] %v5156_v48  ;;  %v767_v57 = vrot.slane %v765_v50, 6  ;;  %v774_v59 = vshll.u32 %v740_v49, 16  ;;  %v793_v61 = vshrl.u32 %v5156_v48, 16  ;;  %v788_v0 = vshll.u32 %v741_v51, 16 }
  0x2e   : > { %3054 = vmatpush.bf16.msra.mxu3 %v4575_v27  ;;  %v770_v62 = vrot.slane %v768_v54, 7  ;;  %v781_v63 = vrot.slane %v779_v56, 6  ;;  %v796_v1 = vshll.u32 %v5156_v48, 16  ;;  %v784_v5 = vrot.slane %v782_v60, 7  ;;  %v4610_v50 = vld [vmem:[%s6161_s3 + $0x1d8] sm:$0xff] }
  0x2f   : > { %3061 = vmatpush.bf16.msrb.mxu0 %v4590_v3  ;;  %v4595_v3 = vld [vmem:[%s6161_s3 + $0x160] sm:$0xff]  ;;  %v795_v6 = vrot.slane %v793_v61, 6  ;;  %v802_v7 = vshll.u32 %v742_v52, 16  ;;  %v776_v9 = vrot.slane %v774_v59, 7  ;;  %v790_v13 = vrot.slane %v788_v0, 7  ;;  %v4600_v61 = vld [vmem:[%s6161_s3 + $0x188] sm:$0xff] }
  0x30   : > { %3075 = vmatpush.bf16.msrb.mxu1 %v4598_v4  ;;  %v771_v8 = vor.u32 %v770_v62, %v767_v57  ;;  %v798_v10 = vrot.slane %v796_v1, 7  ;;  %v785_v12 = vor.u32 %v784_v5, %v781_v63  ;;  %v574_v36 = vrot.slane %v572_v28, 7  ;;  %v4583_v62 = vld [vmem:[%s6161_s3 + $0x100] sm:$0xff] }
  0x31   : > { %3089 = vmatpush.bf16.msrb.mxu2 %v4606_v15  ;;  %v4612_v15 = vld [vmem:[%s6161_s3 + $0x1e8] sm:$0xff]  ;;  %v804_v20 = vrot.slane %v802_v7, 7  ;;  %v814_v41 = vrot.slane %v739_v58, 7  ;;  %v3656_v54 = vrot.slane %v5152_v47, 9  ;;  %v822_v56 = vrot.slane %v741_v51, 7  ;;  %v4591_v0 = vld [vmem:[%s6161_s3 + $0x140] sm:$0xff] }
  0x32   : > { %3103 = vmatpush.bf16.msrb.mxu3 %v4614_v32  ;;  %v772_v17 = vrot.slane %v771_v8, 2  ;;  %v799_v18 = vor.u32 %v798_v10, %v795_v6  ;;  %v786_v22 = vrot.slane %v785_v12, 2  ;;  %v4584_v58 = vld [vmem:[%s6161_s3 + $0x108] sm:$0xff]  ;;  %v826_v57 = vrot.slane %v742_v52, 7  ;;  %v4609_v52 = vld [vmem:[%s6161_s3 + $0x1d0] sm:$0xff]  ;;  %v4599_v7 = vld [vmem:[%s6161_s3 + $0x180] sm:$0xff] }
  0x33   : > { %3062 = vmatpush.bf16.msrb.mxu0 %v4589_v23  ;;  %v5281_v60 = vsel %vm5257_vm6, %v3654_v40, %v814_v41  ;;  %v5302_v1 = vsel %vm5257_vm6, %v3656_v54, %v822_v56  ;;  %v4608_v8 = vld [vmem:[%s6161_s3 + $0x1c8] sm:$0xff]  ;;  %v4621_v10 = vld [vmem:[%s6161_s3 + $0x230] sm:$0xff]  ;;  %v4607_v28 = vld [vmem:[%s6161_s3 + $0x1c0] sm:$0xff] }
  0x34   : > { %3076 = vmatpush.bf16.msrb.mxu1 %v4597_v24  ;;  %v1015_v23 = vld.sshfl [vmem:[#allocation1] sm:$0xff pattern:$0x73625140]  ;;  %v5216_v24 = vsel %vm5190_vm13, %v772_v17, %v776_v9  ;;  %v800_v25 = vrot.slane %v799_v18, 2  ;;  %v4638_v17 = vld [vmem:[%s6161_s3 + $0x2b8] sm:$0xff] }
  0x35   : > { %3090 = vmatpush.bf16.msrb.mxu2 %v4605_v31  ;;  %3013 = vmatmul.bf16.vlgmr.msra.gmra.mxu0 %v1015_v23  ;;  %v5229_v31 = vsel %vm5190_vm13, %v786_v22, %v790_v13  ;;  %1018 = vst [vmem:[#allocation1] ss:$4 sm:$0xff] %v5206_v16  ;;  %v4619_v22 = vld [vmem:[%s6161_s3 + $0x220] sm:$0xff] }
  0x36   : > { %3104 = vmatpush.bf16.msrb.mxu3 %v4613_v46  ;;  %v5234_v32 = vsel %vm5190_vm13, %v800_v25, %v804_v20  ;;  %1021 = vst [vmem:[#allocation1 + $0x1] ss:$4 sm:$0xff] %v5216_v24  ;;  %v818_v46 = vrot.slane %v740_v49, 7  ;;  %v3657_v49 = vrot.slane %v5156_v48, 9  ;;  %v4627_v23 = vld [vmem:[%s6161_s3 + $0x260] sm:$0xff]  ;;  %v4637_v25 = vld [vmem:[%s6161_s3 + $0x2b0] sm:$0xff] }
  0x37   : > { %3063 = vmatpush.bf16.msrb.mxu0 %v4588_v37  ;;  %1024 = vst [vmem:[#allocation1 + $0x2] ss:$4 sm:$0xff] %v5229_v31  ;;  %v575_v37 = vshll.u32 %v542_v14, 16  ;;  %v4620_v14 = vld [vmem:[%s6161_s3 + $0x228] sm:$0xff]  ;;  %v4751_v4 = vld [vmem:[%s6161_s3 + $0x640] sm:$0xff] }
  0x38   : > { %3077 = vmatpush.bf16.msrb.mxu1 %v4596_v38  ;;  %1027 = vst [vmem:[#allocation1 + $0x3] ss:$4 sm:$0xff] %v5234_v32  ;;  %v4601_v38 = vld [vmem:[%s6161_s3 + $0x190] sm:$0xff]  ;;  %v5312_v5 = vsel %vm5257_vm6, %v3657_v49, %v826_v57 }
  0x39   : > { %3091 = vmatpush.bf16.msrb.mxu2 %v4604_v45  ;;  %v3655_v45 = vrot.slane %v5142_v42, 9  ;;  %v577_v59 = vor.u32 %v575_v37, %v574_v36  ;;  %v4646_v37 = vld [vmem:[%s6161_s3 + $0x2f8] sm:$0xff] }
  0x3a   : > { %3105 = vmatpush.bf16.msrb.mxu3 %v4612_v15  ;;  %v4628_v15 = vld [vmem:[%s6161_s3 + $0x268] sm:$0xff] }
  0x3b   : > { %3064 = vmatpush.bf16.msrb.mxu0 %v4587_v2  ;;  %v5289_v51 = vsel %vm5257_vm6, %v3655_v45, %v818_v46  ;;  %v4622_v2 = vld [vmem:[%s6161_s3 + $0x238] sm:$0xff]  ;;  %v590_v6 = vsel %vm5018_vm4, 0, %v577_v59  ;;  %v4616_v45 = vld [vmem:[%s6161_s3 + $0x208] sm:$0xff] }
  0x3c   : > { %3078 = vmatpush.bf16.msrb.mxu1 %v4595_v3  ;;  %v4630_v3 = vld [vmem:[%s6161_s3 + $0x278] sm:$0xff]  ;;  %v5332_v9 = vsel %vm5038_vm5, %v590_v6, 0 }
  0x3d   : > { %3092 = vmatpush.bf16.msrb.mxu2 %v4603_v11  ;;  %v4629_v11 = vld [vmem:[%s6161_s3 + $0x270] sm:$0xff]  ;;  %v831_v12 = vshrl.u32 %v5332_v9, 16  ;;  %v834_v13 = vshll.u32 %v5332_v9, 16  ;;  %v829_v20 = vrot.slane %v5332_v9, 2  ;;  %v4634_v6 = vld [vmem:[%s6161_s3 + $0x298] sm:$0xff] }
  0x3e   : > { %3106 = vmatpush.bf16.msrb.mxu3 %v4611_v33  ;;  %v4626_v33 = vld [vmem:[%s6161_s3 + $0x258] sm:$0xff] }
  0x3f   : > { %3065 = vmatpush.bf16.msrb.mxu0 %v4586_v21  ;;  %v1028_v63 = vld.sshfl [vmem:[#allocation1] sm:$0xff pattern:$0x73625140]  ;;  %v833_v21 = vrot.slane %v831_v12, 6  ;;  %v840_v27 = vshll.u32 %v829_v20, 16  ;;  %v846_v46 = vrot.slane %v829_v20, 7 }
  0x40   : > { %3079 = vmatpush.bf16.msrb.mxu1 %v4594_v55  ;;  %1031 = vst [vmem:[#allocation1] ss:$4 sm:$0xff] %v5281_v60  ;;  %v836_v55 = vrot.slane %v834_v13, 7 }
  0x41   : > { %3093 = vmatpush.bf16.msrb.mxu2 %v4602_v30  ;;  %3027 = vmatmul.bf16.vlgmr.msra.gmra.mxu1 %v1028_v63  ;;  %1034 = vst [vmem:[#allocation1 + $0x1] ss:$4 sm:$0xff] %v5289_v51  ;;  %v4618_v30 = vld [vmem:[%s6161_s3 + $0x218] sm:$0xff]  ;;  %v842_v36 = vrot.slane %v840_v27, 7 }
  0x42   : > { %3107 = vmatpush.bf16.msrb.mxu3 %v4610_v50  ;;  %1037 = vst [vmem:[#allocation1 + $0x2] ss:$4 sm:$0xff] %v5302_v1  ;;  %v599_v50 = vld [vmem:[%s5401_s23] sm:$0x3] }
  0x43   : > { %3066 = vmatpush.bf16.msrb.mxu0 %v4585_v34  ;;  %1040 = vst [vmem:[#allocation1 + $0x3] ss:$4 sm:$0xff] %v5312_v5  ;;  %v4636_v34 = vld [vmem:[%s6161_s3 + $0x2a8] sm:$0xff]  ;;  %v603_v56 = vunpack.c.l.bf16 %v599_v50 }
  0x44   : > { %3080 = vmatpush.bf16.msrb.mxu1 %v4593_v35 }
  0x45   : > { %3094 = vmatpush.bf16.msrb.mxu2 %v4601_v38  ;;  %v4617_v38 = vld [vmem:[%s6161_s3 + $0x210] sm:$0xff] }
  0x46   : > { %3108 = vmatpush.bf16.msrb.mxu3 %v4609_v52  ;;  %v4625_v52 = vld [vmem:[%s6161_s3 + $0x250] sm:$0xff] }
  0x47   : > { %3067 = vmatpush.bf16.msrb.mxu0 %v4584_v58  ;;  %v600_v58 = vld [vmem:[%s5401_s23 + $0x2] sm:$0x3] }
  0x48   : > { %3081 = vmatpush.bf16.msrb.mxu1 %v4592_v53  ;;  %v601_v53 = vld [vmem:[%s5401_s23 + $0x4] sm:$0x3]  ;;  %v604_v57 = vunpack.c.l.bf16 %v600_v58 }
  0x49   : > { %3095 = vmatpush.bf16.msrb.mxu2 %v4600_v61  ;;  %v605_v59 = vunpack.c.l.bf16 %v601_v53  ;;  %v607_v61 = vmul.f32 %v4999_v19, %v603_v56  ;;  %v602_v53 = vld [vmem:[%s5401_s23 + $0x6] sm:$0x3]  ;;  %s468_s23 = scalar_select %p467_p13, %s5595_s8, 0 }
  0x4a   : > { %3109 = vmatpush.bf16.msrb.mxu3 %v4608_v8  ;;  %v1041_v18 = vld.sshfl [vmem:[#allocation1] sm:$0xff pattern:$0x73625140]  ;;  %v608_v63 = vmul.f32 %v4999_v19, %v604_v57  ;;  %v4644_v8 = vld [vmem:[%s6161_s3 + $0x2e8] sm:$0xff] }
  0x4b   : > { %3068 = vmatpush.bf16.msrb.mxu0 %v4583_v62  ;;  %3041 = vmatmul.bf16.vlgmr.msra.gmra.mxu2 %v1041_v18  ;;  %1043 = vst [vmem:[#allocation1] ss:$4 sm:$0xff] %v5142_v42  ;;  %v837_v42 = vor.u32 %v836_v55, %v833_v21  ;;  %v4645_v62 = vld [vmem:[%s6161_s3 + $0x2f0] sm:$0xff]  ;;  %v4643_v18 = vld [vmem:[%s6161_s3 + $0x2e0] sm:$0xff]  ;;  %s6207_s23 = smov (!%p3641_p0, %s468_s23), 3 }
  0x4c   : > { %3082 = vmatpush.bf16.msrb.mxu1 %v4591_v0  ;;  %1045 = vst [vmem:[#allocation1 + $0x1] ss:$4 sm:$0xff] %v5152_v47  ;;  %v4615_v0 = vld [vmem:[%s6161_s3 + $0x200] sm:$0xff]  ;;  %p473_p1 = scmp.lt.s32.totalorder %s6207_s23, 3 }
  0x4d   : > { %3096 = vmatpush.bf16.msrb.mxu2 %v4599_v7  ;;  %1047 = vst [vmem:[#allocation1 + $0x2] ss:$4 sm:$0xff] %v5156_v48  ;;  %v838_v35 = vrot.slane %v837_v42, 2  ;;  %v4654_v7 = vld [vmem:[%s6161_s3 + $0x338] sm:$0xff] }
  0x4e   : > { %1049 = vst [vmem:[#allocation1 + $0x3] ss:$4 sm:$0xff] %v5332_v9  ;;  %3110 = vmatpush.bf16.msrb.mxu3 %v4607_v28  ;;  %v4642_v28 = vld [vmem:[%s6161_s3 + $0x2d8] sm:$0xff]  ;;  %s6209_s23 = smov (!%p473_p1, %s6207_s23), 3 }
  0x4f   : > { %3117 = vmatpush.bf16.msra.mxu0 %v4622_v2  ;;  %v5390_v41 = vsel %vm5190_vm13, %v838_v35, %v842_v36  ;;  %v609_v2 = vmul.f32 %v4999_v19, %v605_v59  ;;  %v4640_v59 = vld [vmem:[%s6161_s3 + $0x2c8] sm:$0xff]  ;;  %s3646_s13 = sshll.u32 %s6209_s23, 2  ;;  %s491_s23 = sadd.s32 %s3650_s21, %s3649_s20 }
  0x50   : > { %3131 = vmatpush.bf16.msra.mxu1 %v4630_v3  ;;  %v4624_v3 = vld [vmem:[%s6161_s3 + $0x248] sm:$0xff]  ;;  %s477_s17 = sadd.s32 %s3646_s13, %s4971_s16  ;;  %s3651_s22 = sshll.u32 %s491_s23, 2 }
  0x51   : > { %3145 = vmatpush.bf16.msra.mxu2 %v4638_v17  ;;  %v613_v12 = vadd.f32 %v5014_v26, %v609_v2  ;;  %v4633_v17 = vld [vmem:[%s6161_s3 + $0x290] sm:$0xff]  ;;  %s3648_s18 = sshll.u32 %s477_s17, 1  ;;  %s493_s8 = scalar_lea.vmem %s6164_s6, %s3651_s22 }
  0x52   : > { %s5725_s16 = scalar_lea.vmem %s6160_s2, %s3648_s18  ;;  %s501_s18 = scalar_lea.vmem %s6165_s7, %s3653_s12 }
  0x53   : > { %3118 = vmatpush.bf16.msra.mxu0 %v4621_v10  ;;  %v611_v10 = vadd.f32 %v5014_v26, %v607_v61  ;;  %v4650_v61 = vld [vmem:[%s6161_s3 + $0x318] sm:$0xff] }
  0x54   : > { %3132 = vmatpush.bf16.msra.mxu1 %v4629_v11  ;;  %v612_v11 = vadd.f32 %v5014_v26, %v608_v63 }
  0x55   : > { %3146 = vmatpush.bf16.msra.mxu2 %v4637_v25  ;;  %v1050_v40 = vld.sshfl [vmem:[#allocation1] sm:$0xff pattern:$0x73625140] }
  0x56   : > { %3055 = vmatmul.bf16.vlgmr.msra.gmra.mxu3 %v1050_v40  ;;  %1052 = vst [vmem:[#allocation1] ss:$4 sm:$0xff] %v5216_v24  ;;  %v3658_v24 = vrot.slane %v5332_v9, 9  ;;  %v616_v20 = vmax.f32 %v612_v11, 0.0 }
  0x57   : > { %3119 = vmatpush.bf16.msra.mxu0 %v4620_v14  ;;  %1054 = vst [vmem:[#allocation1 + $0x1] ss:$4 sm:$0xff] %v5229_v31  ;;  %3159 = vmatpush.bf16.msra.mxu3 %v4646_v37  ;;  %v615_v14 = vmax.f32 %v611_v10, 0.0  ;;  %v4631_v37 = vld [vmem:[%s6161_s3 + $0x280] sm:$0xff] }
  0x58   : > { %3133 = vmatpush.bf16.msra.mxu1 %v4628_v15  ;;  %1056 = vst [vmem:[#allocation1 + $0x2] ss:$4 sm:$0xff] %v5234_v32  ;;  %v5410_v49 = vsel %vm5257_vm6, %v3658_v24, %v846_v46  ;;  %v4623_v15 = vld [vmem:[%s6161_s3 + $0x240] sm:$0xff]  ;;  %v620_v55 = vpack.c.bf16 %v616_v20, %v616_v20 }
  0x59   : > { %3147 = vmatpush.bf16.msra.mxu2 %v4636_v34  ;;  %1059 = vst [vmem:[#allocation1 + $0x3] ss:$4 sm:$0xff] %v5390_v41  ;;  %v619_v21 = vpack.c.bf16 %v615_v14, %v615_v14 }
  0x5a   : > { %v631_v25 = vshrl.u32 %v620_v55, 16  ;;  %v634_v36 = vshll.u32 %v620_v55, 16 }
  0x5b   : > { %3120 = vmatpush.bf16.msra.mxu0 %v4619_v22  ;;  %3160 = vmatpush.bf16.msra.mxu3 %v4645_v62  ;;  %v627_v34 = vshll.u32 %v619_v21, 16  ;;  %v606_v62 = vunpack.c.l.bf16 %v602_v53 }
  0x5c   : > { %3134 = vmatpush.bf16.msra.mxu1 %v4627_v23  ;;  %v624_v23 = vshrl.u32 %v619_v21, 16  ;;  %v633_v35 = vrot.slane %v631_v25, 7 }
  0x5d   : > { %v610_v11 = vmul.f32 %v4999_v19, %v606_v62 }
  0x5e   : > { %v636_v46 = vor.u32 %v634_v36, %v633_v35  ;;  %v4647_v35 = vld [vmem:[%s6161_s3 + $0x300] sm:$0xff]  ;;  %v4657_v36 = vld [vmem:[%s6161_s3 + $0x350] sm:$0xff] }
  0x5f   : > { %3121 = vmatpush.bf16.msra.mxu0 %v4618_v30  ;;  %3161 = vmatpush.bf16.msra.mxu3 %v4644_v8  ;;  %v4652_v30 = vld [vmem:[%s6161_s3 + $0x328] sm:$0xff] }
  0x60   : > { %3135 = vmatpush.bf16.msra.mxu1 %v4626_v33  ;;  %v1060_v54 = vld.sshfl [vmem:[#allocation1] sm:$0xff pattern:$0x73625140]  ;;  %v626_v33 = vrot.slane %v624_v23, 7  ;;  %v656_v56 = vsel %vm5018_vm4, 0, %v636_v46 }
  0x61   : > { %3069 = vmatmul.bf16.vlgmr.msrb.gmra.mxu0 %v1060_v54  ;;  %1062 = vst [vmem:[#allocation1] ss:$4 sm:$0xff] %v5289_v51  ;;  %v4635_v51 = vld [vmem:[%s6161_s3 + $0x2a0] sm:$0xff]  ;;  %v5517_v63 = vsel %vm5038_vm5, %v656_v56, 0 }
  0x62   : > { %1064 = vst [vmem:[#allocation1 + $0x1] ss:$4 sm:$0xff] %v5302_v1  ;;  %3148 = vmatpush.bf16.msra.mxu2 %v4635_v51  ;;  %v629_v24 = vor.u32 %v627_v34, %v626_v33  ;;  %v4670_v51 = vld [vmem:[%s6161_s3 + $0x3b8] sm:$0xff]  ;;  %v869_v8 = vshrl.u32 %v5517_v63, 16  ;;  %v872_v10 = vshll.u32 %v5517_v63, 16 }
  0x63   : > { %3122 = vmatpush.bf16.msra.mxu0 %v4617_v38  ;;  %1066 = vst [vmem:[#allocation1 + $0x2] ss:$4 sm:$0xff] %v5312_v5  ;;  %3162 = vmatpush.bf16.msra.mxu3 %v4643_v18 }
  0x64   : > { %1069 = vst [vmem:[#allocation1 + $0x3] ss:$4 sm:$0xff] %v5410_v49  ;;  %3136 = vmatpush.bf16.msra.mxu1 %v4625_v52  ;;  %v655_v58 = vsel %vm5018_vm4, 0, %v629_v24  ;;  %v4660_v52 = vld [vmem:[%s6161_s3 + $0x368] sm:$0xff]  ;;  %v871_v20 = vrot.slane %v869_v8, 6  ;;  %v4685_v8 = vld [vmem:[%s6161_s3 + $0x430] sm:$0xff] }
  0x66   : > { %3149 = vmatpush.bf16.msra.mxu2 %v4634_v6 }
  0x67   : > { %3123 = vmatpush.bf16.msra.mxu0 %v4616_v45  ;;  %3163 = vmatpush.bf16.msra.mxu3 %v4642_v28  ;;  %v4661_v45 = vld [vmem:[%s6161_s3 + $0x370] sm:$0xff]  ;;  %v4668_v28 = vld [vmem:[%s6161_s3 + $0x3a8] sm:$0xff] }
  0x68   : > { %3137 = vmatpush.bf16.msra.mxu1 %v4624_v3  ;;  %v4669_v3 = vld [vmem:[%s6161_s3 + $0x3b0] sm:$0xff] }
  0x6a   : > { %3150 = vmatpush.bf16.msra.mxu2 %v4633_v17 }
  0x6b   : > { %3124 = vmatpush.bf16.msra.mxu0 %v4615_v0  ;;  %v1070_v13 = vld.sshfl [vmem:[#allocation1] sm:$0xff pattern:$0x73625140]  ;;  %v4649_v0 = vld [vmem:[%s6161_s3 + $0x310] sm:$0xff] }
  0x6c   : > { %3083 = vmatmul.bf16.vlgmr.msrb.gmra.mxu1 %v1070_v13  ;;  %1072 = vst [vmem:[#allocation1] ss:$4 sm:$0xff] %v5152_v47  ;;  %v4653_v47 = vld [vmem:[%s6161_s3 + $0x330] sm:$0xff] }
  0x6d   : > { %1074 = vst [vmem:[#allocation1 + $0x1] ss:$4 sm:$0xff] %v5156_v48  ;;  %v617_v48 = vmax.f32 %v613_v12, 0.0  ;;  %3138 = vmatpush.bf16.msra.mxu1 %v4623_v15  ;;  %v852_v15 = vrot.slane %v5517_v63, 2 }
  0x6e   : > { %1076 = vst [vmem:[#allocation1 + $0x2] ss:$4 sm:$0xff] %v5332_v9  ;;  %v4632_v9 = vld [vmem:[%s6161_s3 + $0x288] sm:$0xff] }
  0x6f   : > { %3173 = vmatpush.bf16.msrb.mxu0 %v4654_v7  ;;  %1078 = vst [vmem:[#allocation1 + $0x3] ss:$4 sm:$0xff] %v5049_v43  ;;  %v621_v22 = vpack.c.bf16 %v617_v48, %v617_v48  ;;  %3151 = vmatpush.bf16.msra.mxu2 %v4632_v9  ;;  %v614_v48 = vadd.f32 %v5014_v26, %v610_v11  ;;  %v4658_v9 = vld [vmem:[%s6161_s3 + $0x358] sm:$0xff]  ;;  %v902_v11 = vrot.slane %v852_v15, 7 }
  0x71   : > { %v638_v27 = vshrl.u32 %v621_v22, 16  ;;  %v641_v40 = vshll.u32 %v621_v22, 16 }
  0x73   : > { %3174 = vmatpush.bf16.msrb.mxu0 %v4653_v47  ;;  %v640_v38 = vrot.slane %v638_v27, 7  ;;  %3152 = vmatpush.bf16.msra.mxu2 %v4631_v37  ;;  %v874_v47 = vrot.slane %v872_v10, 7  ;;  %v4648_v27 = vld [vmem:[%s6161_s3 + $0x308] sm:$0xff]  ;;  %v3660_v10 = vrot.slane %v5517_v63, 9 }
  0x75   : > { %v643_v50 = vor.u32 %v641_v40, %v640_v38  ;;  %v875_v26 = vor.u32 %v874_v47, %v871_v20  ;;  %v4667_v38 = vld [vmem:[%s6161_s3 + $0x3a0] sm:$0xff]  ;;  %v4677_v40 = vld [vmem:[%s6161_s3 + $0x3f0] sm:$0xff] }
  0x76   : > { %v1079_v42 = vld.sshfl [vmem:[#allocation1] sm:$0xff pattern:$0x73625140] }
  0x77   : > { %3097 = vmatmul.bf16.vlgmr.msrb.gmra.mxu2 %v1079_v42  ;;  %1081 = vst [vmem:[#allocation1] ss:$4 sm:$0xff] %v5229_v31  ;;  %v4662_v31 = vld [vmem:[%s6161_s3 + $0x378] sm:$0xff]  ;;  %3175 = vmatpush.bf16.msrb.mxu0 %v4652_v30  ;;  %v657_v57 = vsel %vm5018_vm4, 0, %v643_v50  ;;  %v878_v42 = vshll.u32 %v852_v15, 16  ;;  %v618_v30 = vmax.f32 %v614_v48, 0.0  ;;  %v5644_v15 = vsel %vm5257_vm6, %v3660_v10, %v902_v11 }
  0x78   : > { %1083 = vst [vmem:[#allocation1 + $0x1] ss:$4 sm:$0xff] %v5234_v32  ;;  %v4641_v32 = vld [vmem:[%s6161_s3 + $0x2d0] sm:$0xff]  ;;  %3187 = vmatpush.bf16.msrb.mxu1 %v4662_v31  ;;  %v5528_v2 = vsel %vm5038_vm5, %v657_v57, 0  ;;  %3201 = vmatpush.bf16.msrb.mxu2 %v4670_v51  ;;  %v4678_v31 = vld [vmem:[%s6161_s3 + $0x3f8] sm:$0xff]  ;;  %v4664_v48 = vld [vmem:[%s6161_s3 + $0x388] sm:$0xff] }
  0x79   : > { %1085 = vst [vmem:[#allocation1 + $0x2] ss:$4 sm:$0xff] %v5390_v41  ;;  %v4651_v41 = vld [vmem:[%s6161_s3 + $0x320] sm:$0xff]  ;;  %3164 = vmatpush.bf16.msra.mxu3 %v4641_v32  ;;  %v883_v12 = vshrl.u32 %v5528_v2, 16  ;;  %v886_v13 = vshll.u32 %v5528_v2, 16  ;;  %v853_v19 = vrot.slane %v5528_v2, 2  ;;  %v622_v24 = vpack.c.bf16 %v618_v30, %v618_v30 }
  0x7a   : > { %1087 = vst [vmem:[#allocation1 + $0x3] ss:$4 sm:$0xff] %v5206_v16 }
  0x7b   : > { %3176 = vmatpush.bf16.msrb.mxu0 %v4651_v41  ;;  %v885_v55 = vrot.slane %v883_v12, 6  ;;  %v888_v22 = vrot.slane %v886_v13, 7  ;;  %v892_v34 = vshll.u32 %v853_v19, 16  ;;  %v876_v41 = vrot.slane %v875_v26, 2  ;;  %v4693_v26 = vld [vmem:[%s6161_s3 + $0x470] sm:$0xff] }
  0x7c   : > { %3188 = vmatpush.bf16.msrb.mxu1 %v4661_v45  ;;  %3202 = vmatpush.bf16.msrb.mxu2 %v4669_v3  ;;  %v880_v45 = vrot.slane %v878_v42, 7  ;;  %v645_v56 = vshrl.u32 %v622_v24, 16  ;;  %v648_v62 = vshll.u32 %v622_v24, 16  ;;  %v3661_v12 = vrot.slane %v5528_v2, 9  ;;  %v4683_v42 = vld [vmem:[%s6161_s3 + $0x420] sm:$0xff] }
  0x7d   : > { %3165 = vmatpush.bf16.msra.mxu3 %v4640_v59  ;;  %v889_v33 = vor.u32 %v888_v22, %v885_v55  ;;  %v894_v50 = vrot.slane %v892_v34, 7  ;;  %v4656_v59 = vld [vmem:[%s6161_s3 + $0x348] sm:$0xff]  ;;  %v906_v13 = vrot.slane %v853_v19, 7  ;;  %v4694_v22 = vld [vmem:[%s6161_s3 + $0x478] sm:$0xff] }
  0x7e   : > { %v647_v51 = vrot.slane %v645_v56, 7  ;;  %v4684_v19 = vld [vmem:[%s6161_s3 + $0x428] sm:$0xff]  ;;  %v4690_v56 = vld [vmem:[%s6161_s3 + $0x458] sm:$0xff] }
  0x7f   : > { %3177 = vmatpush.bf16.msrb.mxu0 %v4650_v61  ;;  %v890_v46 = vrot.slane %v889_v33, 2  ;;  %v4666_v61 = vld [vmem:[%s6161_s3 + $0x398] sm:$0xff]  ;;  %v5649_v20 = vsel %vm5257_vm6, %v3661_v12, %v906_v13 }
  0x80   : > { %3189 = vmatpush.bf16.msrb.mxu1 %v4660_v52  ;;  %3203 = vmatpush.bf16.msrb.mxu2 %v4668_v28  ;;  %v4676_v52 = vld [vmem:[%s6161_s3 + $0x3e8] sm:$0xff] }
  0x81   : > { %v1088_v54 = vld.sshfl [vmem:[#allocation1] sm:$0xff pattern:$0x73625140]  ;;  %v5592_v57 = vsel %vm5190_vm13, %v890_v46, %v894_v50 }
  0x82   : > { %3111 = vmatmul.bf16.vlgmr.msrb.gmra.mxu3 %v1088_v54  ;;  %1090 = vst [vmem:[#allocation1] ss:$4 sm:$0xff] %v5302_v1  ;;  %v5509_v1 = vsel %vm5038_vm5, %v655_v58, 0  ;;  %v5587_v54 = vsel %vm5190_vm13, %v876_v41, %v880_v45  ;;  %v4691_v41 = vld [vmem:[%s6161_s3 + $0x460] sm:$0xff]  ;;  %v4701_v45 = vld [vmem:[%s6161_s3 + $0x4b0] sm:$0xff] }
  0x83   : > { %1092 = vst [vmem:[#allocation1 + $0x1] ss:$4 sm:$0xff] %v5312_v5  ;;  %v4639_v5 = vld [vmem:[%s6161_s3 + $0x2c0] sm:$0xff]  ;;  %v855_v6 = vshrl.u32 %v5509_v1, 16  ;;  %v858_v7 = vshll.u32 %v5509_v1, 16  ;;  %3178 = vmatpush.bf16.msrb.mxu0 %v4649_v0  ;;  %v851_v14 = vrot.slane %v5509_v1, 2 }
  0x84   : > { %1094 = vst [vmem:[#allocation1 + $0x2] ss:$4 sm:$0xff] %v5410_v49  ;;  %v4659_v49 = vld [vmem:[%s6161_s3 + $0x360] sm:$0xff]  ;;  %3166 = vmatpush.bf16.msra.mxu3 %v4639_v5  ;;  %3204 = vmatpush.bf16.msrb.mxu2 %v4667_v38  ;;  %v4686_v5 = vld [vmem:[%s6161_s3 + $0x438] sm:$0xff]  ;;  %v3659_v3 = vrot.slane %v5509_v1, 9 }
  0x85   : > { %1096 = vst [vmem:[#allocation1 + $0x3] ss:$4 sm:$0xff] %v5281_v60  ;;  %3190 = vmatpush.bf16.msrb.mxu1 %v4659_v49  ;;  %v857_v17 = vrot.slane %v855_v6, 6  ;;  %v860_v18 = vrot.slane %v858_v7, 7  ;;  %v864_v25 = vshll.u32 %v851_v14, 16  ;;  %v4655_v0 = vld [vmem:[%s6161_s3 + $0x340] sm:$0xff] }
  0x86   : > { %v4665_v49 = vld [vmem:[%s6161_s3 + $0x390] sm:$0xff]  ;;  %v898_v6 = vrot.slane %v851_v14, 7  ;;  %v4675_v7 = vld [vmem:[%s6161_s3 + $0x3e0] sm:$0xff]  ;;  %v650_v14 = vor.u32 %v648_v62, %v647_v51 }
  0x87   : > { %v861_v23 = vor.u32 %v860_v18, %v857_v17  ;;  %3179 = vmatpush.bf16.msrb.mxu0 %v4648_v27  ;;  %v866_v32 = vrot.slane %v864_v25, 7  ;;  %v4673_v25 = vld [vmem:[%s6161_s3 + $0x3d0] sm:$0xff]  ;;  %v4671_v38 = vld [vmem:[%s6161_s3 + $0x3c0] sm:$0xff] }
  0x88   : > { %3215 = vmatpush.bf16.msrb.mxu3 %v4678_v31  ;;  %3205 = vmatpush.bf16.msrb.mxu2 %v4666_v61  ;;  %v5640_v17 = vsel %vm5257_vm6, %v3659_v3, %v898_v6  ;;  %v658_v47 = vsel %vm5018_vm4, 0, %v650_v14  ;;  %v4710_v61 = vld [vmem:[%s6161_s3 + $0x4f8] sm:$0xff]  ;;  %v4679_v51 = vld [vmem:[%s6161_s3 + $0x400] sm:$0xff]  ;;  %v4689_v62 = vld [vmem:[%s6161_s3 + $0x450] sm:$0xff] }
  0x89   : > { %3191 = vmatpush.bf16.msrb.mxu1 %v4658_v9  ;;  %v862_v37 = vrot.slane %v861_v23, 2  ;;  %v5667_v55 = vsel %vm5038_vm5, %v658_v47, 0  ;;  %v4663_v23 = vld [vmem:[%s6161_s3 + $0x380] sm:$0xff] }
  0x8a   : > { %v911_v27 = vshrl.u32 %v5667_v55, 16  ;;  %v914_v9 = vshll.u32 %v5667_v55, 16  ;;  %v909_v30 = vrot.slane %v5667_v55, 2  ;;  %v665_v3 = vld [vmem:[%s5725_s16 + $0x4] sm:$0x3]  ;;  %v3662_v6 = vrot.slane %v5667_v55, 9 }
  0x8b   : > { %3180 = vmatpush.bf16.msrb.mxu0 %v4647_v35  ;;  %v5583_v58 = vsel %vm5190_vm13, %v862_v37, %v866_v32  ;;  %v4682_v37 = vld [vmem:[%s6161_s3 + $0x418] sm:$0xff]  ;;  %v669_v11 = vunpack.c.l.bf16 %v665_v3  ;;  %v5765_v14 = vld [vmem:[%s6162_s4] ss:$0 sm:$0xff] }
  0x8c   : > { %v1097_v21 = vld.sshfl [vmem:[#allocation1] sm:$0xff pattern:$0x73625140]  ;;  %3216 = vmatpush.bf16.msrb.mxu3 %v4677_v40  ;;  %3206 = vmatpush.bf16.msrb.mxu2 %v4665_v49  ;;  %v913_v33 = vrot.slane %v911_v27, 6  ;;  %v916_v34 = vrot.slane %v914_v9, 7  ;;  %v920_v35 = vshll.u32 %v909_v30, 16 }
  0x8d   : > { %3125 = vmatmul.bf16.vlgmr.msra.gmra.mxu0 %v1097_v21  ;;  %1099 = vst [vmem:[#allocation1] ss:$4 sm:$0xff] %v5049_v43  ;;  %3192 = vmatpush.bf16.msrb.mxu1 %v4657_v36  ;;  %v4674_v21 = vld [vmem:[%s6161_s3 + $0x3d8] sm:$0xff]  ;;  %v4672_v36 = vld [vmem:[%s6161_s3 + $0x3c8] sm:$0xff]  ;;  %v4681_v40 = vld [vmem:[%s6161_s3 + $0x410] sm:$0xff] }
  0x8e   : > { %1101 = vst [vmem:[#allocation1 + $0x1] ss:$4 sm:$0xff] %v5509_v1  ;;  %v917_v31 = vor.u32 %v916_v34, %v913_v33  ;;  %v4702_v32 = vld [vmem:[%s6161_s3 + $0x4b8] sm:$0xff]  ;;  %v922_v46 = vrot.slane %v920_v35, 7  ;;  %v4709_v49 = vld [vmem:[%s6161_s3 + $0x4f0] sm:$0xff]  ;;  %v4707_v9 = vld [vmem:[%s6161_s3 + $0x4e0] sm:$0xff] }
  0x8f   : > { %1103 = vst [vmem:[#allocation1 + $0x2] ss:$4 sm:$0xff] %v5517_v63  ;;  %3229 = vmatpush.bf16.msra.mxu0 %v4686_v5  ;;  %v664_v5 = vld [vmem:[%s5725_s16 + $0x2] sm:$0x3] }
  0x90   : > { %1105 = vst [vmem:[#allocation1 + $0x3] ss:$4 sm:$0xff] %v5528_v2  ;;  %3217 = vmatpush.bf16.msrb.mxu3 %v4676_v52  ;;  %3207 = vmatpush.bf16.msrb.mxu2 %v4664_v48  ;;  %v918_v24 = vrot.slane %v917_v31, 2  ;;  %v663_v52 = vld [vmem:[%s5725_s16] sm:$0x3]  ;;  %v668_v10 = vunpack.c.l.bf16 %v664_v5  ;;  %v673_v48 = vmul.f32 %v5765_v14, %v669_v11  ;;  %v4714_v5 = vld [vmem:[%s6161_s3 + $0x518] sm:$0xff] }
  0x91   : > { %3193 = vmatpush.bf16.msrb.mxu1 %v4656_v59  ;;  %v4700_v59 = vld [vmem:[%s6161_s3 + $0x4a8] sm:$0xff] }
  0x92   : > { %v672_v47 = vmul.f32 %v5765_v14, %v668_v10 }
  0x93   : > { %3230 = vmatpush.bf16.msra.mxu0 %v4685_v8  ;;  %v667_v8 = vunpack.c.l.bf16 %v663_v52 }
  0x94   : > { %3218 = vmatpush.bf16.msrb.mxu3 %v4675_v7  ;;  %3208 = vmatpush.bf16.msrb.mxu2 %v4663_v23  ;;  %v926_v7 = vrot.slane %v909_v30, 7  ;;  %v5789_v23 = vld [vmem:[%s6163_s5] ss:$0 sm:$0xff] }
  0x95   : > { %3194 = vmatpush.bf16.msrb.mxu1 %v4655_v0  ;;  %v4699_v0 = vld [vmem:[%s6161_s3 + $0x4a0] sm:$0xff]  ;;  %v676_v27 = vadd.f32 %v5789_v23, %v672_v47  ;;  %v677_v30 = vadd.f32 %v5789_v23, %v673_v48 }
  0x96   : > { %v5760_v13 = vsel %vm5257_vm6, %v3662_v6, %v926_v7  ;;  %v666_v48 = vld [vmem:[%s5725_s16 + $0x6] sm:$0x3] }
  0x97   : > { %v1106_v53 = vld.sshfl [vmem:[#allocation1] sm:$0xff pattern:$0x73625140]  ;;  %3231 = vmatpush.bf16.msra.mxu0 %v4684_v19  ;;  %v4708_v19 = vld [vmem:[%s6161_s3 + $0x4e8] sm:$0xff]  ;;  %v680_v34 = vmax.f32 %v676_v27, 0.0  ;;  %v681_v35 = vmax.f32 %v677_v30, 0.0 }
  0x98   : > { %3139 = vmatmul.bf16.vlgmr.msra.gmra.mxu1 %v1106_v53  ;;  %1108 = vst [vmem:[#allocation1] ss:$4 sm:$0xff] %v5206_v16  ;;  %3219 = vmatpush.bf16.msrb.mxu3 %v4674_v21  ;;  %v5719_v53 = vsel %vm5190_vm13, %v918_v24, %v922_v46  ;;  %v4698_v21 = vld [vmem:[%s6161_s3 + $0x498] sm:$0xff]  ;;  %v4725_v46 = vld [vmem:[%s6161_s3 + $0x570] sm:$0xff] }
  0x99   : > { %1111 = vst [vmem:[#allocation1 + $0x1] ss:$4 sm:$0xff] %v5583_v58  ;;  %3243 = vmatpush.bf16.msra.mxu1 %v4694_v22  ;;  %v4718_v22 = vld [vmem:[%s6161_s3 + $0x538] sm:$0xff]  ;;  %v685_v24 = vpack.c.bf16 %v681_v35, %v681_v35  ;;  %v4741_v35 = vld [vmem:[%s6161_s3 + $0x5f0] sm:$0xff] }
  0x9a   : > { %1114 = vst [vmem:[#allocation1 + $0x2] ss:$4 sm:$0xff] %v5587_v54  ;;  %v4722_v27 = vld [vmem:[%s6161_s3 + $0x558] sm:$0xff] }
  0x9b   : > { %1117 = vst [vmem:[#allocation1 + $0x3] ss:$4 sm:$0xff] %v5592_v57  ;;  %3232 = vmatpush.bf16.msra.mxu0 %v4683_v42  ;;  %v4687_v42 = vld [vmem:[%s6161_s3 + $0x440] sm:$0xff] }
  0x9c   : > { %3220 = vmatpush.bf16.msrb.mxu3 %v4673_v25 }
  0x9d   : > { %3244 = vmatpush.bf16.msra.mxu1 %v4693_v26  ;;  %v4697_v26 = vld [vmem:[%s6161_s3 + $0x490] sm:$0xff] }
  0x9f   : > { %3233 = vmatpush.bf16.msra.mxu0 %v4682_v37  ;;  %v4696_v37 = vld [vmem:[%s6161_s3 + $0x488] sm:$0xff] }
  0xa0   : > { %3221 = vmatpush.bf16.msrb.mxu3 %v4672_v36  ;;  %v689_v36 = vstv %s688_s10 }
  0xa1   : > { %vm5826_vm7 = vcmp.eq.s32.totalorder %v689_v36, 1 }
  0xa2   : > { %v1118_v18 = vld.sshfl [vmem:[#allocation1] sm:$0xff pattern:$0x73625140] }
  0xa3   : > { %3153 = vmatmul.bf16.vlgmr.msra.gmra.mxu2 %v1118_v18  ;;  %1120 = vst [vmem:[#allocation1] ss:$4 sm:$0xff] %v5281_v60  ;;  %3234 = vmatpush.bf16.msra.mxu0 %v4681_v40  ;;  %v671_v18 = vmul.f32 %v5765_v14, %v667_v8  ;;  %v4703_v8 = vld [vmem:[%s6161_s3 + $0x4c0] sm:$0xff] }
  0xa4   : > { %1123 = vst [vmem:[#allocation1 + $0x1] ss:$4 sm:$0xff] %v5640_v17  ;;  %3257 = vmatpush.bf16.msra.mxu2 %v4702_v32  ;;  %3222 = vmatpush.bf16.msrb.mxu3 %v4671_v38  ;;  %v4716_v32 = vld [vmem:[%s6161_s3 + $0x528] sm:$0xff]  ;;  %v4726_v38 = vld [vmem:[%s6161_s3 + $0x578] sm:$0xff] }
  0xa5   : > { %1126 = vst [vmem:[#allocation1 + $0x2] ss:$4 sm:$0xff] %v5644_v15  ;;  %v675_v25 = vadd.f32 %v5789_v23, %v671_v18 }
  0xa6   : > { %1129 = vst [vmem:[#allocation1 + $0x3] ss:$4 sm:$0xff] %v5649_v20 }
  0xa7   : > { %v679_v33 = vmax.f32 %v675_v25, 0.0 }
  0xa8   : > { %3258 = vmatpush.bf16.msra.mxu2 %v4701_v45 }
  0xa9   : > { %v683_v40 = vpack.c.bf16 %v679_v33, %v679_v33  ;;  %v4721_v33 = vld [vmem:[%s6161_s3 + $0x550] sm:$0xff] }
  0xac   : > { %3259 = vmatpush.bf16.msra.mxu2 %v4700_v59 }
  0xad   : > { %v1130_v28 = vld.sshfl [vmem:[#allocation1] sm:$0xff pattern:$0x73625140] }
  0xae   : > { %3167 = vmatmul.bf16.vlgmr.msra.gmra.mxu3 %v1130_v28  ;;  %1132 = vst [vmem:[#allocation1] ss:$4 sm:$0xff] %v5509_v1  ;;  %v4692_v1 = vld [vmem:[%s6161_s3 + $0x468] sm:$0xff]  ;;  %v4717_v28 = vld [vmem:[%s6161_s3 + $0x530] sm:$0xff] }
  0xaf   : > { %1134 = vst [vmem:[#allocation1 + $0x1] ss:$4 sm:$0xff] %v5517_v63  ;;  %3245 = vmatpush.bf16.msra.mxu1 %v4692_v1  ;;  %3271 = vmatpush.bf16.msra.mxu3 %v4710_v61  ;;  %v4706_v1 = vld [vmem:[%s6161_s3 + $0x4d8] sm:$0xff] }
  0xb0   : > { %1136 = vst [vmem:[#allocation1 + $0x2] ss:$4 sm:$0xff] %v5528_v2  ;;  %3260 = vmatpush.bf16.msra.mxu2 %v4699_v0  ;;  %v4724_v0 = vld [vmem:[%s6161_s3 + $0x568] sm:$0xff] }
  0xb1   : > { %1138 = vst [vmem:[#allocation1 + $0x3] ss:$4 sm:$0xff] %v5667_v55 }
  0xb3   : > { %3246 = vmatpush.bf16.msra.mxu1 %v4691_v41  ;;  %3272 = vmatpush.bf16.msra.mxu3 %v4709_v49  ;;  %v684_v41 = vpack.c.bf16 %v680_v34, %v680_v34 }
  0xb4   : > { %3261 = vmatpush.bf16.msra.mxu2 %v4698_v21 }
  0xb7   : > { %3247 = vmatpush.bf16.msra.mxu1 %v4690_v56  ;;  %3273 = vmatpush.bf16.msra.mxu3 %v4708_v19  ;;  %v693_v56 = vsel %vm5826_vm7, %v685_v24, 0  ;;  %v670_v19 = vunpack.c.l.bf16 %v666_v48 }
  0xb8   : > { %v1139_v50 = vld.sshfl [vmem:[#allocation1] sm:$0xff pattern:$0x73625140]  ;;  %3262 = vmatpush.bf16.msra.mxu2 %v4697_v26  ;;  %v713_v11 = vshll.u32 %v693_v56, 16  ;;  %v4712_v26 = vld [vmem:[%s6161_s3 + $0x508] sm:$0xff] }
  0xb9   : > { %3181 = vmatmul.bf16.vlgmr.msrb.gmra.mxu0 %v1139_v50  ;;  %1141 = vst [vmem:[#allocation1] ss:$4 sm:$0xff] %v5583_v58  ;;  %v4680_v58 = vld [vmem:[%s6161_s3 + $0x408] sm:$0xff]  ;;  %v691_v50 = vsel %vm5826_vm7, %v683_v40, 0  ;;  %v674_v34 = vmul.f32 %v5765_v14, %v670_v19 }
  0xba   : > { %1143 = vst [vmem:[#allocation1 + $0x1] ss:$4 sm:$0xff] %v5587_v54  ;;  %3235 = vmatpush.bf16.msra.mxu0 %v4680_v58  ;;  %v692_v58 = vsel %vm5826_vm7, %v684_v41, 0  ;;  %v696_v59 = vshrl.u32 %v691_v50, 16  ;;  %v699_v3 = vshll.u32 %v691_v50, 16 }
  0xbb   : > { %1145 = vst [vmem:[#allocation1 + $0x2] ss:$4 sm:$0xff] %v5592_v57  ;;  %3248 = vmatpush.bf16.msra.mxu1 %v4689_v62  ;;  %3274 = vmatpush.bf16.msra.mxu3 %v4707_v9  ;;  %v703_v61 = vshrl.u32 %v692_v58, 16  ;;  %v4704_v62 = vld [vmem:[%s6161_s3 + $0x4c8] sm:$0xff]  ;;  %v706_v7 = vshll.u32 %v692_v58, 16  ;;  %v678_v40 = vadd.f32 %v5789_v23, %v674_v34  ;;  %v4727_v34 = vld [vmem:[%s6161_s3 + $0x580] sm:$0xff] }
  0xbc   : > { %1148 = vst [vmem:[#allocation1 + $0x3] ss:$4 sm:$0xff] %v5719_v53  ;;  %3263 = vmatpush.bf16.msra.mxu2 %v4696_v37  ;;  %v698_v49 = vrot.slane %v696_v59, 7  ;;  %v4732_v9 = vld [vmem:[%s6161_s3 + $0x5a8] sm:$0xff] }
  0xbd   : > { %v705_v6 = vrot.slane %v703_v61, 7  ;;  %v682_v61 = vmax.f32 %v678_v40, 0.0 }
  0xbe   : > { %3236 = vmatpush.bf16.msra.mxu0 %v4679_v51  ;;  %v710_v51 = vshrl.u32 %v693_v56, 16  ;;  %v701_v18 = vor.u32 %v699_v3, %v698_v49  ;;  %v4740_v49 = vld [vmem:[%s6161_s3 + $0x5e8] sm:$0xff] }
  0xbf   : > { %3275 = vmatpush.bf16.msra.mxu3 %v4706_v1  ;;  %v708_v47 = vor.u32 %v706_v7, %v705_v6  ;;  %v4750_v6 = vld [vmem:[%s6161_s3 + $0x638] sm:$0xff]  ;;  %v686_v7 = vpack.c.bf16 %v682_v61, %v682_v61  ;;  %v4735_v61 = vld [vmem:[%s6161_s3 + $0x5c0] sm:$0xff] }
  0xc0   : > { %v712_v10 = vrot.slane %v710_v51, 7  ;;  %v727_v21 = vsel %vm5018_vm4, 0, %v701_v18 }
  0xc1   : > { %v728_v25 = vsel %vm5018_vm4, 0, %v708_v47 }
  0xc2   : > { %3285 = vmatpush.bf16.msrb.mxu0 %v4718_v22  ;;  %v5902_v30 = vsel %vm5038_vm5, %v728_v25, 0 }
  0xc3   : > { %v1149_v12 = vld.sshfl [vmem:[#allocation1] sm:$0xff pattern:$0x73625140]  ;;  %v949_v37 = vshrl.u32 %v5902_v30, 16  ;;  %v952_v1 = vshll.u32 %v5902_v30, 16 }
  0xc4   : > { %3195 = vmatmul.bf16.vlgmr.msrb.gmra.mxu1 %v1149_v12  ;;  %1151 = vst [vmem:[#allocation1] ss:$4 sm:$0xff] %v5640_v17  ;;  %v4688_v17 = vld [vmem:[%s6161_s3 + $0x448] sm:$0xff]  ;;  %v4733_v12 = vld [vmem:[%s6161_s3 + $0x5b0] sm:$0xff] }
  0xc5   : > { %1153 = vst [vmem:[#allocation1 + $0x1] ss:$4 sm:$0xff] %v5644_v15  ;;  %3249 = vmatpush.bf16.msra.mxu1 %v4688_v17  ;;  %v715_v17 = vor.u32 %v713_v11, %v712_v10  ;;  %v954_v50 = vrot.slane %v952_v1, 7  ;;  %v3664_v1 = vrot.slane %v5902_v30, 9 }
  0xc6   : > { %1155 = vst [vmem:[#allocation1 + $0x2] ss:$4 sm:$0xff] %v5649_v20  ;;  %3286 = vmatpush.bf16.msrb.mxu0 %v4717_v28  ;;  %v4742_v28 = vld [vmem:[%s6161_s3 + $0x5f8] sm:$0xff] }
  0xc7   : > { %1158 = vst [vmem:[#allocation1 + $0x3] ss:$4 sm:$0xff] %v5760_v13 }
  0xc9   : > { %3250 = vmatpush.bf16.msra.mxu1 %v4687_v42  ;;  %v729_v42 = vsel %vm5018_vm4, 0, %v715_v17 }
  0xca   : > { %3287 = vmatpush.bf16.msrb.mxu0 %v4716_v32 }
  0xcd   : > { %3299 = vmatpush.bf16.msrb.mxu1 %v4726_v38 }
  0xce   : > { %v1159_v31 = vld.sshfl [vmem:[#allocation1] sm:$0xff pattern:$0x73625140] }
  0xcf   : > { %3209 = vmatmul.bf16.vlgmr.msrb.gmra.mxu2 %v1159_v31  ;;  %1161 = vst [vmem:[#allocation1] ss:$4 sm:$0xff] %v5517_v63  ;;  %v4695_v63 = vld [vmem:[%s6161_s3 + $0x480] sm:$0xff] }
  0xd0   : > { %1163 = vst [vmem:[#allocation1 + $0x1] ss:$4 sm:$0xff] %v5528_v2  ;;  %v4705_v2 = vld [vmem:[%s6161_s3 + $0x4d0] sm:$0xff]  ;;  %3264 = vmatpush.bf16.msra.mxu2 %v4695_v63  ;;  %v4731_v31 = vld [vmem:[%s6161_s3 + $0x5a0] sm:$0xff] }
  0xd1   : > { %1165 = vst [vmem:[#allocation1 + $0x2] ss:$4 sm:$0xff] %v5667_v55  ;;  %v4715_v55 = vld [vmem:[%s6161_s3 + $0x520] sm:$0xff]  ;;  %3276 = vmatpush.bf16.msra.mxu3 %v4705_v2  ;;  %3300 = vmatpush.bf16.msrb.mxu1 %v4725_v46  ;;  %v951_v46 = vrot.slane %v949_v37, 6  ;;  %v4757_v37 = vld [vmem:[%s6161_s3 + $0x670] sm:$0xff] }
  0xd2   : > { %1167 = vst [vmem:[#allocation1 + $0x3] ss:$4 sm:$0xff] %v5049_v43  ;;  %3288 = vmatpush.bf16.msrb.mxu0 %v4715_v55  ;;  %v932_v55 = vrot.slane %v5902_v30, 2 }
  0xd3   : > { %v955_v51 = vor.u32 %v954_v50, %v951_v46  ;;  %v4736_v50 = vld [vmem:[%s6161_s3 + $0x5c8] sm:$0xff] }
  0xd5   : > { %3277 = vmatpush.bf16.msra.mxu3 %v4704_v62  ;;  %3301 = vmatpush.bf16.msrb.mxu1 %v4724_v0  ;;  %v958_v62 = vshll.u32 %v932_v55, 16  ;;  %v4730_v0 = vld [vmem:[%s6161_s3 + $0x598] sm:$0xff]  ;;  %v956_v18 = vrot.slane %v955_v51, 2 }
  0xd6   : > { %3289 = vmatpush.bf16.msrb.mxu0 %v4714_v5  ;;  %v4720_v5 = vld [vmem:[%s6161_s3 + $0x548] sm:$0xff] }
  0xd7   : > { %v960_v47 = vrot.slane %v958_v62, 7 }
  0xd9   : > { %v1168_v52 = vld.sshfl [vmem:[#allocation1] sm:$0xff pattern:$0x73625140]  ;;  %3278 = vmatpush.bf16.msra.mxu3 %v4703_v8  ;;  %v5974_v25 = vsel %vm5190_vm13, %v956_v18, %v960_v47 }
  0xda   : > { %3223 = vmatmul.bf16.vlgmr.msrb.gmra.mxu3 %v1168_v52  ;;  %1170 = vst [vmem:[#allocation1] ss:$4 sm:$0xff] %v5587_v54  ;;  %v4734_v54 = vld [vmem:[%s6161_s3 + $0x5b8] sm:$0xff]  ;;  %v4719_v8 = vld [vmem:[%s6161_s3 + $0x540] sm:$0xff] }
  0xdb   : > { %1172 = vst [vmem:[#allocation1 + $0x1] ss:$4 sm:$0xff] %v5592_v57  ;;  %v4713_v57 = vld [vmem:[%s6161_s3 + $0x510] sm:$0xff]  ;;  %3313 = vmatpush.bf16.msrb.mxu2 %v4734_v54 }
  0xdc   : > { %1174 = vst [vmem:[#allocation1 + $0x2] ss:$4 sm:$0xff] %v5719_v53  ;;  %v4723_v53 = vld [vmem:[%s6161_s3 + $0x560] sm:$0xff]  ;;  %3290 = vmatpush.bf16.msrb.mxu0 %v4713_v57  ;;  %v4729_v57 = vld [vmem:[%s6161_s3 + $0x590] sm:$0xff] }
  0xdd   : > { %1176 = vst [vmem:[#allocation1 + $0x3] ss:$4 sm:$0xff] %v5206_v16  ;;  %3302 = vmatpush.bf16.msrb.mxu1 %v4723_v53  ;;  %3327 = vmatpush.bf16.msrb.mxu3 %v4742_v28  ;;  %v4739_v53 = vld [vmem:[%s6161_s3 + $0x5e0] sm:$0xff] }
  0xdf   : > { %3314 = vmatpush.bf16.msrb.mxu2 %v4733_v12  ;;  %v4749_v12 = vld [vmem:[%s6161_s3 + $0x630] sm:$0xff] }
  0xe0   : > { %3291 = vmatpush.bf16.msrb.mxu0 %v4712_v26  ;;  %v4728_v26 = vld [vmem:[%s6161_s3 + $0x588] sm:$0xff] }
  0xe1   : > { %3303 = vmatpush.bf16.msrb.mxu1 %v4722_v27  ;;  %3328 = vmatpush.bf16.msrb.mxu3 %v4741_v35  ;;  %v4738_v27 = vld [vmem:[%s6161_s3 + $0x5d8] sm:$0xff] }
  0xe3   : > { %3315 = vmatpush.bf16.msrb.mxu2 %v4732_v9  ;;  %v4748_v9 = vld [vmem:[%s6161_s3 + $0x628] sm:$0xff] }
  0xe4   : > { %v1177_v22 = vld.sshfl [vmem:[#allocation1] sm:$0xff pattern:$0x73625140] }
  0xe5   : > { %3237 = vmatmul.bf16.vlgmr.msra.gmra.mxu0 %v1177_v22  ;;  %1179 = vst [vmem:[#allocation1] ss:$4 sm:$0xff] %v5644_v15  ;;  %v5894_v15 = vsel %vm5038_vm5, %v727_v21, 0  ;;  %3304 = vmatpush.bf16.msrb.mxu1 %v4721_v33  ;;  %v694_v21 = vsel %vm5826_vm7, %v686_v7, 0  ;;  %v4758_v33 = vld [vmem:[%s6161_s3 + $0x678] sm:$0xff]  ;;  %v4744_v7 = vld [vmem:[%s6161_s3 + $0x608] sm:$0xff] }
  0xe6   : > { %1181 = vst [vmem:[#allocation1 + $0x1] ss:$4 sm:$0xff] %v5649_v20  ;;  %v4711_v20 = vld [vmem:[%s6161_s3 + $0x500] sm:$0xff]  ;;  %v935_v36 = vshrl.u32 %v5894_v15, 16  ;;  %v938_v14 = vshll.u32 %v5894_v15, 16  ;;  %v931_v63 = vrot.slane %v5894_v15, 2  ;;  %3329 = vmatpush.bf16.msrb.mxu3 %v4740_v49 }
  0xe7   : > { %1183 = vst [vmem:[#allocation1 + $0x2] ss:$4 sm:$0xff] %v5760_v13  ;;  %v5914_v13 = vsel %vm5038_vm5, %v729_v42, 0  ;;  %3292 = vmatpush.bf16.msrb.mxu0 %v4711_v20  ;;  %3316 = vmatpush.bf16.msrb.mxu2 %v4731_v31  ;;  %v717_v42 = vshrl.u32 %v694_v21, 16  ;;  %v720_v20 = vshll.u32 %v694_v21, 16  ;;  %v4737_v31 = vld [vmem:[%s6161_s3 + $0x5d0] sm:$0xff] }
  0xe8   : > { %1185 = vst [vmem:[#allocation1 + $0x3] ss:$4 sm:$0xff] %v5281_v60  ;;  %v963_v32 = vshrl.u32 %v5914_v13, 16  ;;  %v966_v38 = vshll.u32 %v5914_v13, 16  ;;  %v937_v41 = vrot.slane %v935_v36, 6  ;;  %v940_v2 = vrot.slane %v938_v14, 7 }
  0xe9   : > { %v933_v24 = vrot.slane %v5914_v13, 2  ;;  %v944_v52 = vshll.u32 %v931_v63, 16  ;;  %3305 = vmatpush.bf16.msrb.mxu1 %v4720_v5  ;;  %v719_v28 = vrot.slane %v717_v42, 7  ;;  %v3663_v35 = vrot.slane %v5894_v15, 9  ;;  %v4747_v14 = vld [vmem:[%s6161_s3 + $0x620] sm:$0xff]  ;;  %v4761_v21 = vld [vmem:[%s6161_s3 + $0x690] sm:$0xff] }
  0xea   : > { %v965_v56 = vrot.slane %v963_v32, 6  ;;  %v968_v59 = vrot.slane %v966_v38, 7  ;;  %v941_v23 = vor.u32 %v940_v2, %v937_v41  ;;  %3330 = vmatpush.bf16.msrb.mxu3 %v4739_v53  ;;  %v978_v36 = vrot.slane %v931_v63, 7 }
  0xeb   : > { %v972_v54 = vshll.u32 %v933_v24, 16  ;;  %3317 = vmatpush.bf16.msrb.mxu2 %v4730_v0  ;;  %v946_v11 = vrot.slane %v944_v52, 7  ;;  %3341 = vmatpush.bf16.msra.mxu0 %v4750_v6  ;;  %v982_v32 = vrot.slane %v932_v55, 7  ;;  %v3665_v38 = vrot.slane %v5914_v13, 9  ;;  %v4765_v52 = vld [vmem:[%s6161_s3 + $0x6b0] sm:$0xff] }
  0xec   : > { %v969_v3 = vor.u32 %v968_v59, %v965_v56  ;;  %v942_v10 = vrot.slane %v941_v23, 2  ;;  %v986_v40 = vrot.slane %v933_v24, 7  ;;  %v722_v63 = vor.u32 %v720_v20, %v719_v28  ;;  %v4756_v56 = vld [vmem:[%s6161_s3 + $0x668] sm:$0xff]  ;;  %v4766_v59 = vld [vmem:[%s6161_s3 + $0x6b8] sm:$0xff]  ;;  %v4745_v23 = vld [vmem:[%s6161_s3 + $0x610] sm:$0xff] }
  0xed   : > { %v974_v17 = vrot.slane %v972_v54, 7  ;;  %3306 = vmatpush.bf16.msrb.mxu1 %v4719_v8  ;;  %v6019_v41 = vsel %vm5257_vm6, %v3663_v35, %v978_v36  ;;  %v6023_v46 = vsel %vm5257_vm6, %v3664_v1, %v982_v32  ;;  %v4754_v8 = vld [vmem:[%s6161_s3 + $0x658] sm:$0xff] }
  0xee   : > { %v970_v48 = vrot.slane %v969_v3, 2  ;;  %v5970_v19 = vsel %vm5190_vm13, %v942_v10, %v946_v11  ;;  %3331 = vmatpush.bf16.msrb.mxu3 %v4738_v27  ;;  %v6028_v55 = vsel %vm5257_vm6, %v3665_v38, %v986_v40  ;;  %v730_v24 = vsel %vm5018_vm4, 0, %v722_v63  ;;  %v4753_v10 = vld [vmem:[%s6161_s3 + $0x650] sm:$0xff]  ;;  %v4763_v11 = vld [vmem:[%s6161_s3 + $0x6a0] sm:$0xff]  ;;  %v4760_v27 = vld [vmem:[%s6161_s3 + $0x688] sm:$0xff] }
  0xef   : > { %v1186_v58 = vld.sshfl [vmem:[#allocation1] sm:$0xff pattern:$0x73625140]  ;;  %3318 = vmatpush.bf16.msrb.mxu2 %v4729_v57  ;;  %3342 = vmatpush.bf16.msra.mxu0 %v4749_v12  ;;  %v6046_v29 = vsel %vm5038_vm5, %v730_v24, 0 }
  0xf0   : > { %3251 = vmatmul.bf16.vlgmr.msra.gmra.mxu1 %v1186_v58  ;;  %1188 = vst [vmem:[#allocation1] ss:$4 sm:$0xff] %v5049_v43  ;;  %v5979_v45 = vsel %vm5190_vm13, %v970_v48, %v974_v17  ;;  %v4746_v58 = vld [vmem:[%s6161_s3 + $0x618] sm:$0xff]  ;;  %v991_v51 = vshrl.u32 %v6046_v29, 16  ;;  %v994_v62 = vshll.u32 %v6046_v29, 16  ;;  %v989_v0 = vrot.slane %v6046_v29, 2 }
  0xf1   : > { %1190 = vst [vmem:[#allocation1 + $0x1] ss:$4 sm:$0xff] %v5894_v15  ;;  %3355 = vmatpush.bf16.msra.mxu1 %v4758_v33  ;;  %v4743_v57 = vld [vmem:[%s6161_s3 + $0x600] sm:$0xff]  ;;  %v4752_v48 = vld [vmem:[%s6161_s3 + $0x648] sm:$0xff]  ;;  %v4762_v17 = vld [vmem:[%s6161_s3 + $0x698] sm:$0xff] }
  0xf2   : > { %1192 = vst [vmem:[#allocation1 + $0x2] ss:$4 sm:$0xff] %v5902_v30  ;;  %3332 = vmatpush.bf16.msrb.mxu3 %v4737_v31  ;;  %v993_v49 = vrot.slane %v991_v51, 6  ;;  %v996_v3 = vrot.slane %v994_v62, 7  ;;  %v1000_v6 = vshll.u32 %v989_v0, 16 }
  0xf3   : > { %1194 = vst [vmem:[#allocation1 + $0x3] ss:$4 sm:$0xff] %v5914_v13  ;;  %3319 = vmatpush.bf16.msrb.mxu2 %v4728_v26  ;;  %3343 = vmatpush.bf16.msra.mxu0 %v4748_v9  ;;  %v4759_v9 = vld [vmem:[%s6161_s3 + $0x680] sm:$0xff] }
  0xf4   : > { %v997_v54 = vor.u32 %v996_v3, %v993_v49  ;;  %v1002_v12 = vrot.slane %v1000_v6, 7 }
  0xf5   : > { %3356 = vmatpush.bf16.msra.mxu1 %v4757_v37 }
  0xf6   : > { %3333 = vmatpush.bf16.msrb.mxu3 %v4736_v50  ;;  %v998_v53 = vrot.slane %v997_v54, 2 }
  0xf7   : > { %3320 = vmatpush.bf16.msrb.mxu2 %v4727_v34  ;;  %3344 = vmatpush.bf16.msra.mxu0 %v4747_v14 }
  0xf8   : > { %v1003_v47 = vsel %vm5190_vm13, %v998_v53, %v1002_v12 }
  0xf9   : > { %3357 = vmatpush.bf16.msra.mxu1 %v4756_v56 }
  0xfa   : > { %v1195_v22 = vld.sshfl [vmem:[#allocation1] sm:$0xff pattern:$0x73625140]  ;;  %3334 = vmatpush.bf16.msrb.mxu3 %v4735_v61 }
  0xfb   : > { %3265 = vmatmul.bf16.vlgmr.msra.gmra.mxu2 %v1195_v22  ;;  %1197 = vst [vmem:[#allocation1] ss:$4 sm:$0xff] %v5206_v16  ;;  %3345 = vmatpush.bf16.msra.mxu0 %v4746_v58  ;;  %v1006_v22 = vrot.slane %v989_v0, 7 }
  0xfc   : > { %1200 = vst [vmem:[#allocation1 + $0x1] ss:$4 sm:$0xff] %v5970_v19  ;;  %3369 = vmatpush.bf16.msra.mxu2 %v4766_v59 }
  0xfd   : > { %1203 = vst [vmem:[#allocation1 + $0x2] ss:$4 sm:$0xff] %v5974_v25  ;;  %3358 = vmatpush.bf16.msra.mxu1 %v4755_v39 }
  0xfe   : > { %1206 = vst [vmem:[#allocation1 + $0x3] ss:$4 sm:$0xff] %v5979_v45 }
  0xff   : > { %3346 = vmatpush.bf16.msra.mxu0 %v4745_v23 }
 0x100   : > { %3370 = vmatpush.bf16.msra.mxu2 %v4765_v52 }
 0x101   : > { %3359 = vmatpush.bf16.msra.mxu1 %v4754_v8 }
 0x103   : > { %3347 = vmatpush.bf16.msra.mxu0 %v4744_v7 }
 0x105   : > { %v1207_v2 = vld.sshfl [vmem:[#allocation1] sm:$0xff pattern:$0x73625140]  ;;  %3360 = vmatpush.bf16.msra.mxu1 %v4753_v10 }
 0x106   : > { %3279 = vmatmul.bf16.vlgmr.msra.gmra.mxu3 %v1207_v2  ;;  %1209 = vst [vmem:[#allocation1] ss:$4 sm:$0xff] %v5281_v60 }
 0x107   : > { %1212 = vst [vmem:[#allocation1 + $0x1] ss:$4 sm:$0xff] %v6019_v41  ;;  %3348 = vmatpush.bf16.msra.mxu0 %v4743_v57 }
 0x108   : > { %1215 = vst [vmem:[#allocation1 + $0x2] ss:$4 sm:$0xff] %v6023_v46 }
 0x109   : > { %1218 = vst [vmem:[#allocation1 + $0x3] ss:$4 sm:$0xff] %v6028_v55  ;;  %3361 = vmatpush.bf16.msra.mxu1 %v4752_v48 }
 0x10d   : > { %3362 = vmatpush.bf16.msra.mxu1 %v4751_v4 }
 0x110   : > { %v1219_v5 = vld.sshfl [vmem:[#allocation1] sm:$0xff pattern:$0x73625140] }
 0x111   : > { %3293 = vmatmul.bf16.vlgmr.msrb.gmra.mxu0 %v1219_v5  ;;  %1221 = vst [vmem:[#allocation1] ss:$4 sm:$0xff] %v5894_v15  ;;  %v4764_v15 = vld [vmem:[%s6161_s3 + $0x6a8] sm:$0xff] }
 0x112   : > { %1223 = vst [vmem:[#allocation1 + $0x1] ss:$4 sm:$0xff] %v5902_v30  ;;  %3371 = vmatpush.bf16.msra.mxu2 %v4764_v15 }
 0x113   : > { %1225 = vst [vmem:[#allocation1 + $0x2] ss:$4 sm:$0xff] %v5914_v13 }
 0x114   : > { %1227 = vst [vmem:[#allocation1 + $0x3] ss:$4 sm:$0xff] %v6046_v29 }
 0x116   : > { %3372 = vmatpush.bf16.msra.mxu2 %v4763_v11 }
 0x11a   : > { %3373 = vmatpush.bf16.msra.mxu2 %v4762_v17 }
 0x11b   : > { %v1228_v18 = vld.sshfl [vmem:[#allocation1] sm:$0xff pattern:$0x73625140] }
 0x11c   : > { %3307 = vmatmul.bf16.vlgmr.msrb.gmra.mxu1 %v1228_v18  ;;  %1230 = vst [vmem:[#allocation1] ss:$4 sm:$0xff] %v5970_v19  ;;  %v3666_v19 = vrot.slane %v6046_v29, 9 }
 0x11d   : > { %1232 = vst [vmem:[#allocation1 + $0x1] ss:$4 sm:$0xff] %v5974_v25 }
 0x11e   : > { %1234 = vst [vmem:[#allocation1 + $0x2] ss:$4 sm:$0xff] %v5979_v45  ;;  %3374 = vmatpush.bf16.msra.mxu2 %v4761_v21  ;;  %v1007_v26 = vsel %vm5257_vm6, %v3666_v19, %v1006_v22 }
 0x11f   : > { %1237 = vst [vmem:[#allocation1 + $0x3] ss:$4 sm:$0xff] %v1003_v47 }
 0x122   : > { %3375 = vmatpush.bf16.msra.mxu2 %v4760_v27 }
 0x126   : > { %v1238_v42 = vld.sshfl [vmem:[#allocation1] sm:$0xff pattern:$0x73625140]  ;;  %3376 = vmatpush.bf16.msra.mxu2 %v4759_v9 }
 0x127   : > { %3321 = vmatmul.bf16.vlgmr.msrb.gmra.mxu2 %v1238_v42  ;;  %1240 = vst [vmem:[#allocation1] ss:$4 sm:$0xff] %v6019_v41 }
 0x128   : > { %1242 = vst [vmem:[#allocation1 + $0x1] ss:$4 sm:$0xff] %v6023_v46 }
 0x129   : > { %1244 = vst [vmem:[#allocation1 + $0x2] ss:$4 sm:$0xff] %v6028_v55 }
 0x12a   : > { %1247 = vst [vmem:[#allocation1 + $0x3] ss:$4 sm:$0xff] %v1007_v26 }
 0x131   : > { %v1248_v28 = vld.sshfl [vmem:[#allocation1] sm:$0xff pattern:$0x73625140] }
 0x132   : > { %3335 = vmatmul.bf16.vlgmr.msrb.gmra.mxu3 %v1248_v28  ;;  %1250 = vst [vmem:[#allocation1] ss:$4 sm:$0xff] %v5902_v30 }
 0x133   : > { %1252 = vst [vmem:[#allocation1 + $0x1] ss:$4 sm:$0xff] %v5914_v13  ;;  %v3028_v13 = vpop.f32.mrf.mxu1 }
 0x134   : > { %1254 = vst [vmem:[#allocation1 + $0x2] ss:$4 sm:$0xff] %v6046_v29 }
 0x135   : > { %1256 = vst [vmem:[#allocation1 + $0x3] ss:$4 sm:$0xff] %v5049_v43  ;;  %v3014_v43 = vpop.f32.mrf.mxu0 }
 0x13b   : > { %v3030_v34 = vpop.f32.mrf.mxu1 }
 0x13c   : > { %v1257_v44 = vld.sshfl [vmem:[#allocation1] sm:$0xff pattern:$0x73625140] }
 0x13d   : > { %3349 = vmatmul.bf16.vlgmr.msra.gmra.mxu0 %v1257_v44  ;;  %1259 = vst [vmem:[#allocation1] ss:$4 sm:$0xff] %v5974_v25  ;;  %v3016_v33 = vpop.f32.mrf.mxu0  ;;  %v3042_v25 = vpop.f32.mrf.mxu2 }
 0x13e   : > { %1261 = vst [vmem:[#allocation1 + $0x1] ss:$4 sm:$0xff] %v5979_v45  ;;  %v3056_v45 = vpop.f32.mrf.mxu3  ;;  %v3031_v50 = vadd.f32 %v3030_v34, %v3016_v33 }
 0x13f   : > { %1263 = vst [vmem:[#allocation1 + $0x2] ss:$4 sm:$0xff] %v1003_v47 }
 0x140   : > { %1265 = vst [vmem:[#allocation1 + $0x3] ss:$4 sm:$0xff] %v5206_v16 }
 0x143   : > { %v3084_v16 = vpop.f32.mrf.mxu1 }
 0x145   : > { %v3070_v31 = vpop.f32.mrf.mxu0  ;;  %v3044_v35 = vpop.f32.mrf.mxu2 }
 0x146   : > { %v3058_v36 = vpop.f32.mrf.mxu3  ;;  %v3045_v59 = vadd.f32 %v3044_v35, %v3031_v50 }
 0x147   : > { %v1266_v20 = vld.sshfl [vmem:[#allocation1] sm:$0xff pattern:$0x73625140] }
 0x148   : > { %3363 = vmatmul.bf16.vlgmr.msra.gmra.mxu1 %v1266_v20  ;;  %1268 = vst [vmem:[#allocation1] ss:$4 sm:$0xff] %v6023_v46  ;;  %v3059_v39 = vadd.f32 %v3058_v36, %v3045_v59 }
 0x149   : > { %1270 = vst [vmem:[#allocation1 + $0x1] ss:$4 sm:$0xff] %v6028_v55  ;;  %v3029_v55 = vadd.f32 %v3028_v13, %v3014_v43 }
 0x14a   : > { %1272 = vst [vmem:[#allocation1 + $0x2] ss:$4 sm:$0xff] %v1007_v26 }
 0x14b   : > { %1274 = vst [vmem:[#allocation1 + $0x3] ss:$4 sm:$0xff] %v5281_v60  ;;  %v3086_v1 = vpop.f32.mrf.mxu1  ;;  %v3043_v58 = vadd.f32 %v3042_v25, %v3029_v55 }
 0x14d   : > { %v3072_v14 = vpop.f32.mrf.mxu0  ;;  %v3098_v37 = vpop.f32.mrf.mxu2  ;;  %v3057_v23 = vadd.f32 %v3056_v45, %v3043_v58 }
 0x14e   : > { %v3112_v32 = vpop.f32.mrf.mxu3  ;;  %v3073_v5 = vadd.f32 %v3072_v14, %v3059_v39 }
 0x14f   : > { %v3071_v51 = vadd.f32 %v3070_v31, %v3057_v23 }
 0x150   : > { %v3087_v54 = vadd.f32 %v3086_v1, %v3073_v5 }
 0x151   : > { %v3085_v49 = vadd.f32 %v3084_v16, %v3071_v51 }
 0x152   : > { %v1275_v30 = vld.sshfl [vmem:[#allocation1] sm:$0xff pattern:$0x73625140] }
 0x153   : > { %3377 = vmatmul.bf16.vlgmr.msra.gmra.mxu2 %v1275_v30  ;;  %v3140_v63 = vpop.f32.mrf.mxu1  ;;  %v3099_v7 = vadd.f32 %v3098_v37, %v3085_v49 }
 0x155   : > { %v3126_v38 = vpop.f32.mrf.mxu0  ;;  %v3100_v40 = vpop.f32.mrf.mxu2  ;;  %v3113_v10 = vadd.f32 %v3112_v32, %v3099_v7 }
 0x156   : > { %v3114_v60 = vpop.f32.mrf.mxu3  ;;  %v3101_v8 = vadd.f32 %v3100_v40, %v3087_v54 }
 0x157   : > { %v3127_v12 = vadd.f32 %v3126_v38, %v3113_v10 }
 0x158   : > { %v3115_v53 = vadd.f32 %v3114_v60, %v3101_v8 }
 0x159   : > { %v3141_v17 = vadd.f32 %v3140_v63, %v3127_v12 }
 0x15b   : > { %v3142_v46 = vpop.f32.mrf.mxu1 }
 0x15d   : > { %v3154_v41 = vpop.f32.mrf.mxu2  ;;  %v3128_v2 = vpop.f32.mrf.mxu0 }
 0x15e   : > { %v3168_v24 = vpop.f32.mrf.mxu3  ;;  %v3129_v47 = vadd.f32 %v3128_v2, %v3115_v53  ;;  %v3155_v19 = vadd.f32 %v3154_v41, %v3141_v17 }
 0x160   : > { %v3143_v21 = vadd.f32 %v3142_v46, %v3129_v47  ;;  %v3169_v26 = vadd.f32 %v3168_v24, %v3155_v19 }
 0x163   : > { %v3196_v61 = vpop.f32.mrf.mxu1 }
 0x165   : > { %v3156_v56 = vpop.f32.mrf.mxu2  ;;  %v3182_v29 = vpop.f32.mrf.mxu0 }
 0x166   : > { %v3170_v52 = vpop.f32.mrf.mxu3  ;;  %v3157_v42 = vadd.f32 %v3156_v56, %v3143_v21  ;;  %v3183_v28 = vadd.f32 %v3182_v29, %v3169_v26 }
 0x168   : > { %v3171_v9 = vadd.f32 %v3170_v52, %v3157_v42  ;;  %v3197_v43 = vadd.f32 %v3196_v61, %v3183_v28 }
 0x16b   : > { %v3198_v3 = vpop.f32.mrf.mxu1 }
 0x16d   : > { %v3210_v62 = vpop.f32.mrf.mxu2  ;;  %v3184_v0 = vpop.f32.mrf.mxu0 }
 0x16e   : > { %v3224_v6 = vpop.f32.mrf.mxu3  ;;  %v3185_v30 = vadd.f32 %v3184_v0, %v3171_v9  ;;  %v3211_v25 = vadd.f32 %v3210_v62, %v3197_v43 }
 0x170   : > { %v3199_v33 = vadd.f32 %v3198_v3, %v3185_v30  ;;  %v3225_v45 = vadd.f32 %v3224_v6, %v3211_v25 }
 0x173   : > { %v3252_v11 = vpop.f32.mrf.mxu1 }
 0x175   : > { %v3212_v15 = vpop.f32.mrf.mxu2  ;;  %v3238_v57 = vpop.f32.mrf.mxu0 }
 0x176   : > { %v3226_v18 = vpop.f32.mrf.mxu3  ;;  %v3213_v34 = vadd.f32 %v3212_v15, %v3199_v33  ;;  %v3239_v36 = vadd.f32 %v3238_v57, %v3225_v45 }
 0x178   : > { %v3227_v35 = vadd.f32 %v3226_v18, %v3213_v34  ;;  %v3253_v1 = vadd.f32 %v3252_v11, %v3239_v36 }
 0x17b   : > { %v3254_v22 = vpop.f32.mrf.mxu1 }
 0x17d   : > { %v3240_v4 = vpop.f32.mrf.mxu0 }
 0x17e   : > { %v3266_v48 = vpop.f32.mrf.mxu2  ;;  %v3241_v37 = vadd.f32 %v3240_v4, %v3227_v35 }
 0x17f   : > { %v3267_v40 = vadd.f32 %v3266_v48, %v3253_v1 }
 0x180   : > { %v3255_v38 = vadd.f32 %v3254_v22, %v3241_v37 }
 0x186   : > { %v3268_v44 = vpop.f32.mrf.mxu2 }
 0x187   : > { %v3269_v60 = vadd.f32 %v3268_v44, %v3255_v38 }
 0x189   : > { %v3280_v27 = vpop.f32.mrf.mxu3 }
 0x18a   : > { %v3281_v41 = vadd.f32 %v3280_v27, %v3267_v40 }
 0x18e   : > { %v3294_v20 = vpop.f32.mrf.mxu0 }
 0x18f   : > { %v3295_v24 = vadd.f32 %v3294_v20, %v3281_v41 }
 0x191   : > { %v3282_v31 = vpop.f32.mrf.mxu3 }
 0x192   : > { %v3283_v2 = vadd.f32 %v3282_v31, %v3269_v60 }
 0x196   : > { %v3296_v14 = vpop.f32.mrf.mxu0 }
 0x197   : > { %v3297_v58 = vadd.f32 %v3296_v14, %v3283_v2 }
 0x199   : > { %v3308_v13 = vpop.f32.mrf.mxu1 }
 0x19a   : > { %v3309_v56 = vadd.f32 %v3308_v13, %v3295_v24 }
 0x1a1   : > { %v3310_v32 = vpop.f32.mrf.mxu1 }
 0x1a2   : > { %v3311_v29 = vadd.f32 %v3310_v32, %v3297_v58 }
 0x1aa   : > { %v3322_v16 = vpop.f32.mrf.mxu2 }
 0x1ab   : > { %v3323_v59 = vadd.f32 %v3322_v16, %v3309_v56 }
 0x1b2   : > { %v3324_v46 = vpop.f32.mrf.mxu2 }
 0x1b3   : > { %v3325_v23 = vadd.f32 %v3324_v46, %v3311_v29 }
 0x1b5   : > { %v3336_v63 = vpop.f32.mrf.mxu3 }
 0x1b6   : > { %v3337_v39 = vadd.f32 %v3336_v63, %v3323_v59 }
 0x1ba   : > { %v3350_v55 = vpop.f32.mrf.mxu0 }
 0x1bb   : > { %v3351_v5 = vadd.f32 %v3350_v55, %v3337_v39 }
 0x1bd   : > { %v3338_v61 = vpop.f32.mrf.mxu3 }
 0x1be   : > { %v3339_v51 = vadd.f32 %v3338_v61, %v3325_v23 }
 0x1c2   : > { %v3352_v62 = vpop.f32.mrf.mxu0 }
 0x1c3   : > { %v3353_v49 = vadd.f32 %v3352_v62, %v3339_v51 }
 0x1c5   : > { %v3364_v50 = vpop.f32.mrf.mxu1 }
 0x1c6   : > { %v3365_v3 = vadd.f32 %v3364_v50, %v3351_v5 }
 0x1cd   : > { %v3366_v0 = vpop.f32.mrf.mxu1 }
 0x1ce   : > { %v3367_v54 = vadd.f32 %v3366_v0, %v3353_v49 }
 0x1d6   : > { %v3378_v52 = vpop.f32.mrf.mxu2 }
 0x1d7   : > { %v3379_v6 = vadd.f32 %v3378_v52, %v3365_v3 }
 0x1d9   : > { %v3394_v15 = vmul.f32 %v3379_v6, %v3379_v6 }
 0x1de   : > { %v3380_v7 = vpop.f32.mrf.mxu2 }
 0x1df   : > { %v3381_v8 = vadd.f32 %v3380_v7, %v3367_v54 }
 0x1e1   : > { %v4770_v57 = vpack.c.bf16 %v3381_v8, %v3379_v6  ;;  %v3387_v10 = vadd.f32 %v3381_v8, %v3379_v6  ;;  %v3395_v11 = vmul.f32 %v3381_v8, %v3381_v8 }
 0x1e3   : > { %4771 = vst [vmem:[%s493_s8] sm:$0xff] %v4770_v57   ;;  %v3388_v53 = vrot.slane %v3387_v10, 4  ;;  %v3396_v12 = vadd.f32 %v3395_v11, %v3394_v15 }
 0x1e5   : > { %v3389_v18 = vadd.f32 %v3388_v53, %v3387_v10  ;;  %v3397_v47 = vrot.slane %v3396_v12, 4 }
 0x1e7   : > { %v3390_v48 = vrot.slane %v3389_v18, 2  ;;  %v3398_v17 = vadd.f32 %v3397_v47, %v3396_v12 }
 0x1e9   : > { %v3391_v4 = vadd.f32 %v3390_v48, %v3389_v18  ;;  %v3399_v21 = vrot.slane %v3398_v17, 2 }
 0x1eb   : > { %v3392_v19 = vrot.slane %v3391_v4, 1  ;;  %v3400_v22 = vadd.f32 %v3399_v21, %v3398_v17 }
 0x1ed   : > { %v3401_v42 = vrot.slane %v3400_v22, 1  ;;  %v3393_v26 = vadd.f32 %v3392_v19, %v3391_v4 }
 0x1ef   : > { %v3402_v27 = vadd.f32 %v3401_v42, %v3400_v22 }
 0x1f1   : > { %v3404_v9 = vsel %vm583_vm0, %v3393_v26, %v3402_v27 }
 0x1f2   : > { %3405 = vst [vmem:[%s501_s18] sm:$0x3] %v3404_v9 }
 0x1f3 PF: > { %s18_s28 = sadd.s32 1, %s4855_s28   ;;  %s6184_s24 = smov %s4847_s26 }
 0x1f4   : > { %p15_p3 = scmp.ge.s32.totalorder %s18_s28, 10   ;;  %s6185_s25 = smov %s4851_s27 }
 0x1f5   : > { %s6186_s26 = smov %s6189_s29  ;;  %s6187_s27 = smov %s6193_s30 }
 0x1f6   :  { %17 = sbr.rel (!%p15_p3) target bundleno = 3 (0x3), region = 173 }

</bundles_post_ra>
